<compile_context>
chip_gen: v6e
topology: v6e:2x2x1
jax: 0.10.0
libtpu: 0.0.40
codegen_flags: <defaults>
</compile_context>

<pallas_src>
import numpy as np

import jax
import jax.numpy as jnp
from jax.experimental import pallas as pl
from jax.experimental.pallas import tpu as pltpu

FIELD_DIM = 128   # module default field_dim
HIDDEN = 64       # integration_estimator hidden width (logical)
HIDDEN_PAD = 128  # zero-padded hidden width (lane-dense)

_SQRT_2_OVER_PI = 0.7978845608028654


# ---------- elementwise helpers (VPU / EUP ops; also used by the reference) ----
def _gelu_tanh(x):
    # tanh-approximate GELU (PyTorch GELU(approximate='tanh')); tanh -> EUP slot.
    # TODO(synk): exact-erf GELU (PyTorch default) would need a VALU-heavy
    # rational erf; the tanh form differs by ~1e-3 abs.
    return 0.5 * x * (1.0 + jnp.tanh(_SQRT_2_OVER_PI * x * (1.0 + 0.044715 * x * x)))


def _softplus(x):
    # numerically stable softplus
    return jnp.maximum(x, 0.0) + jnp.log(1.0 + jnp.exp(-jnp.abs(x)))


def _vpu_supports_bf16():
    """True on chips whose VPU runs packed bf16 elementwise ops (v6e/v7x)."""
    try:
        kind = jax.devices()[0].device_kind.lower()
    except Exception:
        return True
    for bad in ("v2", "v3", "v4", "v5 lite", "v5e", "v5lite", "v5p"):
        if bad in kind:
            return False
    return True


# ---------- the kernel (built as a closure so T_c / gelu dtype are static) ----
def _build_kernel(D, T_c, gelu_dtype):
    def field_kernel(x_ref, fs0_ref, fe0_ref,
                     w1_ref, b1_ref, lnw_ref, lnb_ref,
                     w2_ref, b2_ref, w3_ref, b3_ref, w4r_ref, b4_ref,
                     fs_out_ref, phi_out_ref, fe_out_ref,
                     fs_scr, fe_scr, cat_scr):
        c = pl.program_id(1)  # T-chunk index ("arbitrary" axis)

        # Load the initial state into the VMEM carry at the first chunk of
        # each batch tile; it stays on-chip for the whole sequence.
        @pl.when(c == 0)
        def _init():
            fs_scr[...] = fs0_ref[...]
            fe_scr[...] = fe0_ref[...]

        fs = fs_scr[...]          # (tb, D)  f32 carry
        fe = fe_scr[...]          # (tb, 1)  f32 carry
        b4 = b4_ref[0, 0]         # SMEM scalar

        # Fully-unrolled recurrence over the T_c timesteps of this chunk.
        for t in range(T_c):
            # field_dynamics[0]: Linear(2D -> D) on cat([fs, x], -1), fused as
            # a single K=2D matmul through a bf16 concat scratch.
            cat_scr[:, 0:D] = fs.astype(jnp.bfloat16)
            cat_scr[:, D:2 * D] = x_ref[t]                      # bf16
            h = (jnp.dot(cat_scr[...], w1_ref[...],
                         preferred_element_type=jnp.float32) + b1_ref[...])

            # field_dynamics[1]: LayerNorm(D), eps=1e-5 (f32 statistics)
            mu = jnp.mean(h, axis=-1, keepdims=True)
            var = jnp.mean(jnp.square(h - mu), axis=-1, keepdims=True)
            hn = (h - mu) * jax.lax.rsqrt(var + 1e-5) * lnw_ref[...] + lnb_ref[...]

            # field_dynamics[2]: GELU (tanh approx; bf16 on v6e/v7x)
            a = _gelu_tanh(hn.astype(gelu_dtype))

            # field_dynamics[3]: Linear(D -> D)
            upd = jnp.dot(a.astype(jnp.bfloat16), w2_ref[...],
                          preferred_element_type=jnp.float32) + b2_ref[...]

            # state update: tanh(0.9*fs + 0.1*update)  (f32)
            fs = jnp.tanh(0.9 * fs + 0.1 * upd)

            # integration_estimator: Linear(D->64) -> GELU -> Linear(64->1) -> Softplus
            # (hidden dim zero-padded 64 -> 128; padded lanes are exactly zero)
            h2 = jnp.dot(fs.astype(jnp.bfloat16), w3_ref[...],
                         preferred_element_type=jnp.float32) + b3_ref[...]
            a2 = _gelu_tanh(h2.astype(gelu_dtype)).astype(jnp.float32)
            # Linear(64 -> 1) as a VPU multiply + lane reduction (no N=1 matmul)
            pre = jnp.sum(a2 * w4r_ref[...], axis=-1, keepdims=True) + b4
            phi = _softplus(pre)                                # (tb, 1) f32

            fe = 0.95 * fe + 0.05 * phi

            # static-lane-offset writes into the chunk's output block (VMEM);
            # the whole (tb, T_c) block is DMA'd back once per chunk.
            phi_out_ref[:, t:t + 1] = phi
            fe_out_ref[:, t:t + 1] = fe

        # carry the state on-chip for the next chunk
        fs_scr[...] = fs
        fe_scr[...] = fe
        # final field_state block is revisited across chunks -> written back
        # to HBM only when the batch tile changes / the grid ends.
        fs_out_ref[...] = fs

    return field_kernel


# ---------- host-side glue ----------
def _adaptive_pool_matrix(L, out_size):
    """(L, out_size) matrix realizing F.adaptive_avg_pool1d bin boundaries."""
    mat = np.zeros((L, out_size), np.float32)
    for i in range(out_size):
        s = (i * L) // out_size
        e = -((-(i + 1) * L) // out_size)   # ceil((i+1)*L/out_size)
        mat[s:e, i] = 1.0 / (e - s)
    return jnp.asarray(mat)


def _pick_tb(B):
    if B % 128 == 0:
        return 128                       # caps vreg pressure; nb>=2 when B>=256
    if B > 128 and B % 8 == 0:
        return max(d for d in range(8, 129, 8) if B % d == 0)
    return B                             # small batch: single full-dim tile


def _pick_tc(T, cap=16):
    tc = min(T, cap)
    while T % tc:
        tc -= 1
    return tc


# ---------- wrapper ----------
def bounded_global_field(input_signal, field_state, field_energy, params):
    """Run T forward() steps fused in one pallas_call.

    input_signal: (B, L) for a single step or (T, B, L) for T sequential steps.
    Returns (final_field_state (B,D), phi, field_energy); phi/field_energy are
    (B,) for a single step or (T, B) for a sequence.
    """
    D = FIELD_DIM
    x = jnp.asarray(input_signal, jnp.float32)
    single_step = (x.ndim == 2)
    if single_step:
        x = x[None]
    T, B, L = x.shape

    # Glue: adaptive_avg_pool1d(input, D) when last dim != field_dim (host-side XLA).
    if L != D:
        x = x @ _adaptive_pool_matrix(L, D)
    x = x.astype(jnp.bfloat16)            # MXU input, halves x DMA bytes

    # Buffer "expand to batch" semantics of the PyTorch module.
    fs0 = jnp.asarray(field_state, jnp.float32).reshape(-1, D)
    if fs0.shape[0] == 1 and B > 1:
        fs0 = jnp.broadcast_to(fs0, (B, D))
    elif fs0.shape[0] != B:
        raise ValueError("field_state batch dim must be 1 or match input batch")
    fe0 = jnp.asarray(field_energy, jnp.float32).reshape(-1)
    if fe0.shape[0] == 1 and B > 1:
        fe0 = jnp.broadcast_to(fe0, (B,))
    elif fe0.shape[0] != B:
        raise ValueError("field_energy batch dim must be 1 or match input batch")
    fe0 = fe0.reshape(B, 1)

    tb = _pick_tb(B)
    nb = B // tb
    T_c = _pick_tc(T)
    n_chunks = T // T_c

    gelu_dtype = jnp.bfloat16 if _vpu_supports_bf16() else jnp.float32

    # bf16 weights for the MXU; biases / LN / reduction row stay f32.
    w1 = params["w1"].astype(jnp.bfloat16)
    w2 = params["w2"].astype(jnp.bfloat16)
    w3 = params["w3"].astype(jnp.bfloat16)

    inputs = [
        x, fs0, fe0,
        w1, params["b1"], params["ln_w"], params["ln_b"],
        w2, params["b2"], w3, params["b3"], params["w4_row"], params["b4"],
    ]

    def _const2d(shape):
        return pl.BlockSpec(shape, lambda b, c: (0, 0))

    in_specs = [
        pl.BlockSpec((T_c, tb, D), lambda b, c: (c, b, 0)),      # x chunk
        pl.BlockSpec((tb, D), lambda b, c: (b, 0)),              # initial field_state
        pl.BlockSpec((tb, 1), lambda b, c: (b, 0)),              # initial field_energy
        _const2d((2 * D, D)),                                    # w1 (fused K=256)
        _const2d((1, D)),                                        # b1
        _const2d((1, D)),                                        # ln_w
        _const2d((1, D)),                                        # ln_b
        _const2d((D, D)),                                        # w2
        _const2d((1, D)),                                        # b2
        _const2d((D, HIDDEN_PAD)),                               # w3 (padded)
        _const2d((1, HIDDEN_PAD)),                               # b3 (padded)
        _const2d((1, HIDDEN_PAD)),                               # w4 row (padded)
        pl.BlockSpec(memory_space=pltpu.MemorySpace.SMEM),       # b4 scalar
    ]

    out_shape = (
        jax.ShapeDtypeStruct((B, D), jnp.float32),               # final field_state
        jax.ShapeDtypeStruct((n_chunks, B, T_c), jnp.float32),   # phi per step
        jax.ShapeDtypeStruct((n_chunks, B, T_c), jnp.float32),   # field_energy per step
    )
    out_specs = (
        pl.BlockSpec((tb, D), lambda b, c: (b, 0)),
        pl.BlockSpec((None, tb, T_c), lambda b, c: (c, b, 0)),
        pl.BlockSpec((None, tb, T_c), lambda b, c: (c, b, 0)),
    )

    grid_spec = pltpu.PrefetchScalarGridSpec(
        num_scalar_prefetch=0,
        grid=(nb, n_chunks),
        in_specs=in_specs,
        out_specs=out_specs,
        scratch_shapes=[
            pltpu.VMEM((tb, D), jnp.float32),        # field_state carry
            pltpu.VMEM((tb, 1), jnp.float32),        # field_energy carry
            pltpu.VMEM((tb, 2 * D), jnp.bfloat16),   # [fs | x] concat scratch
        ],
    )

    kernel = _build_kernel(D, T_c, gelu_dtype)
    fs_new, phi, fe_new = pl.pallas_call(
        kernel,
        out_shape=out_shape,
        grid_spec=grid_spec,
        compiler_params=pltpu.CompilerParams(
            dimension_semantics=("parallel", "arbitrary")),
    )(*inputs)

    # (n_chunks, B, T_c) -> (T, B)   (layout plumbing outside the kernel)
    phi = phi.transpose(0, 2, 1).reshape(T, B)
    fe_new = fe_new.transpose(0, 2, 1).reshape(T, B)
    if single_step:
        return fs_new, phi[0], fe_new[0]
    return fs_new, phi, fe_new


# ---------- pure-JAX f32 reference (same tanh-GELU semantics) ----------
def reference(x_seq, fs, fe, p):
    phis, fes = [], []
    fe = fe.reshape(-1, 1)
    for t in range(x_seq.shape[0]):
        xt = x_seq[t]
        h = jnp.concatenate([fs, xt], axis=-1) @ p["w1"] + p["b1"]
        mu = h.mean(-1, keepdims=True)
        var = ((h - mu) ** 2).mean(-1, keepdims=True)
        hn = (h - mu) / jnp.sqrt(var + 1e-5) * p["ln_w"] + p["ln_b"]
        upd = _gelu_tanh(hn) @ p["w2"] + p["b2"]
        fs = jnp.tanh(0.9 * fs + 0.1 * upd)
        h2 = fs @ p["w3"] + p["b3"]
        pre = (_gelu_tanh(h2) * p["w4_row"]).sum(-1, keepdims=True) + p["b4"][0, 0]
        phi = _softplus(pre)
        fe = 0.95 * fe + 0.05 * phi
        phis.append(phi[:, 0])
        fes.append(fe[:, 0])
    return fs, jnp.stack(phis), jnp.stack(fes)


# ---------- deterministic parameter init (PyTorch Linear-style uniform) ----------
def init_params(key):
    ks = jax.random.split(key, 4)

    def linear(k, fan_in, fan_out):
        kw, kb = jax.random.split(k)
        bound = 1.0 / (fan_in ** 0.5)
        w = jax.random.uniform(kw, (fan_in, fan_out), jnp.float32, -bound, bound)
        b = jax.random.uniform(kb, (1, fan_out), jnp.float32, -bound, bound)
        return w, b

    w1, b1 = linear(ks[0], 2 * FIELD_DIM, FIELD_DIM)   # field_dynamics Linear(256,128)
    w2, b2 = linear(ks[1], FIELD_DIM, FIELD_DIM)       # field_dynamics Linear(128,128)
    w3, b3 = linear(ks[2], FIELD_DIM, HIDDEN)          # estimator Linear(128,64)
    w4, b4 = linear(ks[3], HIDDEN, 1)                  # estimator Linear(64,1)

    # zero-pad estimator hidden 64 -> 128 so the h2/a2 tile is lane-dense
    pad = HIDDEN_PAD - HIDDEN
    w3p = jnp.pad(w3, ((0, 0), (0, pad)))
    b3p = jnp.pad(b3, ((0, 0), (0, pad)))
    w4_row = jnp.pad(w4[:, 0][None, :], ((0, 0), (0, pad)))  # (1, HIDDEN_PAD)

    return dict(
        w1=w1, b1=b1,
        ln_w=jnp.ones((1, FIELD_DIM), jnp.float32),
        ln_b=jnp.zeros((1, FIELD_DIM), jnp.float32),
        w2=w2, b2=b2,
        w3=w3p, b3=b3p,
        w4_row=w4_row, b4=b4,      # b4 is (1,1), passed via SMEM
    )


if __name__ == "__main__":
    key = jax.random.PRNGKey(0)
    kx, kp = jax.random.split(key)

    B, T = 2, 8
    # Sequence of T input signals (the module is called once per step).
    x_seq = jax.random.normal(kx, (T, B, FIELD_DIM), dtype=jnp.float32)
    field_state = jnp.zeros((1, FIELD_DIM), jnp.float32)   # buffer init
    field_energy = jnp.ones((1,), jnp.float32)              # buffer init

    params = init_params(kp)

    fs_new, phi, fe_new = bounded_global_field(x_seq, field_state, field_energy, params)
    jax.block_until_ready((fs_new, phi, fe_new))

    assert fs_new.shape == (B, FIELD_DIM)
    assert phi.shape == (T, B)
    assert fe_new.shape == (T, B)

    # correctness vs. pure-JAX f32 reference (bf16 MXU/GELU introduces ~1e-3 error)
    fs0 = jnp.broadcast_to(field_state, (B, FIELD_DIM))
    fe0 = jnp.broadcast_to(field_energy, (B,))
    fs_ref, phi_ref, fe_ref = reference(x_seq, fs0, fe0, params)
    assert float(jnp.max(jnp.abs(fs_new - fs_ref))) < 5e-2
    assert float(jnp.max(jnp.abs(phi - phi_ref))) < 5e-2
    assert float(jnp.max(jnp.abs(fe_new - fe_ref))) < 5e-2

    print("KERNEL_OK")
</pallas_src>

<mosaic_0001>
module attributes {stable_mosaic.version = 11 : i64} {
  func.func @field_kernel(%arg0: i32, %arg1: i32, %arg2: memref<8x2x128xbf16, #tpu.memory_space<vmem>>, %arg3: memref<2x128xf32, #tpu.memory_space<vmem>>, %arg4: memref<2x1xf32, #tpu.memory_space<vmem>>, %arg5: memref<256x128xbf16, #tpu.memory_space<vmem>>, %arg6: memref<1x128xf32, #tpu.memory_space<vmem>>, %arg7: memref<1x128xf32, #tpu.memory_space<vmem>>, %arg8: memref<1x128xf32, #tpu.memory_space<vmem>>, %arg9: memref<128x128xbf16, #tpu.memory_space<vmem>>, %arg10: memref<1x128xf32, #tpu.memory_space<vmem>>, %arg11: memref<128x128xbf16, #tpu.memory_space<vmem>>, %arg12: memref<1x128xf32, #tpu.memory_space<vmem>>, %arg13: memref<1x128xf32, #tpu.memory_space<vmem>>, %arg14: memref<1x1xf32, #tpu.memory_space<smem>>, %arg15: memref<2x128xf32, #tpu.memory_space<vmem>>, %arg16: memref<1x2x8xf32, #tpu.memory_space<vmem>>, %arg17: memref<1x2x8xf32, #tpu.memory_space<vmem>>, %arg18: memref<2x128xf32, #tpu.memory_space<vmem>>, %arg19: memref<2x1xf32, #tpu.memory_space<vmem>>, %arg20: memref<2x256xbf16, #tpu.memory_space<vmem>>) attributes {dimension_semantics = [#tpu.dimension_semantics<parallel>, #tpu.dimension_semantics<arbitrary>], iteration_bounds = array<i64: 1, 1>, scalar_prefetch = 0 : i64, scratch_operands = 3 : i64, tpu.core_type = #tpu.core_type<tc>, window_params = [{transform_indices = @transform_0, window_bounds = array<i64: 8, 2, 128>}, {transform_indices = @transform_1, window_bounds = array<i64: 2, 128>}, {transform_indices = @transform_2, window_bounds = array<i64: 2, 1>}, {pipeline_mode = #tpu.pipeline_mode<synchronous>, transform_indices = @transform_3, window_bounds = array<i64: 256, 128>}, {pipeline_mode = #tpu.pipeline_mode<synchronous>, transform_indices = @transform_4, window_bounds = array<i64: 1, 128>}, {pipeline_mode = #tpu.pipeline_mode<synchronous>, transform_indices = @transform_5, window_bounds = array<i64: 1, 128>}, {pipeline_mode = #tpu.pipeline_mode<synchronous>, transform_indices = @transform_6, window_bounds = array<i64: 1, 128>}, {pipeline_mode = #tpu.pipeline_mode<synchronous>, transform_indices = @transform_7, window_bounds = array<i64: 128, 128>}, {pipeline_mode = #tpu.pipeline_mode<synchronous>, transform_indices = @transform_8, window_bounds = array<i64: 1, 128>}, {pipeline_mode = #tpu.pipeline_mode<synchronous>, transform_indices = @transform_9, window_bounds = array<i64: 128, 128>}, {pipeline_mode = #tpu.pipeline_mode<synchronous>, transform_indices = @transform_10, window_bounds = array<i64: 1, 128>}, {pipeline_mode = #tpu.pipeline_mode<synchronous>, transform_indices = @transform_11, window_bounds = array<i64: 1, 128>}, {transform_indices = @transform_12, window_bounds = array<i64: 1, 1>}, {transform_indices = @transform_13, window_bounds = array<i64: 2, 128>}, {transform_indices = @transform_14, window_bounds = array<i64: 1, 2, 8>}, {transform_indices = @transform_15, window_bounds = array<i64: 1, 2, 8>}]} {
    %c0_i32 = arith.constant 0 : i32
    %0 = arith.cmpi eq, %arg1, %c0_i32 : i32
    %1 = arith.extui %0 : i1 to i32
    %c0_i32_0 = arith.constant 0 : i32
    %2 = arith.cmpi ne, %1, %c0_i32_0 : i32
    scf.if %2 {
      %c0_475 = arith.constant 0 : index
      %c0_476 = arith.constant 0 : index
      %897 = vector.load %arg3[%c0_475, %c0_476] : memref<2x128xf32, #tpu.memory_space<vmem>>, vector<2x128xf32>
      %c0_477 = arith.constant 0 : index
      %c0_478 = arith.constant 0 : index
      %898 = vector.load %arg18[%c0_477, %c0_478] : memref<2x128xf32, #tpu.memory_space<vmem>>, vector<2x128xf32>
      tpu.vector_store %arg18[%c0_477, %c0_478], %897 {strides = array<i32>} : memref<2x128xf32, #tpu.memory_space<vmem>>, vector<2x128xf32>,
      %c0_479 = arith.constant 0 : index
      %c0_480 = arith.constant 0 : index
      %899 = vector.load %arg4[%c0_479, %c0_480] : memref<2x1xf32, #tpu.memory_space<vmem>>, vector<2x1xf32>
      %c0_481 = arith.constant 0 : index
      %c0_482 = arith.constant 0 : index
      %900 = vector.load %arg19[%c0_481, %c0_482] : memref<2x1xf32, #tpu.memory_space<vmem>>, vector<2x1xf32>
      tpu.vector_store %arg19[%c0_481, %c0_482], %899 {strides = array<i32>} : memref<2x1xf32, #tpu.memory_space<vmem>>, vector<2x1xf32>,
    } else {
    }
    %c0 = arith.constant 0 : index
    %c0_1 = arith.constant 0 : index
    %3 = vector.load %arg18[%c0, %c0_1] : memref<2x128xf32, #tpu.memory_space<vmem>>, vector<2x128xf32>
    %c0_2 = arith.constant 0 : index
    %c0_3 = arith.constant 0 : index
    %4 = vector.load %arg19[%c0_2, %c0_3] : memref<2x1xf32, #tpu.memory_space<vmem>>, vector<2x1xf32>
    %c0_4 = arith.constant 0 : index
    %c0_5 = arith.constant 0 : index
    %5 = memref.load %arg14[%c0_4, %c0_5] : memref<1x1xf32, #tpu.memory_space<smem>>
    %6 = arith.truncf %3 : vector<2x128xf32> to vector<2x128xbf16>
    %c0_6 = arith.constant 0 : index
    %c0_7 = arith.constant 0 : index
    %7 = vector.load %arg20[%c0_6, %c0_7] : memref<2x256xbf16, #tpu.memory_space<vmem>>, vector<2x128xbf16>
    tpu.vector_store %arg20[%c0_6, %c0_7], %6 {strides = array<i32>} : memref<2x256xbf16, #tpu.memory_space<vmem>>, vector<2x128xbf16>,
    %c0_8 = arith.constant 0 : index
    %c0_9 = arith.constant 0 : index
    %c0_10 = arith.constant 0 : index
    %8 = vector.load %arg2[%c0_8, %c0_9, %c0_10] : memref<8x2x128xbf16, #tpu.memory_space<vmem>>, vector<1x2x128xbf16>
    %9 = vector.shape_cast %8 : vector<1x2x128xbf16> to vector<2x128xbf16>
    %c0_11 = arith.constant 0 : index
    %c128 = arith.constant 128 : index
    %10 = vector.load %arg20[%c0_11, %c128] : memref<2x256xbf16, #tpu.memory_space<vmem>>, vector<2x128xbf16>
    tpu.vector_store %arg20[%c0_11, %c128], %9 {strides = array<i32>} : memref<2x256xbf16, #tpu.memory_space<vmem>>, vector<2x128xbf16>,
    %c0_12 = arith.constant 0 : index
    %c0_13 = arith.constant 0 : index
    %11 = vector.load %arg20[%c0_12, %c0_13] : memref<2x256xbf16, #tpu.memory_space<vmem>>, vector<2x256xbf16>
    %c0_14 = arith.constant 0 : index
    %c0_15 = arith.constant 0 : index
    %12 = vector.load %arg5[%c0_14, %c0_15] : memref<256x128xbf16, #tpu.memory_space<vmem>>, vector<256x128xbf16>
    %cst = arith.constant dense<0.000000e+00> : vector<2x128xf32>
    %13 = tpu.matmul %11, %12, %cst {dimension_numbers = #tpu.dot_dimension_numbers<[1], [0], [0], [1], [0, 0, 1, 1], [], []>} : vector<2x256xbf16>, vector<256x128xbf16>, vector<2x128xf32> -> vector<2x128xf32>
    %c0_16 = arith.constant 0 : index
    %c0_17 = arith.constant 0 : index
    %14 = vector.load %arg6[%c0_16, %c0_17] : memref<1x128xf32, #tpu.memory_space<vmem>>, vector<1x128xf32>
    %15 = vector.broadcast %14 : vector<1x128xf32> to vector<2x128xf32>
    %16 = arith.addf %13, %15 : vector<2x128xf32>
    %cst_18 = arith.constant dense<0.000000e+00> : vector<2xf32>
    %17 = vector.multi_reduction <add>, %16, %cst_18 [1] : vector<2x128xf32> to vector<2xf32>
    %18 = vector.shape_cast %17 : vector<2xf32> to vector<2x1xf32>
    %cst_19 = arith.constant 1.280000e+02 : f32
    %19 = vector.broadcast %cst_19 : f32 to vector<2x1xf32>
    %20 = arith.divf %18, %19 : vector<2x1xf32>
    %21 = vector.broadcast %20 : vector<2x1xf32> to vector<2x128xf32>
    %22 = arith.subf %16, %21 : vector<2x128xf32>
    %23 = arith.mulf %22, %22 : vector<2x128xf32>
    %cst_20 = arith.constant dense<0.000000e+00> : vector<2xf32>
    %24 = vector.multi_reduction <add>, %23, %cst_20 [1] : vector<2x128xf32> to vector<2xf32>
    %25 = vector.shape_cast %24 : vector<2xf32> to vector<2x1xf32>
    %cst_21 = arith.constant 1.280000e+02 : f32
    %26 = vector.broadcast %cst_21 : f32 to vector<2x1xf32>
    %27 = arith.divf %25, %26 : vector<2x1xf32>
    %28 = vector.broadcast %20 : vector<2x1xf32> to vector<2x128xf32>
    %29 = arith.subf %16, %28 : vector<2x128xf32>
    %cst_22 = arith.constant 9.99999974E-6 : f32
    %30 = vector.broadcast %cst_22 : f32 to vector<2x1xf32>
    %31 = arith.addf %27, %30 : vector<2x1xf32>
    %32 = math.rsqrt %31 : vector<2x1xf32>
    %33 = vector.broadcast %32 : vector<2x1xf32> to vector<2x128xf32>
    %34 = arith.mulf %29, %33 : vector<2x128xf32>
    %c0_23 = arith.constant 0 : index
    %c0_24 = arith.constant 0 : index
    %35 = vector.load %arg7[%c0_23, %c0_24] : memref<1x128xf32, #tpu.memory_space<vmem>>, vector<1x128xf32>
    %36 = vector.broadcast %35 : vector<1x128xf32> to vector<2x128xf32>
    %37 = arith.mulf %34, %36 : vector<2x128xf32>
    %c0_25 = arith.constant 0 : index
    %c0_26 = arith.constant 0 : index
    %38 = vector.load %arg8[%c0_25, %c0_26] : memref<1x128xf32, #tpu.memory_space<vmem>>, vector<1x128xf32>
    %39 = vector.broadcast %38 : vector<1x128xf32> to vector<2x128xf32>
    %40 = arith.addf %37, %39 : vector<2x128xf32>
    %41 = arith.truncf %40 : vector<2x128xf32> to vector<2x128xbf16>
    %cst_27 = arith.constant 5.000000e-01 : bf16
    %42 = vector.broadcast %cst_27 : bf16 to vector<2x128xbf16>
    %43 = arith.mulf %42, %41 : vector<2x128xbf16>
    %cst_28 = arith.constant 7.968750e-01 : bf16
    %44 = vector.broadcast %cst_28 : bf16 to vector<2x128xbf16>
    %45 = arith.mulf %44, %41 : vector<2x128xbf16>
    %cst_29 = arith.constant 4.467770e-02 : bf16
    %46 = vector.broadcast %cst_29 : bf16 to vector<2x128xbf16>
    %47 = arith.mulf %46, %41 : vector<2x128xbf16>
    %48 = arith.mulf %47, %41 : vector<2x128xbf16>
    %cst_30 = arith.constant 1.000000e+00 : bf16
    %49 = vector.broadcast %cst_30 : bf16 to vector<2x128xbf16>
    %50 = arith.addf %49, %48 : vector<2x128xbf16>
    %51 = arith.mulf %45, %50 : vector<2x128xbf16>
    %52 = math.tanh %51 : vector<2x128xbf16>
    %cst_31 = arith.constant 1.000000e+00 : bf16
    %53 = vector.broadcast %cst_31 : bf16 to vector<2x128xbf16>
    %54 = arith.addf %53, %52 : vector<2x128xbf16>
    %55 = arith.mulf %43, %54 : vector<2x128xbf16>
    %c0_32 = arith.constant 0 : index
    %c0_33 = arith.constant 0 : index
    %56 = vector.load %arg9[%c0_32, %c0_33] : memref<128x128xbf16, #tpu.memory_space<vmem>>, vector<128x128xbf16>
    %cst_34 = arith.constant dense<0.000000e+00> : vector<2x128xf32>
    %57 = tpu.matmul %55, %56, %cst_34 {dimension_numbers = #tpu.dot_dimension_numbers<[1], [0], [0], [1], [0, 0, 1, 1], [], []>} : vector<2x128xbf16>, vector<128x128xbf16>, vector<2x128xf32> -> vector<2x128xf32>
    %c0_35 = arith.constant 0 : index
    %c0_36 = arith.constant 0 : index
    %58 = vector.load %arg10[%c0_35, %c0_36] : memref<1x128xf32, #tpu.memory_space<vmem>>, vector<1x128xf32>
    %59 = vector.broadcast %58 : vector<1x128xf32> to vector<2x128xf32>
    %60 = arith.addf %57, %59 : vector<2x128xf32>
    %cst_37 = arith.constant 0.899999976 : f32
    %61 = vector.broadcast %cst_37 : f32 to vector<2x128xf32>
    %62 = arith.mulf %61, %3 : vector<2x128xf32>
    %cst_38 = arith.constant 1.000000e-01 : f32
    %63 = vector.broadcast %cst_38 : f32 to vector<2x128xf32>
    %64 = arith.mulf %63, %60 : vector<2x128xf32>
    %65 = arith.addf %62, %64 : vector<2x128xf32>
    %66 = math.tanh %65 : vector<2x128xf32>
    %67 = arith.truncf %66 : vector<2x128xf32> to vector<2x128xbf16>
    %c0_39 = arith.constant 0 : index
    %c0_40 = arith.constant 0 : index
    %68 = vector.load %arg11[%c0_39, %c0_40] : memref<128x128xbf16, #tpu.memory_space<vmem>>, vector<128x128xbf16>
    %cst_41 = arith.constant dense<0.000000e+00> : vector<2x128xf32>
    %69 = tpu.matmul %67, %68, %cst_41 {dimension_numbers = #tpu.dot_dimension_numbers<[1], [0], [0], [1], [0, 0, 1, 1], [], []>} : vector<2x128xbf16>, vector<128x128xbf16>, vector<2x128xf32> -> vector<2x128xf32>
    %c0_42 = arith.constant 0 : index
    %c0_43 = arith.constant 0 : index
    %70 = vector.load %arg12[%c0_42, %c0_43] : memref<1x128xf32, #tpu.memory_space<vmem>>, vector<1x128xf32>
    %71 = vector.broadcast %70 : vector<1x128xf32> to vector<2x128xf32>
    %72 = arith.addf %69, %71 : vector<2x128xf32>
    %73 = arith.truncf %72 : vector<2x128xf32> to vector<2x128xbf16>
    %cst_44 = arith.constant 5.000000e-01 : bf16
    %74 = vector.broadcast %cst_44 : bf16 to vector<2x128xbf16>
    %75 = arith.mulf %74, %73 : vector<2x128xbf16>
    %cst_45 = arith.constant 7.968750e-01 : bf16
    %76 = vector.broadcast %cst_45 : bf16 to vector<2x128xbf16>
    %77 = arith.mulf %76, %73 : vector<2x128xbf16>
    %cst_46 = arith.constant 4.467770e-02 : bf16
    %78 = vector.broadcast %cst_46 : bf16 to vector<2x128xbf16>
    %79 = arith.mulf %78, %73 : vector<2x128xbf16>
    %80 = arith.mulf %79, %73 : vector<2x128xbf16>
    %cst_47 = arith.constant 1.000000e+00 : bf16
    %81 = vector.broadcast %cst_47 : bf16 to vector<2x128xbf16>
    %82 = arith.addf %81, %80 : vector<2x128xbf16>
    %83 = arith.mulf %77, %82 : vector<2x128xbf16>
    %84 = math.tanh %83 : vector<2x128xbf16>
    %cst_48 = arith.constant 1.000000e+00 : bf16
    %85 = vector.broadcast %cst_48 : bf16 to vector<2x128xbf16>
    %86 = arith.addf %85, %84 : vector<2x128xbf16>
    %87 = arith.mulf %75, %86 : vector<2x128xbf16>
    %88 = arith.extf %87 : vector<2x128xbf16> to vector<2x128xf32>
    %c0_49 = arith.constant 0 : index
    %c0_50 = arith.constant 0 : index
    %89 = vector.load %arg13[%c0_49, %c0_50] : memref<1x128xf32, #tpu.memory_space<vmem>>, vector<1x128xf32>
    %90 = vector.broadcast %89 : vector<1x128xf32> to vector<2x128xf32>
    %91 = arith.mulf %88, %90 : vector<2x128xf32>
    %cst_51 = arith.constant dense<0.000000e+00> : vector<2xf32>
    %92 = vector.multi_reduction <add>, %91, %cst_51 [1] : vector<2x128xf32> to vector<2xf32>
    %93 = vector.shape_cast %92 : vector<2xf32> to vector<2x1xf32>
    %94 = vector.broadcast %5 : f32 to vector<2x1xf32>
    %95 = arith.addf %93, %94 : vector<2x1xf32>
    %cst_52 = arith.constant 0.000000e+00 : f32
    %96 = vector.broadcast %cst_52 : f32 to vector<2x1xf32>
    %97 = arith.maximumf %95, %96 : vector<2x1xf32>
    %98 = math.absf %95 : vector<2x1xf32>
    %cst_53 = arith.constant 0.000000e+00 : f32
    %99 = vector.broadcast %cst_53 : f32 to vector<2x1xf32>
    %100 = arith.subf %99, %98 : vector<2x1xf32>
    %101 = math.exp %100 : vector<2x1xf32>
    %cst_54 = arith.constant 1.000000e+00 : f32
    %102 = vector.broadcast %cst_54 : f32 to vector<2x1xf32>
    %103 = arith.addf %102, %101 : vector<2x1xf32>
    %104 = math.log %103 : vector<2x1xf32>
    %105 = arith.addf %97, %104 : vector<2x1xf32>
    %cst_55 = arith.constant 0.949999988 : f32
    %106 = vector.broadcast %cst_55 : f32 to vector<2x1xf32>
    %107 = arith.mulf %106, %4 : vector<2x1xf32>
    %cst_56 = arith.constant 5.000000e-02 : f32
    %108 = vector.broadcast %cst_56 : f32 to vector<2x1xf32>
    %109 = arith.mulf %108, %105 : vector<2x1xf32>
    %110 = arith.addf %107, %109 : vector<2x1xf32>
    %c0_57 = arith.constant 0 : index
    %c0_58 = arith.constant 0 : index
    %c0_59 = arith.constant 0 : index
    %111 = vector.load %arg16[%c0_57, %c0_58, %c0_59] : memref<1x2x8xf32, #tpu.memory_space<vmem>>, vector<1x2x1xf32>
    %112 = vector.shape_cast %111 : vector<1x2x1xf32> to vector<2x1xf32>
    %113 = vector.shape_cast %105 : vector<2x1xf32> to vector<1x2x1xf32>
    tpu.vector_store %arg16[%c0_57, %c0_58, %c0_59], %113 {strides = array<i32>} : memref<1x2x8xf32, #tpu.memory_space<vmem>>, vector<1x2x1xf32>,
    %c0_60 = arith.constant 0 : index
    %c0_61 = arith.constant 0 : index
    %c0_62 = arith.constant 0 : index
    %114 = vector.load %arg17[%c0_60, %c0_61, %c0_62] : memref<1x2x8xf32, #tpu.memory_space<vmem>>, vector<1x2x1xf32>
    %115 = vector.shape_cast %114 : vector<1x2x1xf32> to vector<2x1xf32>
    %116 = vector.shape_cast %110 : vector<2x1xf32> to vector<1x2x1xf32>
    tpu.vector_store %arg17[%c0_60, %c0_61, %c0_62], %116 {strides = array<i32>} : memref<1x2x8xf32, #tpu.memory_space<vmem>>, vector<1x2x1xf32>,
    %117 = arith.truncf %66 : vector<2x128xf32> to vector<2x128xbf16>
    %c0_63 = arith.constant 0 : index
    %c0_64 = arith.constant 0 : index
    %118 = vector.load %arg20[%c0_63, %c0_64] : memref<2x256xbf16, #tpu.memory_space<vmem>>, vector<2x128xbf16>
    tpu.vector_store %arg20[%c0_63, %c0_64], %117 {strides = array<i32>} : memref<2x256xbf16, #tpu.memory_space<vmem>>, vector<2x128xbf16>,
    %c1 = arith.constant 1 : index
    %c0_65 = arith.constant 0 : index
    %c0_66 = arith.constant 0 : index
    %119 = vector.load %arg2[%c1, %c0_65, %c0_66] : memref<8x2x128xbf16, #tpu.memory_space<vmem>>, vector<1x2x128xbf16>
    %120 = vector.shape_cast %119 : vector<1x2x128xbf16> to vector<2x128xbf16>
    %c0_67 = arith.constant 0 : index
    %c128_68 = arith.constant 128 : index
    %121 = vector.load %arg20[%c0_67, %c128_68] : memref<2x256xbf16, #tpu.memory_space<vmem>>, vector<2x128xbf16>
    tpu.vector_store %arg20[%c0_67, %c128_68], %120 {strides = array<i32>} : memref<2x256xbf16, #tpu.memory_space<vmem>>, vector<2x128xbf16>,
    %c0_69 = arith.constant 0 : index
    %c0_70 = arith.constant 0 : index
    %122 = vector.load %arg20[%c0_69, %c0_70] : memref<2x256xbf16, #tpu.memory_space<vmem>>, vector<2x256xbf16>
    %c0_71 = arith.constant 0 : index
    %c0_72 = arith.constant 0 : index
    %123 = vector.load %arg5[%c0_71, %c0_72] : memref<256x128xbf16, #tpu.memory_space<vmem>>, vector<256x128xbf16>
    %cst_73 = arith.constant dense<0.000000e+00> : vector<2x128xf32>
    %124 = tpu.matmul %122, %123, %cst_73 {dimension_numbers = #tpu.dot_dimension_numbers<[1], [0], [0], [1], [0, 0, 1, 1], [], []>} : vector<2x256xbf16>, vector<256x128xbf16>, vector<2x128xf32> -> vector<2x128xf32>
    %c0_74 = arith.constant 0 : index
    %c0_75 = arith.constant 0 : index
    %125 = vector.load %arg6[%c0_74, %c0_75] : memref<1x128xf32, #tpu.memory_space<vmem>>, vector<1x128xf32>
    %126 = vector.broadcast %125 : vector<1x128xf32> to vector<2x128xf32>
    %127 = arith.addf %124, %126 : vector<2x128xf32>
    %cst_76 = arith.constant dense<0.000000e+00> : vector<2xf32>
    %128 = vector.multi_reduction <add>, %127, %cst_76 [1] : vector<2x128xf32> to vector<2xf32>
    %129 = vector.shape_cast %128 : vector<2xf32> to vector<2x1xf32>
    %cst_77 = arith.constant 1.280000e+02 : f32
    %130 = vector.broadcast %cst_77 : f32 to vector<2x1xf32>
    %131 = arith.divf %129, %130 : vector<2x1xf32>
    %132 = vector.broadcast %131 : vector<2x1xf32> to vector<2x128xf32>
    %133 = arith.subf %127, %132 : vector<2x128xf32>
    %134 = arith.mulf %133, %133 : vector<2x128xf32>
    %cst_78 = arith.constant dense<0.000000e+00> : vector<2xf32>
    %135 = vector.multi_reduction <add>, %134, %cst_78 [1] : vector<2x128xf32> to vector<2xf32>
    %136 = vector.shape_cast %135 : vector<2xf32> to vector<2x1xf32>
    %cst_79 = arith.constant 1.280000e+02 : f32
    %137 = vector.broadcast %cst_79 : f32 to vector<2x1xf32>
    %138 = arith.divf %136, %137 : vector<2x1xf32>
    %139 = vector.broadcast %131 : vector<2x1xf32> to vector<2x128xf32>
    %140 = arith.subf %127, %139 : vector<2x128xf32>
    %cst_80 = arith.constant 9.99999974E-6 : f32
    %141 = vector.broadcast %cst_80 : f32 to vector<2x1xf32>
    %142 = arith.addf %138, %141 : vector<2x1xf32>
    %143 = math.rsqrt %142 : vector<2x1xf32>
    %144 = vector.broadcast %143 : vector<2x1xf32> to vector<2x128xf32>
    %145 = arith.mulf %140, %144 : vector<2x128xf32>
    %c0_81 = arith.constant 0 : index
    %c0_82 = arith.constant 0 : index
    %146 = vector.load %arg7[%c0_81, %c0_82] : memref<1x128xf32, #tpu.memory_space<vmem>>, vector<1x128xf32>
    %147 = vector.broadcast %146 : vector<1x128xf32> to vector<2x128xf32>
    %148 = arith.mulf %145, %147 : vector<2x128xf32>
    %c0_83 = arith.constant 0 : index
    %c0_84 = arith.constant 0 : index
    %149 = vector.load %arg8[%c0_83, %c0_84] : memref<1x128xf32, #tpu.memory_space<vmem>>, vector<1x128xf32>
    %150 = vector.broadcast %149 : vector<1x128xf32> to vector<2x128xf32>
    %151 = arith.addf %148, %150 : vector<2x128xf32>
    %152 = arith.truncf %151 : vector<2x128xf32> to vector<2x128xbf16>
    %cst_85 = arith.constant 5.000000e-01 : bf16
    %153 = vector.broadcast %cst_85 : bf16 to vector<2x128xbf16>
    %154 = arith.mulf %153, %152 : vector<2x128xbf16>
    %cst_86 = arith.constant 7.968750e-01 : bf16
    %155 = vector.broadcast %cst_86 : bf16 to vector<2x128xbf16>
    %156 = arith.mulf %155, %152 : vector<2x128xbf16>
    %cst_87 = arith.constant 4.467770e-02 : bf16
    %157 = vector.broadcast %cst_87 : bf16 to vector<2x128xbf16>
    %158 = arith.mulf %157, %152 : vector<2x128xbf16>
    %159 = arith.mulf %158, %152 : vector<2x128xbf16>
    %cst_88 = arith.constant 1.000000e+00 : bf16
    %160 = vector.broadcast %cst_88 : bf16 to vector<2x128xbf16>
    %161 = arith.addf %160, %159 : vector<2x128xbf16>
    %162 = arith.mulf %156, %161 : vector<2x128xbf16>
    %163 = math.tanh %162 : vector<2x128xbf16>
    %cst_89 = arith.constant 1.000000e+00 : bf16
    %164 = vector.broadcast %cst_89 : bf16 to vector<2x128xbf16>
    %165 = arith.addf %164, %163 : vector<2x128xbf16>
    %166 = arith.mulf %154, %165 : vector<2x128xbf16>
    %c0_90 = arith.constant 0 : index
    %c0_91 = arith.constant 0 : index
    %167 = vector.load %arg9[%c0_90, %c0_91] : memref<128x128xbf16, #tpu.memory_space<vmem>>, vector<128x128xbf16>
    %cst_92 = arith.constant dense<0.000000e+00> : vector<2x128xf32>
    %168 = tpu.matmul %166, %167, %cst_92 {dimension_numbers = #tpu.dot_dimension_numbers<[1], [0], [0], [1], [0, 0, 1, 1], [], []>} : vector<2x128xbf16>, vector<128x128xbf16>, vector<2x128xf32> -> vector<2x128xf32>
    %c0_93 = arith.constant 0 : index
    %c0_94 = arith.constant 0 : index
    %169 = vector.load %arg10[%c0_93, %c0_94] : memref<1x128xf32, #tpu.memory_space<vmem>>, vector<1x128xf32>
    %170 = vector.broadcast %169 : vector<1x128xf32> to vector<2x128xf32>
    %171 = arith.addf %168, %170 : vector<2x128xf32>
    %cst_95 = arith.constant 0.899999976 : f32
    %172 = vector.broadcast %cst_95 : f32 to vector<2x128xf32>
    %173 = arith.mulf %172, %66 : vector<2x128xf32>
    %cst_96 = arith.constant 1.000000e-01 : f32
    %174 = vector.broadcast %cst_96 : f32 to vector<2x128xf32>
    %175 = arith.mulf %174, %171 : vector<2x128xf32>
    %176 = arith.addf %173, %175 : vector<2x128xf32>
    %177 = math.tanh %176 : vector<2x128xf32>
    %178 = arith.truncf %177 : vector<2x128xf32> to vector<2x128xbf16>
    %c0_97 = arith.constant 0 : index
    %c0_98 = arith.constant 0 : index
    %179 = vector.load %arg11[%c0_97, %c0_98] : memref<128x128xbf16, #tpu.memory_space<vmem>>, vector<128x128xbf16>
    %cst_99 = arith.constant dense<0.000000e+00> : vector<2x128xf32>
    %180 = tpu.matmul %178, %179, %cst_99 {dimension_numbers = #tpu.dot_dimension_numbers<[1], [0], [0], [1], [0, 0, 1, 1], [], []>} : vector<2x128xbf16>, vector<128x128xbf16>, vector<2x128xf32> -> vector<2x128xf32>
    %c0_100 = arith.constant 0 : index
    %c0_101 = arith.constant 0 : index
    %181 = vector.load %arg12[%c0_100, %c0_101] : memref<1x128xf32, #tpu.memory_space<vmem>>, vector<1x128xf32>
    %182 = vector.broadcast %181 : vector<1x128xf32> to vector<2x128xf32>
    %183 = arith.addf %180, %182 : vector<2x128xf32>
    %184 = arith.truncf %183 : vector<2x128xf32> to vector<2x128xbf16>
    %cst_102 = arith.constant 5.000000e-01 : bf16
    %185 = vector.broadcast %cst_102 : bf16 to vector<2x128xbf16>
    %186 = arith.mulf %185, %184 : vector<2x128xbf16>
    %cst_103 = arith.constant 7.968750e-01 : bf16
    %187 = vector.broadcast %cst_103 : bf16 to vector<2x128xbf16>
    %188 = arith.mulf %187, %184 : vector<2x128xbf16>
    %cst_104 = arith.constant 4.467770e-02 : bf16
    %189 = vector.broadcast %cst_104 : bf16 to vector<2x128xbf16>
    %190 = arith.mulf %189, %184 : vector<2x128xbf16>
    %191 = arith.mulf %190, %184 : vector<2x128xbf16>
    %cst_105 = arith.constant 1.000000e+00 : bf16
    %192 = vector.broadcast %cst_105 : bf16 to vector<2x128xbf16>
    %193 = arith.addf %192, %191 : vector<2x128xbf16>
    %194 = arith.mulf %188, %193 : vector<2x128xbf16>
    %195 = math.tanh %194 : vector<2x128xbf16>
    %cst_106 = arith.constant 1.000000e+00 : bf16
    %196 = vector.broadcast %cst_106 : bf16 to vector<2x128xbf16>
    %197 = arith.addf %196, %195 : vector<2x128xbf16>
    %198 = arith.mulf %186, %197 : vector<2x128xbf16>
    %199 = arith.extf %198 : vector<2x128xbf16> to vector<2x128xf32>
    %c0_107 = arith.constant 0 : index
    %c0_108 = arith.constant 0 : index
    %200 = vector.load %arg13[%c0_107, %c0_108] : memref<1x128xf32, #tpu.memory_space<vmem>>, vector<1x128xf32>
    %201 = vector.broadcast %200 : vector<1x128xf32> to vector<2x128xf32>
    %202 = arith.mulf %199, %201 : vector<2x128xf32>
    %cst_109 = arith.constant dense<0.000000e+00> : vector<2xf32>
    %203 = vector.multi_reduction <add>, %202, %cst_109 [1] : vector<2x128xf32> to vector<2xf32>
    %204 = vector.shape_cast %203 : vector<2xf32> to vector<2x1xf32>
    %205 = vector.broadcast %5 : f32 to vector<2x1xf32>
    %206 = arith.addf %204, %205 : vector<2x1xf32>
    %cst_110 = arith.constant 0.000000e+00 : f32
    %207 = vector.broadcast %cst_110 : f32 to vector<2x1xf32>
    %208 = arith.maximumf %206, %207 : vector<2x1xf32>
    %209 = math.absf %206 : vector<2x1xf32>
    %cst_111 = arith.constant 0.000000e+00 : f32
    %210 = vector.broadcast %cst_111 : f32 to vector<2x1xf32>
    %211 = arith.subf %210, %209 : vector<2x1xf32>
    %212 = math.exp %211 : vector<2x1xf32>
    %cst_112 = arith.constant 1.000000e+00 : f32
    %213 = vector.broadcast %cst_112 : f32 to vector<2x1xf32>
    %214 = arith.addf %213, %212 : vector<2x1xf32>
    %215 = math.log %214 : vector<2x1xf32>
    %216 = arith.addf %208, %215 : vector<2x1xf32>
    %cst_113 = arith.constant 0.949999988 : f32
    %217 = vector.broadcast %cst_113 : f32 to vector<2x1xf32>
    %218 = arith.mulf %217, %110 : vector<2x1xf32>
    %cst_114 = arith.constant 5.000000e-02 : f32
    %219 = vector.broadcast %cst_114 : f32 to vector<2x1xf32>
    %220 = arith.mulf %219, %216 : vector<2x1xf32>
    %221 = arith.addf %218, %220 : vector<2x1xf32>
    %c0_115 = arith.constant 0 : index
    %c0_116 = arith.constant 0 : index
    %c1_117 = arith.constant 1 : index
    %222 = vector.load %arg16[%c0_115, %c0_116, %c1_117] : memref<1x2x8xf32, #tpu.memory_space<vmem>>, vector<1x2x1xf32>
    %223 = vector.shape_cast %222 : vector<1x2x1xf32> to vector<2x1xf32>
    %224 = vector.shape_cast %216 : vector<2x1xf32> to vector<1x2x1xf32>
    tpu.vector_store %arg16[%c0_115, %c0_116, %c1_117], %224 {strides = array<i32>} : memref<1x2x8xf32, #tpu.memory_space<vmem>>, vector<1x2x1xf32>,
    %c0_118 = arith.constant 0 : index
    %c0_119 = arith.constant 0 : index
    %c1_120 = arith.constant 1 : index
    %225 = vector.load %arg17[%c0_118, %c0_119, %c1_120] : memref<1x2x8xf32, #tpu.memory_space<vmem>>, vector<1x2x1xf32>
    %226 = vector.shape_cast %225 : vector<1x2x1xf32> to vector<2x1xf32>
    %227 = vector.shape_cast %221 : vector<2x1xf32> to vector<1x2x1xf32>
    tpu.vector_store %arg17[%c0_118, %c0_119, %c1_120], %227 {strides = array<i32>} : memref<1x2x8xf32, #tpu.memory_space<vmem>>, vector<1x2x1xf32>,
    %228 = arith.truncf %177 : vector<2x128xf32> to vector<2x128xbf16>
    %c0_121 = arith.constant 0 : index
    %c0_122 = arith.constant 0 : index
    %229 = vector.load %arg20[%c0_121, %c0_122] : memref<2x256xbf16, #tpu.memory_space<vmem>>, vector<2x128xbf16>
    tpu.vector_store %arg20[%c0_121, %c0_122], %228 {strides = array<i32>} : memref<2x256xbf16, #tpu.memory_space<vmem>>, vector<2x128xbf16>,
    %c2 = arith.constant 2 : index
    %c0_123 = arith.constant 0 : index
    %c0_124 = arith.constant 0 : index
    %230 = vector.load %arg2[%c2, %c0_123, %c0_124] : memref<8x2x128xbf16, #tpu.memory_space<vmem>>, vector<1x2x128xbf16>
    %231 = vector.shape_cast %230 : vector<1x2x128xbf16> to vector<2x128xbf16>
    %c0_125 = arith.constant 0 : index
    %c128_126 = arith.constant 128 : index
    %232 = vector.load %arg20[%c0_125, %c128_126] : memref<2x256xbf16, #tpu.memory_space<vmem>>, vector<2x128xbf16>
    tpu.vector_store %arg20[%c0_125, %c128_126], %231 {strides = array<i32>} : memref<2x256xbf16, #tpu.memory_space<vmem>>, vector<2x128xbf16>,
    %c0_127 = arith.constant 0 : index
    %c0_128 = arith.constant 0 : index
    %233 = vector.load %arg20[%c0_127, %c0_128] : memref<2x256xbf16, #tpu.memory_space<vmem>>, vector<2x256xbf16>
    %c0_129 = arith.constant 0 : index
    %c0_130 = arith.constant 0 : index
    %234 = vector.load %arg5[%c0_129, %c0_130] : memref<256x128xbf16, #tpu.memory_space<vmem>>, vector<256x128xbf16>
    %cst_131 = arith.constant dense<0.000000e+00> : vector<2x128xf32>
    %235 = tpu.matmul %233, %234, %cst_131 {dimension_numbers = #tpu.dot_dimension_numbers<[1], [0], [0], [1], [0, 0, 1, 1], [], []>} : vector<2x256xbf16>, vector<256x128xbf16>, vector<2x128xf32> -> vector<2x128xf32>
    %c0_132 = arith.constant 0 : index
    %c0_133 = arith.constant 0 : index
    %236 = vector.load %arg6[%c0_132, %c0_133] : memref<1x128xf32, #tpu.memory_space<vmem>>, vector<1x128xf32>
    %237 = vector.broadcast %236 : vector<1x128xf32> to vector<2x128xf32>
    %238 = arith.addf %235, %237 : vector<2x128xf32>
    %cst_134 = arith.constant dense<0.000000e+00> : vector<2xf32>
    %239 = vector.multi_reduction <add>, %238, %cst_134 [1] : vector<2x128xf32> to vector<2xf32>
    %240 = vector.shape_cast %239 : vector<2xf32> to vector<2x1xf32>
    %cst_135 = arith.constant 1.280000e+02 : f32
    %241 = vector.broadcast %cst_135 : f32 to vector<2x1xf32>
    %242 = arith.divf %240, %241 : vector<2x1xf32>
    %243 = vector.broadcast %242 : vector<2x1xf32> to vector<2x128xf32>
    %244 = arith.subf %238, %243 : vector<2x128xf32>
    %245 = arith.mulf %244, %244 : vector<2x128xf32>
    %cst_136 = arith.constant dense<0.000000e+00> : vector<2xf32>
    %246 = vector.multi_reduction <add>, %245, %cst_136 [1] : vector<2x128xf32> to vector<2xf32>
    %247 = vector.shape_cast %246 : vector<2xf32> to vector<2x1xf32>
    %cst_137 = arith.constant 1.280000e+02 : f32
    %248 = vector.broadcast %cst_137 : f32 to vector<2x1xf32>
    %249 = arith.divf %247, %248 : vector<2x1xf32>
    %250 = vector.broadcast %242 : vector<2x1xf32> to vector<2x128xf32>
    %251 = arith.subf %238, %250 : vector<2x128xf32>
    %cst_138 = arith.constant 9.99999974E-6 : f32
    %252 = vector.broadcast %cst_138 : f32 to vector<2x1xf32>
    %253 = arith.addf %249, %252 : vector<2x1xf32>
    %254 = math.rsqrt %253 : vector<2x1xf32>
    %255 = vector.broadcast %254 : vector<2x1xf32> to vector<2x128xf32>
    %256 = arith.mulf %251, %255 : vector<2x128xf32>
    %c0_139 = arith.constant 0 : index
    %c0_140 = arith.constant 0 : index
    %257 = vector.load %arg7[%c0_139, %c0_140] : memref<1x128xf32, #tpu.memory_space<vmem>>, vector<1x128xf32>
    %258 = vector.broadcast %257 : vector<1x128xf32> to vector<2x128xf32>
    %259 = arith.mulf %256, %258 : vector<2x128xf32>
    %c0_141 = arith.constant 0 : index
    %c0_142 = arith.constant 0 : index
    %260 = vector.load %arg8[%c0_141, %c0_142] : memref<1x128xf32, #tpu.memory_space<vmem>>, vector<1x128xf32>
    %261 = vector.broadcast %260 : vector<1x128xf32> to vector<2x128xf32>
    %262 = arith.addf %259, %261 : vector<2x128xf32>
    %263 = arith.truncf %262 : vector<2x128xf32> to vector<2x128xbf16>
    %cst_143 = arith.constant 5.000000e-01 : bf16
    %264 = vector.broadcast %cst_143 : bf16 to vector<2x128xbf16>
    %265 = arith.mulf %264, %263 : vector<2x128xbf16>
    %cst_144 = arith.constant 7.968750e-01 : bf16
    %266 = vector.broadcast %cst_144 : bf16 to vector<2x128xbf16>
    %267 = arith.mulf %266, %263 : vector<2x128xbf16>
    %cst_145 = arith.constant 4.467770e-02 : bf16
    %268 = vector.broadcast %cst_145 : bf16 to vector<2x128xbf16>
    %269 = arith.mulf %268, %263 : vector<2x128xbf16>
    %270 = arith.mulf %269, %263 : vector<2x128xbf16>
    %cst_146 = arith.constant 1.000000e+00 : bf16
    %271 = vector.broadcast %cst_146 : bf16 to vector<2x128xbf16>
    %272 = arith.addf %271, %270 : vector<2x128xbf16>
    %273 = arith.mulf %267, %272 : vector<2x128xbf16>
    %274 = math.tanh %273 : vector<2x128xbf16>
    %cst_147 = arith.constant 1.000000e+00 : bf16
    %275 = vector.broadcast %cst_147 : bf16 to vector<2x128xbf16>
    %276 = arith.addf %275, %274 : vector<2x128xbf16>
    %277 = arith.mulf %265, %276 : vector<2x128xbf16>
    %c0_148 = arith.constant 0 : index
    %c0_149 = arith.constant 0 : index
    %278 = vector.load %arg9[%c0_148, %c0_149] : memref<128x128xbf16, #tpu.memory_space<vmem>>, vector<128x128xbf16>
    %cst_150 = arith.constant dense<0.000000e+00> : vector<2x128xf32>
    %279 = tpu.matmul %277, %278, %cst_150 {dimension_numbers = #tpu.dot_dimension_numbers<[1], [0], [0], [1], [0, 0, 1, 1], [], []>} : vector<2x128xbf16>, vector<128x128xbf16>, vector<2x128xf32> -> vector<2x128xf32>
    %c0_151 = arith.constant 0 : index
    %c0_152 = arith.constant 0 : index
    %280 = vector.load %arg10[%c0_151, %c0_152] : memref<1x128xf32, #tpu.memory_space<vmem>>, vector<1x128xf32>
    %281 = vector.broadcast %280 : vector<1x128xf32> to vector<2x128xf32>
    %282 = arith.addf %279, %281 : vector<2x128xf32>
    %cst_153 = arith.constant 0.899999976 : f32
    %283 = vector.broadcast %cst_153 : f32 to vector<2x128xf32>
    %284 = arith.mulf %283, %177 : vector<2x128xf32>
    %cst_154 = arith.constant 1.000000e-01 : f32
    %285 = vector.broadcast %cst_154 : f32 to vector<2x128xf32>
    %286 = arith.mulf %285, %282 : vector<2x128xf32>
    %287 = arith.addf %284, %286 : vector<2x128xf32>
    %288 = math.tanh %287 : vector<2x128xf32>
    %289 = arith.truncf %288 : vector<2x128xf32> to vector<2x128xbf16>
    %c0_155 = arith.constant 0 : index
    %c0_156 = arith.constant 0 : index
    %290 = vector.load %arg11[%c0_155, %c0_156] : memref<128x128xbf16, #tpu.memory_space<vmem>>, vector<128x128xbf16>
    %cst_157 = arith.constant dense<0.000000e+00> : vector<2x128xf32>
    %291 = tpu.matmul %289, %290, %cst_157 {dimension_numbers = #tpu.dot_dimension_numbers<[1], [0], [0], [1], [0, 0, 1, 1], [], []>} : vector<2x128xbf16>, vector<128x128xbf16>, vector<2x128xf32> -> vector<2x128xf32>
    %c0_158 = arith.constant 0 : index
    %c0_159 = arith.constant 0 : index
    %292 = vector.load %arg12[%c0_158, %c0_159] : memref<1x128xf32, #tpu.memory_space<vmem>>, vector<1x128xf32>
    %293 = vector.broadcast %292 : vector<1x128xf32> to vector<2x128xf32>
    %294 = arith.addf %291, %293 : vector<2x128xf32>
    %295 = arith.truncf %294 : vector<2x128xf32> to vector<2x128xbf16>
    %cst_160 = arith.constant 5.000000e-01 : bf16
    %296 = vector.broadcast %cst_160 : bf16 to vector<2x128xbf16>
    %297 = arith.mulf %296, %295 : vector<2x128xbf16>
    %cst_161 = arith.constant 7.968750e-01 : bf16
    %298 = vector.broadcast %cst_161 : bf16 to vector<2x128xbf16>
    %299 = arith.mulf %298, %295 : vector<2x128xbf16>
    %cst_162 = arith.constant 4.467770e-02 : bf16
    %300 = vector.broadcast %cst_162 : bf16 to vector<2x128xbf16>
    %301 = arith.mulf %300, %295 : vector<2x128xbf16>
    %302 = arith.mulf %301, %295 : vector<2x128xbf16>
    %cst_163 = arith.constant 1.000000e+00 : bf16
    %303 = vector.broadcast %cst_163 : bf16 to vector<2x128xbf16>
    %304 = arith.addf %303, %302 : vector<2x128xbf16>
    %305 = arith.mulf %299, %304 : vector<2x128xbf16>
    %306 = math.tanh %305 : vector<2x128xbf16>
    %cst_164 = arith.constant 1.000000e+00 : bf16
    %307 = vector.broadcast %cst_164 : bf16 to vector<2x128xbf16>
    %308 = arith.addf %307, %306 : vector<2x128xbf16>
    %309 = arith.mulf %297, %308 : vector<2x128xbf16>
    %310 = arith.extf %309 : vector<2x128xbf16> to vector<2x128xf32>
    %c0_165 = arith.constant 0 : index
    %c0_166 = arith.constant 0 : index
    %311 = vector.load %arg13[%c0_165, %c0_166] : memref<1x128xf32, #tpu.memory_space<vmem>>, vector<1x128xf32>
    %312 = vector.broadcast %311 : vector<1x128xf32> to vector<2x128xf32>
    %313 = arith.mulf %310, %312 : vector<2x128xf32>
    %cst_167 = arith.constant dense<0.000000e+00> : vector<2xf32>
    %314 = vector.multi_reduction <add>, %313, %cst_167 [1] : vector<2x128xf32> to vector<2xf32>
    %315 = vector.shape_cast %314 : vector<2xf32> to vector<2x1xf32>
    %316 = vector.broadcast %5 : f32 to vector<2x1xf32>
    %317 = arith.addf %315, %316 : vector<2x1xf32>
    %cst_168 = arith.constant 0.000000e+00 : f32
    %318 = vector.broadcast %cst_168 : f32 to vector<2x1xf32>
    %319 = arith.maximumf %317, %318 : vector<2x1xf32>
    %320 = math.absf %317 : vector<2x1xf32>
    %cst_169 = arith.constant 0.000000e+00 : f32
    %321 = vector.broadcast %cst_169 : f32 to vector<2x1xf32>
    %322 = arith.subf %321, %320 : vector<2x1xf32>
    %323 = math.exp %322 : vector<2x1xf32>
    %cst_170 = arith.constant 1.000000e+00 : f32
    %324 = vector.broadcast %cst_170 : f32 to vector<2x1xf32>
    %325 = arith.addf %324, %323 : vector<2x1xf32>
    %326 = math.log %325 : vector<2x1xf32>
    %327 = arith.addf %319, %326 : vector<2x1xf32>
    %cst_171 = arith.constant 0.949999988 : f32
    %328 = vector.broadcast %cst_171 : f32 to vector<2x1xf32>
    %329 = arith.mulf %328, %221 : vector<2x1xf32>
    %cst_172 = arith.constant 5.000000e-02 : f32
    %330 = vector.broadcast %cst_172 : f32 to vector<2x1xf32>
    %331 = arith.mulf %330, %327 : vector<2x1xf32>
    %332 = arith.addf %329, %331 : vector<2x1xf32>
    %c0_173 = arith.constant 0 : index
    %c0_174 = arith.constant 0 : index
    %c2_175 = arith.constant 2 : index
    %333 = vector.load %arg16[%c0_173, %c0_174, %c2_175] : memref<1x2x8xf32, #tpu.memory_space<vmem>>, vector<1x2x1xf32>
    %334 = vector.shape_cast %333 : vector<1x2x1xf32> to vector<2x1xf32>
    %335 = vector.shape_cast %327 : vector<2x1xf32> to vector<1x2x1xf32>
    tpu.vector_store %arg16[%c0_173, %c0_174, %c2_175], %335 {strides = array<i32>} : memref<1x2x8xf32, #tpu.memory_space<vmem>>, vector<1x2x1xf32>,
    %c0_176 = arith.constant 0 : index
    %c0_177 = arith.constant 0 : index
    %c2_178 = arith.constant 2 : index
    %336 = vector.load %arg17[%c0_176, %c0_177, %c2_178] : memref<1x2x8xf32, #tpu.memory_space<vmem>>, vector<1x2x1xf32>
    %337 = vector.shape_cast %336 : vector<1x2x1xf32> to vector<2x1xf32>
    %338 = vector.shape_cast %332 : vector<2x1xf32> to vector<1x2x1xf32>
    tpu.vector_store %arg17[%c0_176, %c0_177, %c2_178], %338 {strides = array<i32>} : memref<1x2x8xf32, #tpu.memory_space<vmem>>, vector<1x2x1xf32>,
    %339 = arith.truncf %288 : vector<2x128xf32> to vector<2x128xbf16>
    %c0_179 = arith.constant 0 : index
    %c0_180 = arith.constant 0 : index
    %340 = vector.load %arg20[%c0_179, %c0_180] : memref<2x256xbf16, #tpu.memory_space<vmem>>, vector<2x128xbf16>
    tpu.vector_store %arg20[%c0_179, %c0_180], %339 {strides = array<i32>} : memref<2x256xbf16, #tpu.memory_space<vmem>>, vector<2x128xbf16>,
    %c3 = arith.constant 3 : index
    %c0_181 = arith.constant 0 : index
    %c0_182 = arith.constant 0 : index
    %341 = vector.load %arg2[%c3, %c0_181, %c0_182] : memref<8x2x128xbf16, #tpu.memory_space<vmem>>, vector<1x2x128xbf16>
    %342 = vector.shape_cast %341 : vector<1x2x128xbf16> to vector<2x128xbf16>
    %c0_183 = arith.constant 0 : index
    %c128_184 = arith.constant 128 : index
    %343 = vector.load %arg20[%c0_183, %c128_184] : memref<2x256xbf16, #tpu.memory_space<vmem>>, vector<2x128xbf16>
    tpu.vector_store %arg20[%c0_183, %c128_184], %342 {strides = array<i32>} : memref<2x256xbf16, #tpu.memory_space<vmem>>, vector<2x128xbf16>,
    %c0_185 = arith.constant 0 : index
    %c0_186 = arith.constant 0 : index
    %344 = vector.load %arg20[%c0_185, %c0_186] : memref<2x256xbf16, #tpu.memory_space<vmem>>, vector<2x256xbf16>
    %c0_187 = arith.constant 0 : index
    %c0_188 = arith.constant 0 : index
    %345 = vector.load %arg5[%c0_187, %c0_188] : memref<256x128xbf16, #tpu.memory_space<vmem>>, vector<256x128xbf16>
    %cst_189 = arith.constant dense<0.000000e+00> : vector<2x128xf32>
    %346 = tpu.matmul %344, %345, %cst_189 {dimension_numbers = #tpu.dot_dimension_numbers<[1], [0], [0], [1], [0, 0, 1, 1], [], []>} : vector<2x256xbf16>, vector<256x128xbf16>, vector<2x128xf32> -> vector<2x128xf32>
    %c0_190 = arith.constant 0 : index
    %c0_191 = arith.constant 0 : index
    %347 = vector.load %arg6[%c0_190, %c0_191] : memref<1x128xf32, #tpu.memory_space<vmem>>, vector<1x128xf32>
    %348 = vector.broadcast %347 : vector<1x128xf32> to vector<2x128xf32>
    %349 = arith.addf %346, %348 : vector<2x128xf32>
    %cst_192 = arith.constant dense<0.000000e+00> : vector<2xf32>
    %350 = vector.multi_reduction <add>, %349, %cst_192 [1] : vector<2x128xf32> to vector<2xf32>
    %351 = vector.shape_cast %350 : vector<2xf32> to vector<2x1xf32>
    %cst_193 = arith.constant 1.280000e+02 : f32
    %352 = vector.broadcast %cst_193 : f32 to vector<2x1xf32>
    %353 = arith.divf %351, %352 : vector<2x1xf32>
    %354 = vector.broadcast %353 : vector<2x1xf32> to vector<2x128xf32>
    %355 = arith.subf %349, %354 : vector<2x128xf32>
    %356 = arith.mulf %355, %355 : vector<2x128xf32>
    %cst_194 = arith.constant dense<0.000000e+00> : vector<2xf32>
    %357 = vector.multi_reduction <add>, %356, %cst_194 [1] : vector<2x128xf32> to vector<2xf32>
    %358 = vector.shape_cast %357 : vector<2xf32> to vector<2x1xf32>
    %cst_195 = arith.constant 1.280000e+02 : f32
    %359 = vector.broadcast %cst_195 : f32 to vector<2x1xf32>
    %360 = arith.divf %358, %359 : vector<2x1xf32>
    %361 = vector.broadcast %353 : vector<2x1xf32> to vector<2x128xf32>
    %362 = arith.subf %349, %361 : vector<2x128xf32>
    %cst_196 = arith.constant 9.99999974E-6 : f32
    %363 = vector.broadcast %cst_196 : f32 to vector<2x1xf32>
    %364 = arith.addf %360, %363 : vector<2x1xf32>
    %365 = math.rsqrt %364 : vector<2x1xf32>
    %366 = vector.broadcast %365 : vector<2x1xf32> to vector<2x128xf32>
    %367 = arith.mulf %362, %366 : vector<2x128xf32>
    %c0_197 = arith.constant 0 : index
    %c0_198 = arith.constant 0 : index
    %368 = vector.load %arg7[%c0_197, %c0_198] : memref<1x128xf32, #tpu.memory_space<vmem>>, vector<1x128xf32>
    %369 = vector.broadcast %368 : vector<1x128xf32> to vector<2x128xf32>
    %370 = arith.mulf %367, %369 : vector<2x128xf32>
    %c0_199 = arith.constant 0 : index
    %c0_200 = arith.constant 0 : index
    %371 = vector.load %arg8[%c0_199, %c0_200] : memref<1x128xf32, #tpu.memory_space<vmem>>, vector<1x128xf32>
    %372 = vector.broadcast %371 : vector<1x128xf32> to vector<2x128xf32>
    %373 = arith.addf %370, %372 : vector<2x128xf32>
    %374 = arith.truncf %373 : vector<2x128xf32> to vector<2x128xbf16>
    %cst_201 = arith.constant 5.000000e-01 : bf16
    %375 = vector.broadcast %cst_201 : bf16 to vector<2x128xbf16>
    %376 = arith.mulf %375, %374 : vector<2x128xbf16>
    %cst_202 = arith.constant 7.968750e-01 : bf16
    %377 = vector.broadcast %cst_202 : bf16 to vector<2x128xbf16>
    %378 = arith.mulf %377, %374 : vector<2x128xbf16>
    %cst_203 = arith.constant 4.467770e-02 : bf16
    %379 = vector.broadcast %cst_203 : bf16 to vector<2x128xbf16>
    %380 = arith.mulf %379, %374 : vector<2x128xbf16>
    %381 = arith.mulf %380, %374 : vector<2x128xbf16>
    %cst_204 = arith.constant 1.000000e+00 : bf16
    %382 = vector.broadcast %cst_204 : bf16 to vector<2x128xbf16>
    %383 = arith.addf %382, %381 : vector<2x128xbf16>
    %384 = arith.mulf %378, %383 : vector<2x128xbf16>
    %385 = math.tanh %384 : vector<2x128xbf16>
    %cst_205 = arith.constant 1.000000e+00 : bf16
    %386 = vector.broadcast %cst_205 : bf16 to vector<2x128xbf16>
    %387 = arith.addf %386, %385 : vector<2x128xbf16>
    %388 = arith.mulf %376, %387 : vector<2x128xbf16>
    %c0_206 = arith.constant 0 : index
    %c0_207 = arith.constant 0 : index
    %389 = vector.load %arg9[%c0_206, %c0_207] : memref<128x128xbf16, #tpu.memory_space<vmem>>, vector<128x128xbf16>
    %cst_208 = arith.constant dense<0.000000e+00> : vector<2x128xf32>
    %390 = tpu.matmul %388, %389, %cst_208 {dimension_numbers = #tpu.dot_dimension_numbers<[1], [0], [0], [1], [0, 0, 1, 1], [], []>} : vector<2x128xbf16>, vector<128x128xbf16>, vector<2x128xf32> -> vector<2x128xf32>
    %c0_209 = arith.constant 0 : index
    %c0_210 = arith.constant 0 : index
    %391 = vector.load %arg10[%c0_209, %c0_210] : memref<1x128xf32, #tpu.memory_space<vmem>>, vector<1x128xf32>
    %392 = vector.broadcast %391 : vector<1x128xf32> to vector<2x128xf32>
    %393 = arith.addf %390, %392 : vector<2x128xf32>
    %cst_211 = arith.constant 0.899999976 : f32
    %394 = vector.broadcast %cst_211 : f32 to vector<2x128xf32>
    %395 = arith.mulf %394, %288 : vector<2x128xf32>
    %cst_212 = arith.constant 1.000000e-01 : f32
    %396 = vector.broadcast %cst_212 : f32 to vector<2x128xf32>
    %397 = arith.mulf %396, %393 : vector<2x128xf32>
    %398 = arith.addf %395, %397 : vector<2x128xf32>
    %399 = math.tanh %398 : vector<2x128xf32>
    %400 = arith.truncf %399 : vector<2x128xf32> to vector<2x128xbf16>
    %c0_213 = arith.constant 0 : index
    %c0_214 = arith.constant 0 : index
    %401 = vector.load %arg11[%c0_213, %c0_214] : memref<128x128xbf16, #tpu.memory_space<vmem>>, vector<128x128xbf16>
    %cst_215 = arith.constant dense<0.000000e+00> : vector<2x128xf32>
    %402 = tpu.matmul %400, %401, %cst_215 {dimension_numbers = #tpu.dot_dimension_numbers<[1], [0], [0], [1], [0, 0, 1, 1], [], []>} : vector<2x128xbf16>, vector<128x128xbf16>, vector<2x128xf32> -> vector<2x128xf32>
    %c0_216 = arith.constant 0 : index
    %c0_217 = arith.constant 0 : index
    %403 = vector.load %arg12[%c0_216, %c0_217] : memref<1x128xf32, #tpu.memory_space<vmem>>, vector<1x128xf32>
    %404 = vector.broadcast %403 : vector<1x128xf32> to vector<2x128xf32>
    %405 = arith.addf %402, %404 : vector<2x128xf32>
    %406 = arith.truncf %405 : vector<2x128xf32> to vector<2x128xbf16>
    %cst_218 = arith.constant 5.000000e-01 : bf16
    %407 = vector.broadcast %cst_218 : bf16 to vector<2x128xbf16>
    %408 = arith.mulf %407, %406 : vector<2x128xbf16>
    %cst_219 = arith.constant 7.968750e-01 : bf16
    %409 = vector.broadcast %cst_219 : bf16 to vector<2x128xbf16>
    %410 = arith.mulf %409, %406 : vector<2x128xbf16>
    %cst_220 = arith.constant 4.467770e-02 : bf16
    %411 = vector.broadcast %cst_220 : bf16 to vector<2x128xbf16>
    %412 = arith.mulf %411, %406 : vector<2x128xbf16>
    %413 = arith.mulf %412, %406 : vector<2x128xbf16>
    %cst_221 = arith.constant 1.000000e+00 : bf16
    %414 = vector.broadcast %cst_221 : bf16 to vector<2x128xbf16>
    %415 = arith.addf %414, %413 : vector<2x128xbf16>
    %416 = arith.mulf %410, %415 : vector<2x128xbf16>
    %417 = math.tanh %416 : vector<2x128xbf16>
    %cst_222 = arith.constant 1.000000e+00 : bf16
    %418 = vector.broadcast %cst_222 : bf16 to vector<2x128xbf16>
    %419 = arith.addf %418, %417 : vector<2x128xbf16>
    %420 = arith.mulf %408, %419 : vector<2x128xbf16>
    %421 = arith.extf %420 : vector<2x128xbf16> to vector<2x128xf32>
    %c0_223 = arith.constant 0 : index
    %c0_224 = arith.constant 0 : index
    %422 = vector.load %arg13[%c0_223, %c0_224] : memref<1x128xf32, #tpu.memory_space<vmem>>, vector<1x128xf32>
    %423 = vector.broadcast %422 : vector<1x128xf32> to vector<2x128xf32>
    %424 = arith.mulf %421, %423 : vector<2x128xf32>
    %cst_225 = arith.constant dense<0.000000e+00> : vector<2xf32>
    %425 = vector.multi_reduction <add>, %424, %cst_225 [1] : vector<2x128xf32> to vector<2xf32>
    %426 = vector.shape_cast %425 : vector<2xf32> to vector<2x1xf32>
    %427 = vector.broadcast %5 : f32 to vector<2x1xf32>
    %428 = arith.addf %426, %427 : vector<2x1xf32>
    %cst_226 = arith.constant 0.000000e+00 : f32
    %429 = vector.broadcast %cst_226 : f32 to vector<2x1xf32>
    %430 = arith.maximumf %428, %429 : vector<2x1xf32>
    %431 = math.absf %428 : vector<2x1xf32>
    %cst_227 = arith.constant 0.000000e+00 : f32
    %432 = vector.broadcast %cst_227 : f32 to vector<2x1xf32>
    %433 = arith.subf %432, %431 : vector<2x1xf32>
    %434 = math.exp %433 : vector<2x1xf32>
    %cst_228 = arith.constant 1.000000e+00 : f32
    %435 = vector.broadcast %cst_228 : f32 to vector<2x1xf32>
    %436 = arith.addf %435, %434 : vector<2x1xf32>
    %437 = math.log %436 : vector<2x1xf32>
    %438 = arith.addf %430, %437 : vector<2x1xf32>
    %cst_229 = arith.constant 0.949999988 : f32
    %439 = vector.broadcast %cst_229 : f32 to vector<2x1xf32>
    %440 = arith.mulf %439, %332 : vector<2x1xf32>
    %cst_230 = arith.constant 5.000000e-02 : f32
    %441 = vector.broadcast %cst_230 : f32 to vector<2x1xf32>
    %442 = arith.mulf %441, %438 : vector<2x1xf32>
    %443 = arith.addf %440, %442 : vector<2x1xf32>
    %c0_231 = arith.constant 0 : index
    %c0_232 = arith.constant 0 : index
    %c3_233 = arith.constant 3 : index
    %444 = vector.load %arg16[%c0_231, %c0_232, %c3_233] : memref<1x2x8xf32, #tpu.memory_space<vmem>>, vector<1x2x1xf32>
    %445 = vector.shape_cast %444 : vector<1x2x1xf32> to vector<2x1xf32>
    %446 = vector.shape_cast %438 : vector<2x1xf32> to vector<1x2x1xf32>
    tpu.vector_store %arg16[%c0_231, %c0_232, %c3_233], %446 {strides = array<i32>} : memref<1x2x8xf32, #tpu.memory_space<vmem>>, vector<1x2x1xf32>,
    %c0_234 = arith.constant 0 : index
    %c0_235 = arith.constant 0 : index
    %c3_236 = arith.constant 3 : index
    %447 = vector.load %arg17[%c0_234, %c0_235, %c3_236] : memref<1x2x8xf32, #tpu.memory_space<vmem>>, vector<1x2x1xf32>
    %448 = vector.shape_cast %447 : vector<1x2x1xf32> to vector<2x1xf32>
    %449 = vector.shape_cast %443 : vector<2x1xf32> to vector<1x2x1xf32>
    tpu.vector_store %arg17[%c0_234, %c0_235, %c3_236], %449 {strides = array<i32>} : memref<1x2x8xf32, #tpu.memory_space<vmem>>, vector<1x2x1xf32>,
    %450 = arith.truncf %399 : vector<2x128xf32> to vector<2x128xbf16>
    %c0_237 = arith.constant 0 : index
    %c0_238 = arith.constant 0 : index
    %451 = vector.load %arg20[%c0_237, %c0_238] : memref<2x256xbf16, #tpu.memory_space<vmem>>, vector<2x128xbf16>
    tpu.vector_store %arg20[%c0_237, %c0_238], %450 {strides = array<i32>} : memref<2x256xbf16, #tpu.memory_space<vmem>>, vector<2x128xbf16>,
    %c4 = arith.constant 4 : index
    %c0_239 = arith.constant 0 : index
    %c0_240 = arith.constant 0 : index
    %452 = vector.load %arg2[%c4, %c0_239, %c0_240] : memref<8x2x128xbf16, #tpu.memory_space<vmem>>, vector<1x2x128xbf16>
    %453 = vector.shape_cast %452 : vector<1x2x128xbf16> to vector<2x128xbf16>
    %c0_241 = arith.constant 0 : index
    %c128_242 = arith.constant 128 : index
    %454 = vector.load %arg20[%c0_241, %c128_242] : memref<2x256xbf16, #tpu.memory_space<vmem>>, vector<2x128xbf16>
    tpu.vector_store %arg20[%c0_241, %c128_242], %453 {strides = array<i32>} : memref<2x256xbf16, #tpu.memory_space<vmem>>, vector<2x128xbf16>,
    %c0_243 = arith.constant 0 : index
    %c0_244 = arith.constant 0 : index
    %455 = vector.load %arg20[%c0_243, %c0_244] : memref<2x256xbf16, #tpu.memory_space<vmem>>, vector<2x256xbf16>
    %c0_245 = arith.constant 0 : index
    %c0_246 = arith.constant 0 : index
    %456 = vector.load %arg5[%c0_245, %c0_246] : memref<256x128xbf16, #tpu.memory_space<vmem>>, vector<256x128xbf16>
    %cst_247 = arith.constant dense<0.000000e+00> : vector<2x128xf32>
    %457 = tpu.matmul %455, %456, %cst_247 {dimension_numbers = #tpu.dot_dimension_numbers<[1], [0], [0], [1], [0, 0, 1, 1], [], []>} : vector<2x256xbf16>, vector<256x128xbf16>, vector<2x128xf32> -> vector<2x128xf32>
    %c0_248 = arith.constant 0 : index
    %c0_249 = arith.constant 0 : index
    %458 = vector.load %arg6[%c0_248, %c0_249] : memref<1x128xf32, #tpu.memory_space<vmem>>, vector<1x128xf32>
    %459 = vector.broadcast %458 : vector<1x128xf32> to vector<2x128xf32>
    %460 = arith.addf %457, %459 : vector<2x128xf32>
    %cst_250 = arith.constant dense<0.000000e+00> : vector<2xf32>
    %461 = vector.multi_reduction <add>, %460, %cst_250 [1] : vector<2x128xf32> to vector<2xf32>
    %462 = vector.shape_cast %461 : vector<2xf32> to vector<2x1xf32>
    %cst_251 = arith.constant 1.280000e+02 : f32
    %463 = vector.broadcast %cst_251 : f32 to vector<2x1xf32>
    %464 = arith.divf %462, %463 : vector<2x1xf32>
    %465 = vector.broadcast %464 : vector<2x1xf32> to vector<2x128xf32>
    %466 = arith.subf %460, %465 : vector<2x128xf32>
    %467 = arith.mulf %466, %466 : vector<2x128xf32>
    %cst_252 = arith.constant dense<0.000000e+00> : vector<2xf32>
    %468 = vector.multi_reduction <add>, %467, %cst_252 [1] : vector<2x128xf32> to vector<2xf32>
    %469 = vector.shape_cast %468 : vector<2xf32> to vector<2x1xf32>
    %cst_253 = arith.constant 1.280000e+02 : f32
    %470 = vector.broadcast %cst_253 : f32 to vector<2x1xf32>
    %471 = arith.divf %469, %470 : vector<2x1xf32>
    %472 = vector.broadcast %464 : vector<2x1xf32> to vector<2x128xf32>
    %473 = arith.subf %460, %472 : vector<2x128xf32>
    %cst_254 = arith.constant 9.99999974E-6 : f32
    %474 = vector.broadcast %cst_254 : f32 to vector<2x1xf32>
    %475 = arith.addf %471, %474 : vector<2x1xf32>
    %476 = math.rsqrt %475 : vector<2x1xf32>
    %477 = vector.broadcast %476 : vector<2x1xf32> to vector<2x128xf32>
    %478 = arith.mulf %473, %477 : vector<2x128xf32>
    %c0_255 = arith.constant 0 : index
    %c0_256 = arith.constant 0 : index
    %479 = vector.load %arg7[%c0_255, %c0_256] : memref<1x128xf32, #tpu.memory_space<vmem>>, vector<1x128xf32>
    %480 = vector.broadcast %479 : vector<1x128xf32> to vector<2x128xf32>
    %481 = arith.mulf %478, %480 : vector<2x128xf32>
    %c0_257 = arith.constant 0 : index
    %c0_258 = arith.constant 0 : index
    %482 = vector.load %arg8[%c0_257, %c0_258] : memref<1x128xf32, #tpu.memory_space<vmem>>, vector<1x128xf32>
    %483 = vector.broadcast %482 : vector<1x128xf32> to vector<2x128xf32>
    %484 = arith.addf %481, %483 : vector<2x128xf32>
    %485 = arith.truncf %484 : vector<2x128xf32> to vector<2x128xbf16>
    %cst_259 = arith.constant 5.000000e-01 : bf16
    %486 = vector.broadcast %cst_259 : bf16 to vector<2x128xbf16>
    %487 = arith.mulf %486, %485 : vector<2x128xbf16>
    %cst_260 = arith.constant 7.968750e-01 : bf16
    %488 = vector.broadcast %cst_260 : bf16 to vector<2x128xbf16>
    %489 = arith.mulf %488, %485 : vector<2x128xbf16>
    %cst_261 = arith.constant 4.467770e-02 : bf16
    %490 = vector.broadcast %cst_261 : bf16 to vector<2x128xbf16>
    %491 = arith.mulf %490, %485 : vector<2x128xbf16>
    %492 = arith.mulf %491, %485 : vector<2x128xbf16>
    %cst_262 = arith.constant 1.000000e+00 : bf16
    %493 = vector.broadcast %cst_262 : bf16 to vector<2x128xbf16>
    %494 = arith.addf %493, %492 : vector<2x128xbf16>
    %495 = arith.mulf %489, %494 : vector<2x128xbf16>
    %496 = math.tanh %495 : vector<2x128xbf16>
    %cst_263 = arith.constant 1.000000e+00 : bf16
    %497 = vector.broadcast %cst_263 : bf16 to vector<2x128xbf16>
    %498 = arith.addf %497, %496 : vector<2x128xbf16>
    %499 = arith.mulf %487, %498 : vector<2x128xbf16>
    %c0_264 = arith.constant 0 : index
    %c0_265 = arith.constant 0 : index
    %500 = vector.load %arg9[%c0_264, %c0_265] : memref<128x128xbf16, #tpu.memory_space<vmem>>, vector<128x128xbf16>
    %cst_266 = arith.constant dense<0.000000e+00> : vector<2x128xf32>
    %501 = tpu.matmul %499, %500, %cst_266 {dimension_numbers = #tpu.dot_dimension_numbers<[1], [0], [0], [1], [0, 0, 1, 1], [], []>} : vector<2x128xbf16>, vector<128x128xbf16>, vector<2x128xf32> -> vector<2x128xf32>
    %c0_267 = arith.constant 0 : index
    %c0_268 = arith.constant 0 : index
    %502 = vector.load %arg10[%c0_267, %c0_268] : memref<1x128xf32, #tpu.memory_space<vmem>>, vector<1x128xf32>
    %503 = vector.broadcast %502 : vector<1x128xf32> to vector<2x128xf32>
    %504 = arith.addf %501, %503 : vector<2x128xf32>
    %cst_269 = arith.constant 0.899999976 : f32
    %505 = vector.broadcast %cst_269 : f32 to vector<2x128xf32>
    %506 = arith.mulf %505, %399 : vector<2x128xf32>
    %cst_270 = arith.constant 1.000000e-01 : f32
    %507 = vector.broadcast %cst_270 : f32 to vector<2x128xf32>
    %508 = arith.mulf %507, %504 : vector<2x128xf32>
    %509 = arith.addf %506, %508 : vector<2x128xf32>
    %510 = math.tanh %509 : vector<2x128xf32>
    %511 = arith.truncf %510 : vector<2x128xf32> to vector<2x128xbf16>
    %c0_271 = arith.constant 0 : index
    %c0_272 = arith.constant 0 : index
    %512 = vector.load %arg11[%c0_271, %c0_272] : memref<128x128xbf16, #tpu.memory_space<vmem>>, vector<128x128xbf16>
    %cst_273 = arith.constant dense<0.000000e+00> : vector<2x128xf32>
    %513 = tpu.matmul %511, %512, %cst_273 {dimension_numbers = #tpu.dot_dimension_numbers<[1], [0], [0], [1], [0, 0, 1, 1], [], []>} : vector<2x128xbf16>, vector<128x128xbf16>, vector<2x128xf32> -> vector<2x128xf32>
    %c0_274 = arith.constant 0 : index
    %c0_275 = arith.constant 0 : index
    %514 = vector.load %arg12[%c0_274, %c0_275] : memref<1x128xf32, #tpu.memory_space<vmem>>, vector<1x128xf32>
    %515 = vector.broadcast %514 : vector<1x128xf32> to vector<2x128xf32>
    %516 = arith.addf %513, %515 : vector<2x128xf32>
    %517 = arith.truncf %516 : vector<2x128xf32> to vector<2x128xbf16>
    %cst_276 = arith.constant 5.000000e-01 : bf16
    %518 = vector.broadcast %cst_276 : bf16 to vector<2x128xbf16>
    %519 = arith.mulf %518, %517 : vector<2x128xbf16>
    %cst_277 = arith.constant 7.968750e-01 : bf16
    %520 = vector.broadcast %cst_277 : bf16 to vector<2x128xbf16>
    %521 = arith.mulf %520, %517 : vector<2x128xbf16>
    %cst_278 = arith.constant 4.467770e-02 : bf16
    %522 = vector.broadcast %cst_278 : bf16 to vector<2x128xbf16>
    %523 = arith.mulf %522, %517 : vector<2x128xbf16>
    %524 = arith.mulf %523, %517 : vector<2x128xbf16>
    %cst_279 = arith.constant 1.000000e+00 : bf16
    %525 = vector.broadcast %cst_279 : bf16 to vector<2x128xbf16>
    %526 = arith.addf %525, %524 : vector<2x128xbf16>
    %527 = arith.mulf %521, %526 : vector<2x128xbf16>
    %528 = math.tanh %527 : vector<2x128xbf16>
    %cst_280 = arith.constant 1.000000e+00 : bf16
    %529 = vector.broadcast %cst_280 : bf16 to vector<2x128xbf16>
    %530 = arith.addf %529, %528 : vector<2x128xbf16>
    %531 = arith.mulf %519, %530 : vector<2x128xbf16>
    %532 = arith.extf %531 : vector<2x128xbf16> to vector<2x128xf32>
    %c0_281 = arith.constant 0 : index
    %c0_282 = arith.constant 0 : index
    %533 = vector.load %arg13[%c0_281, %c0_282] : memref<1x128xf32, #tpu.memory_space<vmem>>, vector<1x128xf32>
    %534 = vector.broadcast %533 : vector<1x128xf32> to vector<2x128xf32>
    %535 = arith.mulf %532, %534 : vector<2x128xf32>
    %cst_283 = arith.constant dense<0.000000e+00> : vector<2xf32>
    %536 = vector.multi_reduction <add>, %535, %cst_283 [1] : vector<2x128xf32> to vector<2xf32>
    %537 = vector.shape_cast %536 : vector<2xf32> to vector<2x1xf32>
    %538 = vector.broadcast %5 : f32 to vector<2x1xf32>
    %539 = arith.addf %537, %538 : vector<2x1xf32>
    %cst_284 = arith.constant 0.000000e+00 : f32
    %540 = vector.broadcast %cst_284 : f32 to vector<2x1xf32>
    %541 = arith.maximumf %539, %540 : vector<2x1xf32>
    %542 = math.absf %539 : vector<2x1xf32>
    %cst_285 = arith.constant 0.000000e+00 : f32
    %543 = vector.broadcast %cst_285 : f32 to vector<2x1xf32>
    %544 = arith.subf %543, %542 : vector<2x1xf32>
    %545 = math.exp %544 : vector<2x1xf32>
    %cst_286 = arith.constant 1.000000e+00 : f32
    %546 = vector.broadcast %cst_286 : f32 to vector<2x1xf32>
    %547 = arith.addf %546, %545 : vector<2x1xf32>
    %548 = math.log %547 : vector<2x1xf32>
    %549 = arith.addf %541, %548 : vector<2x1xf32>
    %cst_287 = arith.constant 0.949999988 : f32
    %550 = vector.broadcast %cst_287 : f32 to vector<2x1xf32>
    %551 = arith.mulf %550, %443 : vector<2x1xf32>
    %cst_288 = arith.constant 5.000000e-02 : f32
    %552 = vector.broadcast %cst_288 : f32 to vector<2x1xf32>
    %553 = arith.mulf %552, %549 : vector<2x1xf32>
    %554 = arith.addf %551, %553 : vector<2x1xf32>
    %c0_289 = arith.constant 0 : index
    %c0_290 = arith.constant 0 : index
    %c4_291 = arith.constant 4 : index
    %555 = vector.load %arg16[%c0_289, %c0_290, %c4_291] : memref<1x2x8xf32, #tpu.memory_space<vmem>>, vector<1x2x1xf32>
    %556 = vector.shape_cast %555 : vector<1x2x1xf32> to vector<2x1xf32>
    %557 = vector.shape_cast %549 : vector<2x1xf32> to vector<1x2x1xf32>
    tpu.vector_store %arg16[%c0_289, %c0_290, %c4_291], %557 {strides = array<i32>} : memref<1x2x8xf32, #tpu.memory_space<vmem>>, vector<1x2x1xf32>,
    %c0_292 = arith.constant 0 : index
    %c0_293 = arith.constant 0 : index
    %c4_294 = arith.constant 4 : index
    %558 = vector.load %arg17[%c0_292, %c0_293, %c4_294] : memref<1x2x8xf32, #tpu.memory_space<vmem>>, vector<1x2x1xf32>
    %559 = vector.shape_cast %558 : vector<1x2x1xf32> to vector<2x1xf32>
    %560 = vector.shape_cast %554 : vector<2x1xf32> to vector<1x2x1xf32>
    tpu.vector_store %arg17[%c0_292, %c0_293, %c4_294], %560 {strides = array<i32>} : memref<1x2x8xf32, #tpu.memory_space<vmem>>, vector<1x2x1xf32>,
    %561 = arith.truncf %510 : vector<2x128xf32> to vector<2x128xbf16>
    %c0_295 = arith.constant 0 : index
    %c0_296 = arith.constant 0 : index
    %562 = vector.load %arg20[%c0_295, %c0_296] : memref<2x256xbf16, #tpu.memory_space<vmem>>, vector<2x128xbf16>
    tpu.vector_store %arg20[%c0_295, %c0_296], %561 {strides = array<i32>} : memref<2x256xbf16, #tpu.memory_space<vmem>>, vector<2x128xbf16>,
    %c5 = arith.constant 5 : index
    %c0_297 = arith.constant 0 : index
    %c0_298 = arith.constant 0 : index
    %563 = vector.load %arg2[%c5, %c0_297, %c0_298] : memref<8x2x128xbf16, #tpu.memory_space<vmem>>, vector<1x2x128xbf16>
    %564 = vector.shape_cast %563 : vector<1x2x128xbf16> to vector<2x128xbf16>
    %c0_299 = arith.constant 0 : index
    %c128_300 = arith.constant 128 : index
    %565 = vector.load %arg20[%c0_299, %c128_300] : memref<2x256xbf16, #tpu.memory_space<vmem>>, vector<2x128xbf16>
    tpu.vector_store %arg20[%c0_299, %c128_300], %564 {strides = array<i32>} : memref<2x256xbf16, #tpu.memory_space<vmem>>, vector<2x128xbf16>,
    %c0_301 = arith.constant 0 : index
    %c0_302 = arith.constant 0 : index
    %566 = vector.load %arg20[%c0_301, %c0_302] : memref<2x256xbf16, #tpu.memory_space<vmem>>, vector<2x256xbf16>
    %c0_303 = arith.constant 0 : index
    %c0_304 = arith.constant 0 : index
    %567 = vector.load %arg5[%c0_303, %c0_304] : memref<256x128xbf16, #tpu.memory_space<vmem>>, vector<256x128xbf16>
    %cst_305 = arith.constant dense<0.000000e+00> : vector<2x128xf32>
    %568 = tpu.matmul %566, %567, %cst_305 {dimension_numbers = #tpu.dot_dimension_numbers<[1], [0], [0], [1], [0, 0, 1, 1], [], []>} : vector<2x256xbf16>, vector<256x128xbf16>, vector<2x128xf32> -> vector<2x128xf32>
    %c0_306 = arith.constant 0 : index
    %c0_307 = arith.constant 0 : index
    %569 = vector.load %arg6[%c0_306, %c0_307] : memref<1x128xf32, #tpu.memory_space<vmem>>, vector<1x128xf32>
    %570 = vector.broadcast %569 : vector<1x128xf32> to vector<2x128xf32>
    %571 = arith.addf %568, %570 : vector<2x128xf32>
    %cst_308 = arith.constant dense<0.000000e+00> : vector<2xf32>
    %572 = vector.multi_reduction <add>, %571, %cst_308 [1] : vector<2x128xf32> to vector<2xf32>
    %573 = vector.shape_cast %572 : vector<2xf32> to vector<2x1xf32>
    %cst_309 = arith.constant 1.280000e+02 : f32
    %574 = vector.broadcast %cst_309 : f32 to vector<2x1xf32>
    %575 = arith.divf %573, %574 : vector<2x1xf32>
    %576 = vector.broadcast %575 : vector<2x1xf32> to vector<2x128xf32>
    %577 = arith.subf %571, %576 : vector<2x128xf32>
    %578 = arith.mulf %577, %577 : vector<2x128xf32>
    %cst_310 = arith.constant dense<0.000000e+00> : vector<2xf32>
    %579 = vector.multi_reduction <add>, %578, %cst_310 [1] : vector<2x128xf32> to vector<2xf32>
    %580 = vector.shape_cast %579 : vector<2xf32> to vector<2x1xf32>
    %cst_311 = arith.constant 1.280000e+02 : f32
    %581 = vector.broadcast %cst_311 : f32 to vector<2x1xf32>
    %582 = arith.divf %580, %581 : vector<2x1xf32>
    %583 = vector.broadcast %575 : vector<2x1xf32> to vector<2x128xf32>
    %584 = arith.subf %571, %583 : vector<2x128xf32>
    %cst_312 = arith.constant 9.99999974E-6 : f32
    %585 = vector.broadcast %cst_312 : f32 to vector<2x1xf32>
    %586 = arith.addf %582, %585 : vector<2x1xf32>
    %587 = math.rsqrt %586 : vector<2x1xf32>
    %588 = vector.broadcast %587 : vector<2x1xf32> to vector<2x128xf32>
    %589 = arith.mulf %584, %588 : vector<2x128xf32>
    %c0_313 = arith.constant 0 : index
    %c0_314 = arith.constant 0 : index
    %590 = vector.load %arg7[%c0_313, %c0_314] : memref<1x128xf32, #tpu.memory_space<vmem>>, vector<1x128xf32>
    %591 = vector.broadcast %590 : vector<1x128xf32> to vector<2x128xf32>
    %592 = arith.mulf %589, %591 : vector<2x128xf32>
    %c0_315 = arith.constant 0 : index
    %c0_316 = arith.constant 0 : index
    %593 = vector.load %arg8[%c0_315, %c0_316] : memref<1x128xf32, #tpu.memory_space<vmem>>, vector<1x128xf32>
    %594 = vector.broadcast %593 : vector<1x128xf32> to vector<2x128xf32>
    %595 = arith.addf %592, %594 : vector<2x128xf32>
    %596 = arith.truncf %595 : vector<2x128xf32> to vector<2x128xbf16>
    %cst_317 = arith.constant 5.000000e-01 : bf16
    %597 = vector.broadcast %cst_317 : bf16 to vector<2x128xbf16>
    %598 = arith.mulf %597, %596 : vector<2x128xbf16>
    %cst_318 = arith.constant 7.968750e-01 : bf16
    %599 = vector.broadcast %cst_318 : bf16 to vector<2x128xbf16>
    %600 = arith.mulf %599, %596 : vector<2x128xbf16>
    %cst_319 = arith.constant 4.467770e-02 : bf16
    %601 = vector.broadcast %cst_319 : bf16 to vector<2x128xbf16>
    %602 = arith.mulf %601, %596 : vector<2x128xbf16>
    %603 = arith.mulf %602, %596 : vector<2x128xbf16>
    %cst_320 = arith.constant 1.000000e+00 : bf16
    %604 = vector.broadcast %cst_320 : bf16 to vector<2x128xbf16>
    %605 = arith.addf %604, %603 : vector<2x128xbf16>
    %606 = arith.mulf %600, %605 : vector<2x128xbf16>
    %607 = math.tanh %606 : vector<2x128xbf16>
    %cst_321 = arith.constant 1.000000e+00 : bf16
    %608 = vector.broadcast %cst_321 : bf16 to vector<2x128xbf16>
    %609 = arith.addf %608, %607 : vector<2x128xbf16>
    %610 = arith.mulf %598, %609 : vector<2x128xbf16>
    %c0_322 = arith.constant 0 : index
    %c0_323 = arith.constant 0 : index
    %611 = vector.load %arg9[%c0_322, %c0_323] : memref<128x128xbf16, #tpu.memory_space<vmem>>, vector<128x128xbf16>
    %cst_324 = arith.constant dense<0.000000e+00> : vector<2x128xf32>
    %612 = tpu.matmul %610, %611, %cst_324 {dimension_numbers = #tpu.dot_dimension_numbers<[1], [0], [0], [1], [0, 0, 1, 1], [], []>} : vector<2x128xbf16>, vector<128x128xbf16>, vector<2x128xf32> -> vector<2x128xf32>
    %c0_325 = arith.constant 0 : index
    %c0_326 = arith.constant 0 : index
    %613 = vector.load %arg10[%c0_325, %c0_326] : memref<1x128xf32, #tpu.memory_space<vmem>>, vector<1x128xf32>
    %614 = vector.broadcast %613 : vector<1x128xf32> to vector<2x128xf32>
    %615 = arith.addf %612, %614 : vector<2x128xf32>
    %cst_327 = arith.constant 0.899999976 : f32
    %616 = vector.broadcast %cst_327 : f32 to vector<2x128xf32>
    %617 = arith.mulf %616, %510 : vector<2x128xf32>
    %cst_328 = arith.constant 1.000000e-01 : f32
    %618 = vector.broadcast %cst_328 : f32 to vector<2x128xf32>
    %619 = arith.mulf %618, %615 : vector<2x128xf32>
    %620 = arith.addf %617, %619 : vector<2x128xf32>
    %621 = math.tanh %620 : vector<2x128xf32>
    %622 = arith.truncf %621 : vector<2x128xf32> to vector<2x128xbf16>
    %c0_329 = arith.constant 0 : index
    %c0_330 = arith.constant 0 : index
    %623 = vector.load %arg11[%c0_329, %c0_330] : memref<128x128xbf16, #tpu.memory_space<vmem>>, vector<128x128xbf16>
    %cst_331 = arith.constant dense<0.000000e+00> : vector<2x128xf32>
    %624 = tpu.matmul %622, %623, %cst_331 {dimension_numbers = #tpu.dot_dimension_numbers<[1], [0], [0], [1], [0, 0, 1, 1], [], []>} : vector<2x128xbf16>, vector<128x128xbf16>, vector<2x128xf32> -> vector<2x128xf32>
    %c0_332 = arith.constant 0 : index
    %c0_333 = arith.constant 0 : index
    %625 = vector.load %arg12[%c0_332, %c0_333] : memref<1x128xf32, #tpu.memory_space<vmem>>, vector<1x128xf32>
    %626 = vector.broadcast %625 : vector<1x128xf32> to vector<2x128xf32>
    %627 = arith.addf %624, %626 : vector<2x128xf32>
    %628 = arith.truncf %627 : vector<2x128xf32> to vector<2x128xbf16>
    %cst_334 = arith.constant 5.000000e-01 : bf16
    %629 = vector.broadcast %cst_334 : bf16 to vector<2x128xbf16>
    %630 = arith.mulf %629, %628 : vector<2x128xbf16>
    %cst_335 = arith.constant 7.968750e-01 : bf16
    %631 = vector.broadcast %cst_335 : bf16 to vector<2x128xbf16>
    %632 = arith.mulf %631, %628 : vector<2x128xbf16>
    %cst_336 = arith.constant 4.467770e-02 : bf16
    %633 = vector.broadcast %cst_336 : bf16 to vector<2x128xbf16>
    %634 = arith.mulf %633, %628 : vector<2x128xbf16>
    %635 = arith.mulf %634, %628 : vector<2x128xbf16>
    %cst_337 = arith.constant 1.000000e+00 : bf16
    %636 = vector.broadcast %cst_337 : bf16 to vector<2x128xbf16>
    %637 = arith.addf %636, %635 : vector<2x128xbf16>
    %638 = arith.mulf %632, %637 : vector<2x128xbf16>
    %639 = math.tanh %638 : vector<2x128xbf16>
    %cst_338 = arith.constant 1.000000e+00 : bf16
    %640 = vector.broadcast %cst_338 : bf16 to vector<2x128xbf16>
    %641 = arith.addf %640, %639 : vector<2x128xbf16>
    %642 = arith.mulf %630, %641 : vector<2x128xbf16>
    %643 = arith.extf %642 : vector<2x128xbf16> to vector<2x128xf32>
    %c0_339 = arith.constant 0 : index
    %c0_340 = arith.constant 0 : index
    %644 = vector.load %arg13[%c0_339, %c0_340] : memref<1x128xf32, #tpu.memory_space<vmem>>, vector<1x128xf32>
    %645 = vector.broadcast %644 : vector<1x128xf32> to vector<2x128xf32>
    %646 = arith.mulf %643, %645 : vector<2x128xf32>
    %cst_341 = arith.constant dense<0.000000e+00> : vector<2xf32>
    %647 = vector.multi_reduction <add>, %646, %cst_341 [1] : vector<2x128xf32> to vector<2xf32>
    %648 = vector.shape_cast %647 : vector<2xf32> to vector<2x1xf32>
    %649 = vector.broadcast %5 : f32 to vector<2x1xf32>
    %650 = arith.addf %648, %649 : vector<2x1xf32>
    %cst_342 = arith.constant 0.000000e+00 : f32
    %651 = vector.broadcast %cst_342 : f32 to vector<2x1xf32>
    %652 = arith.maximumf %650, %651 : vector<2x1xf32>
    %653 = math.absf %650 : vector<2x1xf32>
    %cst_343 = arith.constant 0.000000e+00 : f32
    %654 = vector.broadcast %cst_343 : f32 to vector<2x1xf32>
    %655 = arith.subf %654, %653 : vector<2x1xf32>
    %656 = math.exp %655 : vector<2x1xf32>
    %cst_344 = arith.constant 1.000000e+00 : f32
    %657 = vector.broadcast %cst_344 : f32 to vector<2x1xf32>
    %658 = arith.addf %657, %656 : vector<2x1xf32>
    %659 = math.log %658 : vector<2x1xf32>
    %660 = arith.addf %652, %659 : vector<2x1xf32>
    %cst_345 = arith.constant 0.949999988 : f32
    %661 = vector.broadcast %cst_345 : f32 to vector<2x1xf32>
    %662 = arith.mulf %661, %554 : vector<2x1xf32>
    %cst_346 = arith.constant 5.000000e-02 : f32
    %663 = vector.broadcast %cst_346 : f32 to vector<2x1xf32>
    %664 = arith.mulf %663, %660 : vector<2x1xf32>
    %665 = arith.addf %662, %664 : vector<2x1xf32>
    %c0_347 = arith.constant 0 : index
    %c0_348 = arith.constant 0 : index
    %c5_349 = arith.constant 5 : index
    %666 = vector.load %arg16[%c0_347, %c0_348, %c5_349] : memref<1x2x8xf32, #tpu.memory_space<vmem>>, vector<1x2x1xf32>
    %667 = vector.shape_cast %666 : vector<1x2x1xf32> to vector<2x1xf32>
    %668 = vector.shape_cast %660 : vector<2x1xf32> to vector<1x2x1xf32>
    tpu.vector_store %arg16[%c0_347, %c0_348, %c5_349], %668 {strides = array<i32>} : memref<1x2x8xf32, #tpu.memory_space<vmem>>, vector<1x2x1xf32>,
    %c0_350 = arith.constant 0 : index
    %c0_351 = arith.constant 0 : index
    %c5_352 = arith.constant 5 : index
    %669 = vector.load %arg17[%c0_350, %c0_351, %c5_352] : memref<1x2x8xf32, #tpu.memory_space<vmem>>, vector<1x2x1xf32>
    %670 = vector.shape_cast %669 : vector<1x2x1xf32> to vector<2x1xf32>
    %671 = vector.shape_cast %665 : vector<2x1xf32> to vector<1x2x1xf32>
    tpu.vector_store %arg17[%c0_350, %c0_351, %c5_352], %671 {strides = array<i32>} : memref<1x2x8xf32, #tpu.memory_space<vmem>>, vector<1x2x1xf32>,
    %672 = arith.truncf %621 : vector<2x128xf32> to vector<2x128xbf16>
    %c0_353 = arith.constant 0 : index
    %c0_354 = arith.constant 0 : index
    %673 = vector.load %arg20[%c0_353, %c0_354] : memref<2x256xbf16, #tpu.memory_space<vmem>>, vector<2x128xbf16>
    tpu.vector_store %arg20[%c0_353, %c0_354], %672 {strides = array<i32>} : memref<2x256xbf16, #tpu.memory_space<vmem>>, vector<2x128xbf16>,
    %c6 = arith.constant 6 : index
    %c0_355 = arith.constant 0 : index
    %c0_356 = arith.constant 0 : index
    %674 = vector.load %arg2[%c6, %c0_355, %c0_356] : memref<8x2x128xbf16, #tpu.memory_space<vmem>>, vector<1x2x128xbf16>
    %675 = vector.shape_cast %674 : vector<1x2x128xbf16> to vector<2x128xbf16>
    %c0_357 = arith.constant 0 : index
    %c128_358 = arith.constant 128 : index
    %676 = vector.load %arg20[%c0_357, %c128_358] : memref<2x256xbf16, #tpu.memory_space<vmem>>, vector<2x128xbf16>
    tpu.vector_store %arg20[%c0_357, %c128_358], %675 {strides = array<i32>} : memref<2x256xbf16, #tpu.memory_space<vmem>>, vector<2x128xbf16>,
    %c0_359 = arith.constant 0 : index
    %c0_360 = arith.constant 0 : index
    %677 = vector.load %arg20[%c0_359, %c0_360] : memref<2x256xbf16, #tpu.memory_space<vmem>>, vector<2x256xbf16>
    %c0_361 = arith.constant 0 : index
    %c0_362 = arith.constant 0 : index
    %678 = vector.load %arg5[%c0_361, %c0_362] : memref<256x128xbf16, #tpu.memory_space<vmem>>, vector<256x128xbf16>
    %cst_363 = arith.constant dense<0.000000e+00> : vector<2x128xf32>
    %679 = tpu.matmul %677, %678, %cst_363 {dimension_numbers = #tpu.dot_dimension_numbers<[1], [0], [0], [1], [0, 0, 1, 1], [], []>} : vector<2x256xbf16>, vector<256x128xbf16>, vector<2x128xf32> -> vector<2x128xf32>
    %c0_364 = arith.constant 0 : index
    %c0_365 = arith.constant 0 : index
    %680 = vector.load %arg6[%c0_364, %c0_365] : memref<1x128xf32, #tpu.memory_space<vmem>>, vector<1x128xf32>
    %681 = vector.broadcast %680 : vector<1x128xf32> to vector<2x128xf32>
    %682 = arith.addf %679, %681 : vector<2x128xf32>
    %cst_366 = arith.constant dense<0.000000e+00> : vector<2xf32>
    %683 = vector.multi_reduction <add>, %682, %cst_366 [1] : vector<2x128xf32> to vector<2xf32>
    %684 = vector.shape_cast %683 : vector<2xf32> to vector<2x1xf32>
    %cst_367 = arith.constant 1.280000e+02 : f32
    %685 = vector.broadcast %cst_367 : f32 to vector<2x1xf32>
    %686 = arith.divf %684, %685 : vector<2x1xf32>
    %687 = vector.broadcast %686 : vector<2x1xf32> to vector<2x128xf32>
    %688 = arith.subf %682, %687 : vector<2x128xf32>
    %689 = arith.mulf %688, %688 : vector<2x128xf32>
    %cst_368 = arith.constant dense<0.000000e+00> : vector<2xf32>
    %690 = vector.multi_reduction <add>, %689, %cst_368 [1] : vector<2x128xf32> to vector<2xf32>
    %691 = vector.shape_cast %690 : vector<2xf32> to vector<2x1xf32>
    %cst_369 = arith.constant 1.280000e+02 : f32
    %692 = vector.broadcast %cst_369 : f32 to vector<2x1xf32>
    %693 = arith.divf %691, %692 : vector<2x1xf32>
    %694 = vector.broadcast %686 : vector<2x1xf32> to vector<2x128xf32>
    %695 = arith.subf %682, %694 : vector<2x128xf32>
    %cst_370 = arith.constant 9.99999974E-6 : f32
    %696 = vector.broadcast %cst_370 : f32 to vector<2x1xf32>
    %697 = arith.addf %693, %696 : vector<2x1xf32>
    %698 = math.rsqrt %697 : vector<2x1xf32>
    %699 = vector.broadcast %698 : vector<2x1xf32> to vector<2x128xf32>
    %700 = arith.mulf %695, %699 : vector<2x128xf32>
    %c0_371 = arith.constant 0 : index
    %c0_372 = arith.constant 0 : index
    %701 = vector.load %arg7[%c0_371, %c0_372] : memref<1x128xf32, #tpu.memory_space<vmem>>, vector<1x128xf32>
    %702 = vector.broadcast %701 : vector<1x128xf32> to vector<2x128xf32>
    %703 = arith.mulf %700, %702 : vector<2x128xf32>
    %c0_373 = arith.constant 0 : index
    %c0_374 = arith.constant 0 : index
    %704 = vector.load %arg8[%c0_373, %c0_374] : memref<1x128xf32, #tpu.memory_space<vmem>>, vector<1x128xf32>
    %705 = vector.broadcast %704 : vector<1x128xf32> to vector<2x128xf32>
    %706 = arith.addf %703, %705 : vector<2x128xf32>
    %707 = arith.truncf %706 : vector<2x128xf32> to vector<2x128xbf16>
    %cst_375 = arith.constant 5.000000e-01 : bf16
    %708 = vector.broadcast %cst_375 : bf16 to vector<2x128xbf16>
    %709 = arith.mulf %708, %707 : vector<2x128xbf16>
    %cst_376 = arith.constant 7.968750e-01 : bf16
    %710 = vector.broadcast %cst_376 : bf16 to vector<2x128xbf16>
    %711 = arith.mulf %710, %707 : vector<2x128xbf16>
    %cst_377 = arith.constant 4.467770e-02 : bf16
    %712 = vector.broadcast %cst_377 : bf16 to vector<2x128xbf16>
    %713 = arith.mulf %712, %707 : vector<2x128xbf16>
    %714 = arith.mulf %713, %707 : vector<2x128xbf16>
    %cst_378 = arith.constant 1.000000e+00 : bf16
    %715 = vector.broadcast %cst_378 : bf16 to vector<2x128xbf16>
    %716 = arith.addf %715, %714 : vector<2x128xbf16>
    %717 = arith.mulf %711, %716 : vector<2x128xbf16>
    %718 = math.tanh %717 : vector<2x128xbf16>
    %cst_379 = arith.constant 1.000000e+00 : bf16
    %719 = vector.broadcast %cst_379 : bf16 to vector<2x128xbf16>
    %720 = arith.addf %719, %718 : vector<2x128xbf16>
    %721 = arith.mulf %709, %720 : vector<2x128xbf16>
    %c0_380 = arith.constant 0 : index
    %c0_381 = arith.constant 0 : index
    %722 = vector.load %arg9[%c0_380, %c0_381] : memref<128x128xbf16, #tpu.memory_space<vmem>>, vector<128x128xbf16>
    %cst_382 = arith.constant dense<0.000000e+00> : vector<2x128xf32>
    %723 = tpu.matmul %721, %722, %cst_382 {dimension_numbers = #tpu.dot_dimension_numbers<[1], [0], [0], [1], [0, 0, 1, 1], [], []>} : vector<2x128xbf16>, vector<128x128xbf16>, vector<2x128xf32> -> vector<2x128xf32>
    %c0_383 = arith.constant 0 : index
    %c0_384 = arith.constant 0 : index
    %724 = vector.load %arg10[%c0_383, %c0_384] : memref<1x128xf32, #tpu.memory_space<vmem>>, vector<1x128xf32>
    %725 = vector.broadcast %724 : vector<1x128xf32> to vector<2x128xf32>
    %726 = arith.addf %723, %725 : vector<2x128xf32>
    %cst_385 = arith.constant 0.899999976 : f32
    %727 = vector.broadcast %cst_385 : f32 to vector<2x128xf32>
    %728 = arith.mulf %727, %621 : vector<2x128xf32>
    %cst_386 = arith.constant 1.000000e-01 : f32
    %729 = vector.broadcast %cst_386 : f32 to vector<2x128xf32>
    %730 = arith.mulf %729, %726 : vector<2x128xf32>
    %731 = arith.addf %728, %730 : vector<2x128xf32>
    %732 = math.tanh %731 : vector<2x128xf32>
    %733 = arith.truncf %732 : vector<2x128xf32> to vector<2x128xbf16>
    %c0_387 = arith.constant 0 : index
    %c0_388 = arith.constant 0 : index
    %734 = vector.load %arg11[%c0_387, %c0_388] : memref<128x128xbf16, #tpu.memory_space<vmem>>, vector<128x128xbf16>
    %cst_389 = arith.constant dense<0.000000e+00> : vector<2x128xf32>
    %735 = tpu.matmul %733, %734, %cst_389 {dimension_numbers = #tpu.dot_dimension_numbers<[1], [0], [0], [1], [0, 0, 1, 1], [], []>} : vector<2x128xbf16>, vector<128x128xbf16>, vector<2x128xf32> -> vector<2x128xf32>
    %c0_390 = arith.constant 0 : index
    %c0_391 = arith.constant 0 : index
    %736 = vector.load %arg12[%c0_390, %c0_391] : memref<1x128xf32, #tpu.memory_space<vmem>>, vector<1x128xf32>
    %737 = vector.broadcast %736 : vector<1x128xf32> to vector<2x128xf32>
    %738 = arith.addf %735, %737 : vector<2x128xf32>
    %739 = arith.truncf %738 : vector<2x128xf32> to vector<2x128xbf16>
    %cst_392 = arith.constant 5.000000e-01 : bf16
    %740 = vector.broadcast %cst_392 : bf16 to vector<2x128xbf16>
    %741 = arith.mulf %740, %739 : vector<2x128xbf16>
    %cst_393 = arith.constant 7.968750e-01 : bf16
    %742 = vector.broadcast %cst_393 : bf16 to vector<2x128xbf16>
    %743 = arith.mulf %742, %739 : vector<2x128xbf16>
    %cst_394 = arith.constant 4.467770e-02 : bf16
    %744 = vector.broadcast %cst_394 : bf16 to vector<2x128xbf16>
    %745 = arith.mulf %744, %739 : vector<2x128xbf16>
    %746 = arith.mulf %745, %739 : vector<2x128xbf16>
    %cst_395 = arith.constant 1.000000e+00 : bf16
    %747 = vector.broadcast %cst_395 : bf16 to vector<2x128xbf16>
    %748 = arith.addf %747, %746 : vector<2x128xbf16>
    %749 = arith.mulf %743, %748 : vector<2x128xbf16>
    %750 = math.tanh %749 : vector<2x128xbf16>
    %cst_396 = arith.constant 1.000000e+00 : bf16
    %751 = vector.broadcast %cst_396 : bf16 to vector<2x128xbf16>
    %752 = arith.addf %751, %750 : vector<2x128xbf16>
    %753 = arith.mulf %741, %752 : vector<2x128xbf16>
    %754 = arith.extf %753 : vector<2x128xbf16> to vector<2x128xf32>
    %c0_397 = arith.constant 0 : index
    %c0_398 = arith.constant 0 : index
    %755 = vector.load %arg13[%c0_397, %c0_398] : memref<1x128xf32, #tpu.memory_space<vmem>>, vector<1x128xf32>
    %756 = vector.broadcast %755 : vector<1x128xf32> to vector<2x128xf32>
    %757 = arith.mulf %754, %756 : vector<2x128xf32>
    %cst_399 = arith.constant dense<0.000000e+00> : vector<2xf32>
    %758 = vector.multi_reduction <add>, %757, %cst_399 [1] : vector<2x128xf32> to vector<2xf32>
    %759 = vector.shape_cast %758 : vector<2xf32> to vector<2x1xf32>
    %760 = vector.broadcast %5 : f32 to vector<2x1xf32>
    %761 = arith.addf %759, %760 : vector<2x1xf32>
    %cst_400 = arith.constant 0.000000e+00 : f32
    %762 = vector.broadcast %cst_400 : f32 to vector<2x1xf32>
    %763 = arith.maximumf %761, %762 : vector<2x1xf32>
    %764 = math.absf %761 : vector<2x1xf32>
    %cst_401 = arith.constant 0.000000e+00 : f32
    %765 = vector.broadcast %cst_401 : f32 to vector<2x1xf32>
    %766 = arith.subf %765, %764 : vector<2x1xf32>
    %767 = math.exp %766 : vector<2x1xf32>
    %cst_402 = arith.constant 1.000000e+00 : f32
    %768 = vector.broadcast %cst_402 : f32 to vector<2x1xf32>
    %769 = arith.addf %768, %767 : vector<2x1xf32>
    %770 = math.log %769 : vector<2x1xf32>
    %771 = arith.addf %763, %770 : vector<2x1xf32>
    %cst_403 = arith.constant 0.949999988 : f32
    %772 = vector.broadcast %cst_403 : f32 to vector<2x1xf32>
    %773 = arith.mulf %772, %665 : vector<2x1xf32>
    %cst_404 = arith.constant 5.000000e-02 : f32
    %774 = vector.broadcast %cst_404 : f32 to vector<2x1xf32>
    %775 = arith.mulf %774, %771 : vector<2x1xf32>
    %776 = arith.addf %773, %775 : vector<2x1xf32>
    %c0_405 = arith.constant 0 : index
    %c0_406 = arith.constant 0 : index
    %c6_407 = arith.constant 6 : index
    %777 = vector.load %arg16[%c0_405, %c0_406, %c6_407] : memref<1x2x8xf32, #tpu.memory_space<vmem>>, vector<1x2x1xf32>
    %778 = vector.shape_cast %777 : vector<1x2x1xf32> to vector<2x1xf32>
    %779 = vector.shape_cast %771 : vector<2x1xf32> to vector<1x2x1xf32>
    tpu.vector_store %arg16[%c0_405, %c0_406, %c6_407], %779 {strides = array<i32>} : memref<1x2x8xf32, #tpu.memory_space<vmem>>, vector<1x2x1xf32>,
    %c0_408 = arith.constant 0 : index
    %c0_409 = arith.constant 0 : index
    %c6_410 = arith.constant 6 : index
    %780 = vector.load %arg17[%c0_408, %c0_409, %c6_410] : memref<1x2x8xf32, #tpu.memory_space<vmem>>, vector<1x2x1xf32>
    %781 = vector.shape_cast %780 : vector<1x2x1xf32> to vector<2x1xf32>
    %782 = vector.shape_cast %776 : vector<2x1xf32> to vector<1x2x1xf32>
    tpu.vector_store %arg17[%c0_408, %c0_409, %c6_410], %782 {strides = array<i32>} : memref<1x2x8xf32, #tpu.memory_space<vmem>>, vector<1x2x1xf32>,
    %783 = arith.truncf %732 : vector<2x128xf32> to vector<2x128xbf16>
    %c0_411 = arith.constant 0 : index
    %c0_412 = arith.constant 0 : index
    %784 = vector.load %arg20[%c0_411, %c0_412] : memref<2x256xbf16, #tpu.memory_space<vmem>>, vector<2x128xbf16>
    tpu.vector_store %arg20[%c0_411, %c0_412], %783 {strides = array<i32>} : memref<2x256xbf16, #tpu.memory_space<vmem>>, vector<2x128xbf16>,
    %c7 = arith.constant 7 : index
    %c0_413 = arith.constant 0 : index
    %c0_414 = arith.constant 0 : index
    %785 = vector.load %arg2[%c7, %c0_413, %c0_414] : memref<8x2x128xbf16, #tpu.memory_space<vmem>>, vector<1x2x128xbf16>
    %786 = vector.shape_cast %785 : vector<1x2x128xbf16> to vector<2x128xbf16>
    %c0_415 = arith.constant 0 : index
    %c128_416 = arith.constant 128 : index
    %787 = vector.load %arg20[%c0_415, %c128_416] : memref<2x256xbf16, #tpu.memory_space<vmem>>, vector<2x128xbf16>
    tpu.vector_store %arg20[%c0_415, %c128_416], %786 {strides = array<i32>} : memref<2x256xbf16, #tpu.memory_space<vmem>>, vector<2x128xbf16>,
    %c0_417 = arith.constant 0 : index
    %c0_418 = arith.constant 0 : index
    %788 = vector.load %arg20[%c0_417, %c0_418] : memref<2x256xbf16, #tpu.memory_space<vmem>>, vector<2x256xbf16>
    %c0_419 = arith.constant 0 : index
    %c0_420 = arith.constant 0 : index
    %789 = vector.load %arg5[%c0_419, %c0_420] : memref<256x128xbf16, #tpu.memory_space<vmem>>, vector<256x128xbf16>
    %cst_421 = arith.constant dense<0.000000e+00> : vector<2x128xf32>
    %790 = tpu.matmul %788, %789, %cst_421 {dimension_numbers = #tpu.dot_dimension_numbers<[1], [0], [0], [1], [0, 0, 1, 1], [], []>} : vector<2x256xbf16>, vector<256x128xbf16>, vector<2x128xf32> -> vector<2x128xf32>
    %c0_422 = arith.constant 0 : index
    %c0_423 = arith.constant 0 : index
    %791 = vector.load %arg6[%c0_422, %c0_423] : memref<1x128xf32, #tpu.memory_space<vmem>>, vector<1x128xf32>
    %792 = vector.broadcast %791 : vector<1x128xf32> to vector<2x128xf32>
    %793 = arith.addf %790, %792 : vector<2x128xf32>
    %cst_424 = arith.constant dense<0.000000e+00> : vector<2xf32>
    %794 = vector.multi_reduction <add>, %793, %cst_424 [1] : vector<2x128xf32> to vector<2xf32>
    %795 = vector.shape_cast %794 : vector<2xf32> to vector<2x1xf32>
    %cst_425 = arith.constant 1.280000e+02 : f32
    %796 = vector.broadcast %cst_425 : f32 to vector<2x1xf32>
    %797 = arith.divf %795, %796 : vector<2x1xf32>
    %798 = vector.broadcast %797 : vector<2x1xf32> to vector<2x128xf32>
    %799 = arith.subf %793, %798 : vector<2x128xf32>
    %800 = arith.mulf %799, %799 : vector<2x128xf32>
    %cst_426 = arith.constant dense<0.000000e+00> : vector<2xf32>
    %801 = vector.multi_reduction <add>, %800, %cst_426 [1] : vector<2x128xf32> to vector<2xf32>
    %802 = vector.shape_cast %801 : vector<2xf32> to vector<2x1xf32>
    %cst_427 = arith.constant 1.280000e+02 : f32
    %803 = vector.broadcast %cst_427 : f32 to vector<2x1xf32>
    %804 = arith.divf %802, %803 : vector<2x1xf32>
    %805 = vector.broadcast %797 : vector<2x1xf32> to vector<2x128xf32>
    %806 = arith.subf %793, %805 : vector<2x128xf32>
    %cst_428 = arith.constant 9.99999974E-6 : f32
    %807 = vector.broadcast %cst_428 : f32 to vector<2x1xf32>
    %808 = arith.addf %804, %807 : vector<2x1xf32>
    %809 = math.rsqrt %808 : vector<2x1xf32>
    %810 = vector.broadcast %809 : vector<2x1xf32> to vector<2x128xf32>
    %811 = arith.mulf %806, %810 : vector<2x128xf32>
    %c0_429 = arith.constant 0 : index
    %c0_430 = arith.constant 0 : index
    %812 = vector.load %arg7[%c0_429, %c0_430] : memref<1x128xf32, #tpu.memory_space<vmem>>, vector<1x128xf32>
    %813 = vector.broadcast %812 : vector<1x128xf32> to vector<2x128xf32>
    %814 = arith.mulf %811, %813 : vector<2x128xf32>
    %c0_431 = arith.constant 0 : index
    %c0_432 = arith.constant 0 : index
    %815 = vector.load %arg8[%c0_431, %c0_432] : memref<1x128xf32, #tpu.memory_space<vmem>>, vector<1x128xf32>
    %816 = vector.broadcast %815 : vector<1x128xf32> to vector<2x128xf32>
    %817 = arith.addf %814, %816 : vector<2x128xf32>
    %818 = arith.truncf %817 : vector<2x128xf32> to vector<2x128xbf16>
    %cst_433 = arith.constant 5.000000e-01 : bf16
    %819 = vector.broadcast %cst_433 : bf16 to vector<2x128xbf16>
    %820 = arith.mulf %819, %818 : vector<2x128xbf16>
    %cst_434 = arith.constant 7.968750e-01 : bf16
    %821 = vector.broadcast %cst_434 : bf16 to vector<2x128xbf16>
    %822 = arith.mulf %821, %818 : vector<2x128xbf16>
    %cst_435 = arith.constant 4.467770e-02 : bf16
    %823 = vector.broadcast %cst_435 : bf16 to vector<2x128xbf16>
    %824 = arith.mulf %823, %818 : vector<2x128xbf16>
    %825 = arith.mulf %824, %818 : vector<2x128xbf16>
    %cst_436 = arith.constant 1.000000e+00 : bf16
    %826 = vector.broadcast %cst_436 : bf16 to vector<2x128xbf16>
    %827 = arith.addf %826, %825 : vector<2x128xbf16>
    %828 = arith.mulf %822, %827 : vector<2x128xbf16>
    %829 = math.tanh %828 : vector<2x128xbf16>
    %cst_437 = arith.constant 1.000000e+00 : bf16
    %830 = vector.broadcast %cst_437 : bf16 to vector<2x128xbf16>
    %831 = arith.addf %830, %829 : vector<2x128xbf16>
    %832 = arith.mulf %820, %831 : vector<2x128xbf16>
    %c0_438 = arith.constant 0 : index
    %c0_439 = arith.constant 0 : index
    %833 = vector.load %arg9[%c0_438, %c0_439] : memref<128x128xbf16, #tpu.memory_space<vmem>>, vector<128x128xbf16>
    %cst_440 = arith.constant dense<0.000000e+00> : vector<2x128xf32>
    %834 = tpu.matmul %832, %833, %cst_440 {dimension_numbers = #tpu.dot_dimension_numbers<[1], [0], [0], [1], [0, 0, 1, 1], [], []>} : vector<2x128xbf16>, vector<128x128xbf16>, vector<2x128xf32> -> vector<2x128xf32>
    %c0_441 = arith.constant 0 : index
    %c0_442 = arith.constant 0 : index
    %835 = vector.load %arg10[%c0_441, %c0_442] : memref<1x128xf32, #tpu.memory_space<vmem>>, vector<1x128xf32>
    %836 = vector.broadcast %835 : vector<1x128xf32> to vector<2x128xf32>
    %837 = arith.addf %834, %836 : vector<2x128xf32>
    %cst_443 = arith.constant 0.899999976 : f32
    %838 = vector.broadcast %cst_443 : f32 to vector<2x128xf32>
    %839 = arith.mulf %838, %732 : vector<2x128xf32>
    %cst_444 = arith.constant 1.000000e-01 : f32
    %840 = vector.broadcast %cst_444 : f32 to vector<2x128xf32>
    %841 = arith.mulf %840, %837 : vector<2x128xf32>
    %842 = arith.addf %839, %841 : vector<2x128xf32>
    %843 = math.tanh %842 : vector<2x128xf32>
    %844 = arith.truncf %843 : vector<2x128xf32> to vector<2x128xbf16>
    %c0_445 = arith.constant 0 : index
    %c0_446 = arith.constant 0 : index
    %845 = vector.load %arg11[%c0_445, %c0_446] : memref<128x128xbf16, #tpu.memory_space<vmem>>, vector<128x128xbf16>
    %cst_447 = arith.constant dense<0.000000e+00> : vector<2x128xf32>
    %846 = tpu.matmul %844, %845, %cst_447 {dimension_numbers = #tpu.dot_dimension_numbers<[1], [0], [0], [1], [0, 0, 1, 1], [], []>} : vector<2x128xbf16>, vector<128x128xbf16>, vector<2x128xf32> -> vector<2x128xf32>
    %c0_448 = arith.constant 0 : index
    %c0_449 = arith.constant 0 : index
    %847 = vector.load %arg12[%c0_448, %c0_449] : memref<1x128xf32, #tpu.memory_space<vmem>>, vector<1x128xf32>
    %848 = vector.broadcast %847 : vector<1x128xf32> to vector<2x128xf32>
    %849 = arith.addf %846, %848 : vector<2x128xf32>
    %850 = arith.truncf %849 : vector<2x128xf32> to vector<2x128xbf16>
    %cst_450 = arith.constant 5.000000e-01 : bf16
    %851 = vector.broadcast %cst_450 : bf16 to vector<2x128xbf16>
    %852 = arith.mulf %851, %850 : vector<2x128xbf16>
    %cst_451 = arith.constant 7.968750e-01 : bf16
    %853 = vector.broadcast %cst_451 : bf16 to vector<2x128xbf16>
    %854 = arith.mulf %853, %850 : vector<2x128xbf16>
    %cst_452 = arith.constant 4.467770e-02 : bf16
    %855 = vector.broadcast %cst_452 : bf16 to vector<2x128xbf16>
    %856 = arith.mulf %855, %850 : vector<2x128xbf16>
    %857 = arith.mulf %856, %850 : vector<2x128xbf16>
    %cst_453 = arith.constant 1.000000e+00 : bf16
    %858 = vector.broadcast %cst_453 : bf16 to vector<2x128xbf16>
    %859 = arith.addf %858, %857 : vector<2x128xbf16>
    %860 = arith.mulf %854, %859 : vector<2x128xbf16>
    %861 = math.tanh %860 : vector<2x128xbf16>
    %cst_454 = arith.constant 1.000000e+00 : bf16
    %862 = vector.broadcast %cst_454 : bf16 to vector<2x128xbf16>
    %863 = arith.addf %862, %861 : vector<2x128xbf16>
    %864 = arith.mulf %852, %863 : vector<2x128xbf16>
    %865 = arith.extf %864 : vector<2x128xbf16> to vector<2x128xf32>
    %c0_455 = arith.constant 0 : index
    %c0_456 = arith.constant 0 : index
    %866 = vector.load %arg13[%c0_455, %c0_456] : memref<1x128xf32, #tpu.memory_space<vmem>>, vector<1x128xf32>
    %867 = vector.broadcast %866 : vector<1x128xf32> to vector<2x128xf32>
    %868 = arith.mulf %865, %867 : vector<2x128xf32>
    %cst_457 = arith.constant dense<0.000000e+00> : vector<2xf32>
    %869 = vector.multi_reduction <add>, %868, %cst_457 [1] : vector<2x128xf32> to vector<2xf32>
    %870 = vector.shape_cast %869 : vector<2xf32> to vector<2x1xf32>
    %871 = vector.broadcast %5 : f32 to vector<2x1xf32>
    %872 = arith.addf %870, %871 : vector<2x1xf32>
    %cst_458 = arith.constant 0.000000e+00 : f32
    %873 = vector.broadcast %cst_458 : f32 to vector<2x1xf32>
    %874 = arith.maximumf %872, %873 : vector<2x1xf32>
    %875 = math.absf %872 : vector<2x1xf32>
    %cst_459 = arith.constant 0.000000e+00 : f32
    %876 = vector.broadcast %cst_459 : f32 to vector<2x1xf32>
    %877 = arith.subf %876, %875 : vector<2x1xf32>
    %878 = math.exp %877 : vector<2x1xf32>
    %cst_460 = arith.constant 1.000000e+00 : f32
    %879 = vector.broadcast %cst_460 : f32 to vector<2x1xf32>
    %880 = arith.addf %879, %878 : vector<2x1xf32>
    %881 = math.log %880 : vector<2x1xf32>
    %882 = arith.addf %874, %881 : vector<2x1xf32>
    %cst_461 = arith.constant 0.949999988 : f32
    %883 = vector.broadcast %cst_461 : f32 to vector<2x1xf32>
    %884 = arith.mulf %883, %776 : vector<2x1xf32>
    %cst_462 = arith.constant 5.000000e-02 : f32
    %885 = vector.broadcast %cst_462 : f32 to vector<2x1xf32>
    %886 = arith.mulf %885, %882 : vector<2x1xf32>
    %887 = arith.addf %884, %886 : vector<2x1xf32>
    %c0_463 = arith.constant 0 : index
    %c0_464 = arith.constant 0 : index
    %c7_465 = arith.constant 7 : index
    %888 = vector.load %arg16[%c0_463, %c0_464, %c7_465] : memref<1x2x8xf32, #tpu.memory_space<vmem>>, vector<1x2x1xf32>
    %889 = vector.shape_cast %888 : vector<1x2x1xf32> to vector<2x1xf32>
    %890 = vector.shape_cast %882 : vector<2x1xf32> to vector<1x2x1xf32>
    tpu.vector_store %arg16[%c0_463, %c0_464, %c7_465], %890 {strides = array<i32>} : memref<1x2x8xf32, #tpu.memory_space<vmem>>, vector<1x2x1xf32>,
    %c0_466 = arith.constant 0 : index
    %c0_467 = arith.constant 0 : index
    %c7_468 = arith.constant 7 : index
    %891 = vector.load %arg17[%c0_466, %c0_467, %c7_468] : memref<1x2x8xf32, #tpu.memory_space<vmem>>, vector<1x2x1xf32>
    %892 = vector.shape_cast %891 : vector<1x2x1xf32> to vector<2x1xf32>
    %893 = vector.shape_cast %887 : vector<2x1xf32> to vector<1x2x1xf32>
    tpu.vector_store %arg17[%c0_466, %c0_467, %c7_468], %893 {strides = array<i32>} : memref<1x2x8xf32, #tpu.memory_space<vmem>>, vector<1x2x1xf32>,
    %c0_469 = arith.constant 0 : index
    %c0_470 = arith.constant 0 : index
    %894 = vector.load %arg18[%c0_469, %c0_470] : memref<2x128xf32, #tpu.memory_space<vmem>>, vector<2x128xf32>
    tpu.vector_store %arg18[%c0_469, %c0_470], %843 {strides = array<i32>} : memref<2x128xf32, #tpu.memory_space<vmem>>, vector<2x128xf32>,
    %c0_471 = arith.constant 0 : index
    %c0_472 = arith.constant 0 : index
    %895 = vector.load %arg19[%c0_471, %c0_472] : memref<2x1xf32, #tpu.memory_space<vmem>>, vector<2x1xf32>
    tpu.vector_store %arg19[%c0_471, %c0_472], %887 {strides = array<i32>} : memref<2x1xf32, #tpu.memory_space<vmem>>, vector<2x1xf32>,
    %c0_473 = arith.constant 0 : index
    %c0_474 = arith.constant 0 : index
    %896 = vector.load %arg15[%c0_473, %c0_474] : memref<2x128xf32, #tpu.memory_space<vmem>>, vector<2x128xf32>
    tpu.vector_store %arg15[%c0_473, %c0_474], %843 {strides = array<i32>} : memref<2x128xf32, #tpu.memory_space<vmem>>, vector<2x128xf32>,
    return
  }
  func.func @transform_0(%arg0: i32, %arg1: i32) -> (i32, i32, i32) {
    %c0_i32 = arith.constant 0 : i32
    %c0_i32_0 = arith.constant 0 : i32
    return %arg1, %arg0, %c0_i32 : i32, i32, i32
  }
  func.func @transform_1(%arg0: i32, %arg1: i32) -> (i32, i32) {
    %c0_i32 = arith.constant 0 : i32
    %c0_i32_0 = arith.constant 0 : i32
    return %arg0, %c0_i32 : i32, i32
  }
  func.func @transform_2(%arg0: i32, %arg1: i32) -> (i32, i32) {
    %c0_i32 = arith.constant 0 : i32
    %c0_i32_0 = arith.constant 0 : i32
    return %arg0, %c0_i32 : i32, i32
  }
  func.func @transform_3(%arg0: i32, %arg1: i32) -> (i32, i32) {
    %c0_i32 = arith.constant 0 : i32
    %c0_i32_0 = arith.constant 0 : i32
    %c0_i32_1 = arith.constant 0 : i32
    return %c0_i32, %c0_i32_0 : i32, i32
  }
  func.func @transform_4(%arg0: i32, %arg1: i32) -> (i32, i32) {
    %c0_i32 = arith.constant 0 : i32
    %c0_i32_0 = arith.constant 0 : i32
    %c0_i32_1 = arith.constant 0 : i32
    return %c0_i32, %c0_i32_0 : i32, i32
  }
  func.func @transform_5(%arg0: i32, %arg1: i32) -> (i32, i32) {
    %c0_i32 = arith.constant 0 : i32
    %c0_i32_0 = arith.constant 0 : i32
    %c0_i32_1 = arith.constant 0 : i32
    return %c0_i32, %c0_i32_0 : i32, i32
  }
  func.func @transform_6(%arg0: i32, %arg1: i32) -> (i32, i32) {
    %c0_i32 = arith.constant 0 : i32
    %c0_i32_0 = arith.constant 0 : i32
    %c0_i32_1 = arith.constant 0 : i32
    return %c0_i32, %c0_i32_0 : i32, i32
  }
  func.func @transform_7(%arg0: i32, %arg1: i32) -> (i32, i32) {
    %c0_i32 = arith.constant 0 : i32
    %c0_i32_0 = arith.constant 0 : i32
    %c0_i32_1 = arith.constant 0 : i32
    return %c0_i32, %c0_i32_0 : i32, i32
  }
  func.func @transform_8(%arg0: i32, %arg1: i32) -> (i32, i32) {
    %c0_i32 = arith.constant 0 : i32
    %c0_i32_0 = arith.constant 0 : i32
    %c0_i32_1 = arith.constant 0 : i32
    return %c0_i32, %c0_i32_0 : i32, i32
  }
  func.func @transform_9(%arg0: i32, %arg1: i32) -> (i32, i32) {
    %c0_i32 = arith.constant 0 : i32
    %c0_i32_0 = arith.constant 0 : i32
    %c0_i32_1 = arith.constant 0 : i32
    return %c0_i32, %c0_i32_0 : i32, i32
  }
  func.func @transform_10(%arg0: i32, %arg1: i32) -> (i32, i32) {
    %c0_i32 = arith.constant 0 : i32
    %c0_i32_0 = arith.constant 0 : i32
    %c0_i32_1 = arith.constant 0 : i32
    return %c0_i32, %c0_i32_0 : i32, i32
  }
  func.func @transform_11(%arg0: i32, %arg1: i32) -> (i32, i32) {
    %c0_i32 = arith.constant 0 : i32
    %c0_i32_0 = arith.constant 0 : i32
    %c0_i32_1 = arith.constant 0 : i32
    return %c0_i32, %c0_i32_0 : i32, i32
  }
  func.func @transform_12(%arg0: i32, %arg1: i32) -> (i32, i32) {
    %c0_i32 = arith.constant 0 : i32
    %c0_i32_0 = arith.constant 0 : i32
    %c0_i32_1 = arith.constant 0 : i32
    return %c0_i32, %c0_i32_0 : i32, i32
  }
  func.func @transform_13(%arg0: i32, %arg1: i32) -> (i32, i32) {
    %c0_i32 = arith.constant 0 : i32
    %c0_i32_0 = arith.constant 0 : i32
    return %arg0, %c0_i32 : i32, i32
  }
  func.func @transform_14(%arg0: i32, %arg1: i32) -> (i32, i32, i32) {
    %c0_i32 = arith.constant 0 : i32
    %c0_i32_0 = arith.constant 0 : i32
    return %arg1, %arg0, %c0_i32 : i32, i32, i32
  }
  func.func @transform_15(%arg0: i32, %arg1: i32) -> (i32, i32, i32) {
    %c0_i32 = arith.constant 0 : i32
    %c0_i32_0 = arith.constant 0 : i32
    return %arg1, %arg0, %c0_i32 : i32, i32, i32
  }
}

</mosaic_0001>

<bundles_post_ra>
// kernel: tpu_custom_call.1
= control target key start
LH: loop header
LB: loop body
LE: loop exit
PB: predicated region body
PF: predicated region fallthrough
CT: control target
= control target key end

     0   :  { %22 = vsyncpa [#allocation7], 0  ;;  %s6353_s0 = inlined_call_operand.hbm [shape: bf16[8,2,128], index: 0, kind: input, shape index: {}]   ;;  %s6354_s1 = inlined_call_operand.vmem [shape: f32[2,128], index: 1, kind: input, shape index: {}]   ;;  %s6355_s2 = inlined_call_operand.vmem [shape: f32[2,1], index: 2, kind: input, shape index: {}]   ;;  %s6356_s3 = inlined_call_operand.hbm [shape: bf16[256,128], index: 3, kind: input, shape index: {}]   ;;  %s6357_s4 = inlined_call_operand.vmem [shape: f32[1,128], index: 4, kind: input, shape index: {}]   ;;  %s6358_s5 = inlined_call_operand.vmem [shape: f32[1,128], index: 5, kind: input, shape index: {}]   ;;  %s6359_s6 = inlined_call_operand.vmem [shape: f32[1,128], index: 6, kind: input, shape index: {}]   ;;  %s6360_s7 = inlined_call_operand.hbm [shape: bf16[128,128], index: 7, kind: input, shape index: {}]   ;;  %s6361_s8 = inlined_call_operand.vmem [shape: f32[1,128], index: 8, kind: input, shape index: {}]   ;;  %s6362_s9 = inlined_call_operand.hbm [shape: bf16[128,128], index: 9, kind: input, shape index: {}]   ;;  %s6363_s10 = inlined_call_operand.vmem [shape: f32[1,128], index: 10, kind: input, shape index: {}]   ;;  %s6364_s11 = inlined_call_operand.vmem [shape: f32[1,128], index: 11, kind: input, shape index: {}]   ;;  %s6365_s12 = inlined_call_operand.<no memory space> [shape: f32[1,1], index: 12, kind: input, shape index: {}]   ;;  %s6366_s13 = inlined_call_operand.hbm [shape: f32[2,128], index: 13, kind: output, shape index: {0}]   ;;  %s6367_s14 = inlined_call_operand.hbm [shape: f32[1,2,8], index: 14, kind: output, shape index: {1}]   ;;  %s6368_s15 = inlined_call_operand.hbm [shape: f32[1,2,8], index: 15, kind: output, shape index: {2}]  }
   0x1   :  { %23 = vsyncpa [#allocation10], 0 }
   0x2   :  { %24 = vsyncpa [#allocation13], 0 }
   0x3   :  { %25 = vsyncpa [#allocation8], 0 }
   0x4   :  { %26 = vsyncpa [#allocation16], 0  ;;  %s5746_s18 = smov [#allocation9]  }
   0x5   :  { %s48_s19 = sshll.u32 %s5746_s18, 4  ;;  %s49_s19 = int_to_ptr.vmem [resolvable:$true] %s48_s19 }
   0x6   :  { %s5604_s20 = scalar_lea.vmem %s49_s19, 2048  ;;  %p5609_p1 = scmp.lt.s32.totalorder %s49_s19, %s49_s19 }
   0x7   :  { %p5605_p0 = scmp.ne.s32.totalorder %s49_s19, %s5604_s20  ;;  %p5610_p2 = scmp.lt.s32.totalorder %s5604_s20, %s5604_s20 }
   0x9   :  { %p5611_p3 = por %p5610_p2, %p5609_p1 }
   0xb   :  { %p5612_p4 = pnand %p5611_p3, %p5605_p0 }
   0xd   :  { %5615 = shalt.err (!%p5612_p4)
}
   0xe   :  { %s5747_s21 = smov 64   ;;  %s5748_s22 = smov 4  }
   0xf   :  { %54 = dma.hbm_to_vmem [thread:$0]  %s6356_s3, 2048, %s49_s19, [#allocation10], %s5747_s21, %s5747_s21, %s5748_s22  }
  0x10   :  { %s5749_s25 = smov [#allocation6]  }
  0x11   :  { %s32_s26 = sshll.u32 %s5749_s25, 4  ;;  %s33_s26 = int_to_ptr.vmem [resolvable:$true] %s32_s26 }
  0x12   :  { %s5624_s27 = scalar_lea.vmem %s33_s26, 128  ;;  %p5629_p6 = scmp.lt.s32.totalorder %s33_s26, %s33_s26 }
  0x13   :  { %p5625_p5 = scmp.ne.s32.totalorder %s33_s26, %s5624_s27  ;;  %p5630_p7 = scmp.lt.s32.totalorder %s5624_s27, %s5624_s27 }
  0x15   :  { %p5631_p8 = por %p5630_p7, %p5629_p6 }
  0x17   :  { %p5632_p9 = pnand %p5631_p8, %p5625_p5 }
  0x19   :  { %5635 = shalt.err (!%p5632_p9)
}
  0x1a   :  { %s5750_s28 = smov 16   ;;  %s5751_s29 = smov 1  }
  0x1b   :  { %38 = dma.hbm_to_vmem [thread:$0]  %s6353_s0, 128, %s33_s26, [#allocation7], %s5750_s28, %s5750_s28, %s5751_s29  }
  0x1c   :  { %s5752_s17 = smov [#allocation11]   ;;  %s5753_s3 = smov [#allocation12]  }
  0x1d   :  { %s66_s18 = sshll.u32 %s5752_s17, 4  ;;  %s80_s19 = sshll.u32 %s5753_s3, 4  ;;  %s67_s18 = int_to_ptr.vmem [resolvable:$true] %s66_s18  ;;  %s81_s19 = int_to_ptr.vmem [resolvable:$true] %s80_s19 }
  0x1e   :  { %s5644_s20 = scalar_lea.vmem %s67_s18, 1024  ;;  %p5649_p11 = scmp.lt.s32.totalorder %s67_s18, %s67_s18 }
  0x1f   :  { %p5645_p10 = scmp.ne.s32.totalorder %s67_s18, %s5644_s20  ;;  %p5650_p12 = scmp.lt.s32.totalorder %s5644_s20, %s5644_s20 }
  0x21   :  { %p5651_p13 = por %p5650_p12, %p5649_p11 }
  0x23   :  { %p5652_p0 = pnand %p5651_p13, %p5645_p10 }
  0x25   :  { %5655 = shalt.err (!%p5652_p0)
}
  0x26   :  { %72 = dma.hbm_to_vmem [thread:$0]  %s6360_s7, 1024, %s67_s18, [#allocation10], %s5747_s21, %s5747_s21, %s5748_s22  }
  0x27   :  { %s5664_s0 = scalar_lea.vmem %s81_s19, 1024  ;;  %p5669_p2 = scmp.lt.s32.totalorder %s81_s19, %s81_s19 }
  0x28   :  { %p5665_p1 = scmp.ne.s32.totalorder %s81_s19, %s5664_s0  ;;  %p5670_p3 = scmp.lt.s32.totalorder %s5664_s0, %s5664_s0 }
  0x2a   :  { %p5671_p4 = por %p5670_p3, %p5669_p2 }
  0x2c   :  { %p5672_p5 = pnand %p5671_p4, %p5665_p1 }
  0x2e   :  { %5675 = shalt.err (!%p5672_p5)
}
  0x2f   :  { %86 = dma.hbm_to_vmem [thread:$0]  %s6362_s9, 1024, %s81_s19, [#allocation13], %s5747_s21, %s5747_s21, %s5748_s22  }
  0x30   :  { %5736 = dma.done.wait [#allocation7], 128  }
  0x31   :  { %5737 = vsyncadd [#allocation7], 4294967168 }
  0x32   :  { %5738 = dma.done.wait [#allocation10], 3072  }
  0x33   :  { %5739 = vsyncadd [#allocation10], 4294964224 }
  0x34   :  { %5740 = dma.done.wait [#allocation13], 1024  }
  0x35   :  { %5741 = vsyncadd [#allocation13], 4294966272  ;;  %v5243_v0 = vld [vmem:[#allocation9 + $0x78] sm:$0xff]   ;;  %v5245_v2 = vld [vmem:[#allocation9 + $0x70] sm:$0xff]   ;;  %v178_v8 = vlaneseq  ;;  %v5754_v20 = vmov 1966171168  }
  0x36   :  { %v5244_v1 = vld [vmem:[#allocation9 + $0x38] sm:$0xff]   ;;  %4584 = vmatprep.subr.bf16.mxu0 %v5243_v0  ;;  %v5246_v3 = vld [vmem:[#allocation9 + $0x30] sm:$0xff]   ;;  %v5247_v4 = vld [vmem:[#allocation9 + $0x68] sm:$0xff]   ;;  %v176_v21 = vunpack.c.l.s4 %v5754_v20  ;;  %vm327_vm0 = vcmask 1041408   ;;  %v5755_v44 = vmov 0.0   ;;  %vm5756_vm1 = vmmov 0  }
  0x37   :  { %4585 = vmatpush3.bf16.msra.mxu0 %v5244_v1  ;;  %v5248_v5 = vld [vmem:[#allocation9 + $0x28] sm:$0xff]   ;;  %v5249_v6 = vld [vmem:[#allocation9 + $0x60] sm:$0xff]   ;;  %v5251_v9 = vld [vmem:[#allocation9 + $0x58] sm:$0xff]   ;;  %v179_v12 = vshrl.u32 %v178_v8, 7  ;;  %4904 = vmatprep.subr.bf16.mxu1 %v5755_v44  ;;  %vm117_vm2 = vcmask 1024   ;;  %vm1140_vm3 = vcmask 9224  }
  0x38   :  { %4586 = vmatprep.subr.bf16.mxu0 %v5245_v2  ;;  %v5250_v7 = vld [vmem:[#allocation9 + $0x20] sm:$0xff]   ;;  %v5252_v10 = vld [vmem:[#allocation9 + $0x18] sm:$0xff]   ;;  %v5253_v11 = vld [vmem:[#allocation9 + $0x50] sm:$0xff]   ;;  %v177_v24 = vunpack.c.0.s8 %v176_v21  ;;  %4920 = vmatprep.mubr.msk.bf16.mxu1 %vm5756_vm1, %v5755_v44  ;;  %vm1653_vm4 = vcmask 17424   ;;  %vm2166_vm5 = vcmask 25624   ;;  %vm2679_vm6 = vcmask 33824  }
  0x39   :  { %v114_v13 = vld [vmem:[%s6354_s1] sm:$0x3]  ;;  %v124_v14 = vld [vmem:[#allocation6] sm:$0x1]  ;;  %v5255_v16 = vld [vmem:[#allocation9 + $0x48] sm:$0xff]   ;;  %vm3192_vm7 = vcmask 42024  }
  0x3a   :  { %v5254_v15 = vld [vmem:[#allocation9 + $0x10] sm:$0xff]   ;;  %115 = vst [vmem:[#allocation2] sm:$0x3] %v114_v13  ;;  %125 = vst [vmem:[#allocation4 + $0x1] sm:$0x1] %v124_v14  ;;  %v5256_v17 = vld [vmem:[#allocation9 + $0x8] sm:$0xff]   ;;  %v5870_v25 = vsub.s32 %v177_v24, %v179_v12 }
  0x3b   :  { %4587 = vmatpush3.bf16.msra.mxu0 %v5246_v3  ;;  %v5257_v18 = vld [vmem:[#allocation9 + $0x40] sm:$0xff]   ;;  %v5877_v32 = vld [vmem:[%s6357_s4] ss:$0 sm:$0xff]  ;;  %v5259_v43 = vld [vmem:[#allocation11 + $0x38] sm:$0xff]   ;;  %vm3705_vm8 = vcmask 50224   ;;  %s5759_s23 = smov 3  }
  0x3c   :  { %4588 = vmatprep.subr.bf16.mxu0 %v5247_v4  ;;  %v5258_v22 = vld [vmem:[#allocation9] sm:$0xff]   ;;  %4905 = vmatpush3.bf16.msra.mxu1 %v5259_v43  ;;  %v5260_v45 = vld [vmem:[#allocation11 + $0x30] sm:$0xff]   ;;  %v5261_v46 = vld [vmem:[#allocation11 + $0x28] sm:$0xff]   ;;  %s5760_s24 = smov 6  }
  0x3d   :  { %4906 = vmatprep.subr.bf16.mxu1 %v5755_v44  ;;  %v5262_v47 = vld [vmem:[#allocation11 + $0x20] sm:$0xff]   ;;  %v5263_v48 = vld [vmem:[#allocation11 + $0x18] sm:$0xff]   ;;  %v5264_v49 = vld [vmem:[#allocation11 + $0x10] sm:$0xff]  }
  0x3e   :  { %v5265_v50 = vld [vmem:[#allocation11 + $0x8] sm:$0xff]   ;;  %v5266_v51 = vld [vmem:[#allocation11] sm:$0xff]   ;;  %v5267_v52 = vld [vmem:[#allocation12 + $0x38] sm:$0xff]  }
  0x3f   :  { %4589 = vmatpush3.bf16.msra.mxu0 %v5248_v5  ;;  %v5268_v53 = vld [vmem:[#allocation12 + $0x30] sm:$0xff]   ;;  %v5272_v12 = vld [vmem:[#allocation9 + $0x38] sm:$0xff]   ;;  %v5279_v20 = vld [vmem:[#allocation12 + $0x8] sm:$0xff]  }
  0x40   :  { %4590 = vmatprep.subr.bf16.mxu0 %v5249_v6  ;;  %4907 = vmatpush3.bf16.msra.mxu1 %v5260_v45  ;;  %v5900_v58 = vld [vmem:[%s6358_s5] ss:$0 sm:$0xff]  ;;  %v5273_v13 = vld [vmem:[#allocation12 + $0x18] sm:$0xff]   ;;  %v5281_v21 = vld [vmem:[#allocation9 + $0x20] sm:$0xff]  }
  0x41   :  { %v119_v19 = vld [vmem:[#allocation2] sm:$0x3]  ;;  %4908 = vmatprep.subr.bf16.mxu1 %v5755_v44  ;;  %v5284_v24 = vld [vmem:[#allocation9 + $0x18] sm:$0xff]  }
  0x42   :  { %v122_v23 = vpack.c.bf16 %v119_v19, %v119_v19  ;;  %v5905_v60 = vld [vmem:[%s6359_s6] ss:$0 sm:$0xff]  ;;  %v5280_v19 = vld [vmem:[#allocation9 + $0x60] sm:$0xff]  }
  0x43   :  { %4591 = vmatpush3.bf16.msra.mxu0 %v5250_v7  ;;  %v5274_v14 = vld [vmem:[#allocation9 + $0x70] sm:$0xff]  }
  0x44   :  { %4592 = vmatprep.subr.bf16.mxu0 %v5251_v9  ;;  %123 = vst [vmem:[#allocation4] sm:$0x1] %v122_v23  ;;  %4909 = vmatpush3.bf16.msra.mxu1 %v5261_v46  ;;  %v5269_v9 = vld [vmem:[#allocation12 + $0x28] sm:$0xff]   ;;  %v5282_v23 = vld [vmem:[#allocation12] sm:$0xff]  }
  0x45   :  { %4910 = vmatprep.subr.bf16.mxu1 %v5755_v44 }
  0x47   :  { %4593 = vmatpush3.bf16.msra.mxu0 %v5252_v10  ;;  %v5270_v10 = vld [vmem:[#allocation12 + $0x20] sm:$0xff]  }
  0x48   :  { %4594 = vmatprep.subr.bf16.mxu0 %v5253_v11  ;;  %4911 = vmatpush3.bf16.msra.mxu1 %v5262_v47  ;;  %v5271_v11 = vld [vmem:[#allocation9 + $0x78] sm:$0xff]  }
  0x49   :  { %4912 = vmatprep.subr.bf16.mxu1 %v5755_v44 }
  0x4b   :  { %4595 = vmatpush3.bf16.msra.mxu0 %v5254_v15  ;;  %v4273_v26 = vld.sshfl [vmem:[#allocation4] sm:$0x11 pattern:$0x75316420] }
  0x4c   :  { %4596 = vmatprep.subr.bf16.mxu0 %v5255_v16  ;;  %v174_v27 = vcombine.high %v4273_v26, %v4273_v26  ;;  %v181_v28 = vrot.slane %v4273_v26, %v5870_v25  ;;  %4913 = vmatpush3.bf16.msra.mxu1 %v5263_v48  ;;  %v5275_v15 = vld [vmem:[#allocation9 + $0x30] sm:$0xff]   ;;  %v5277_v16 = vld [vmem:[#allocation9 + $0x68] sm:$0xff]   ;;  %v636_v26 = vld [vmem:[#allocation6 + $0x1] sm:$0x1] }
  0x4d   :  { %4914 = vmatprep.subr.bf16.mxu1 %v5755_v44  ;;  %637 = vst [vmem:[#allocation4 + $0x1] sm:$0x1] %v636_v26 }
  0x4e   :  { %v188_v29 = vrot.slane %v174_v27, %v5870_v25  ;;  %v5285_v27 = vld [vmem:[#allocation9 + $0x50] sm:$0xff]  }
  0x4f   :  { %4597 = vmatpush3.bf16.msra.mxu0 %v5256_v17  ;;  %v5276_v17 = vld [vmem:[#allocation12 + $0x10] sm:$0xff]  }
  0x50   :  { %4598 = vmatprep.subr.bf16.mxu0 %v5257_v18  ;;  %319 = vmatprep.mubr.bf16.mxu0 %v188_v29  ;;  %v5278_v18 = vld [vmem:[#allocation9 + $0x28] sm:$0xff]  }
  0x51   :  { %4915 = vmatpush3.bf16.msra.mxu1 %v5264_v49  ;;  %v5287_v29 = vld [vmem:[#allocation9 + $0x48] sm:$0xff]  }
  0x52   :  { %4916 = vmatprep.subr.bf16.mxu1 %v5755_v44 }
  0x53   :  { %4599 = vmatpush3.bf16.msra.mxu0 %v5258_v22  ;;  %v5283_v22 = vld [vmem:[#allocation9 + $0x58] sm:$0xff]  }
  0x54   :  { %4924 = vmatprep.subr.bf16.mxu0 %v5755_v44 }
  0x55   :  { %4917 = vmatpush3.bf16.msra.mxu1 %v5265_v50 }
  0x56   :  { %320 = vmatmul.mubr.bf16.vlgmr.msra.gmra.mxu0 %v181_v28  ;;  %4918 = vmatprep.subr.bf16.mxu1 %v5755_v44  ;;  %v5286_v28 = vld [vmem:[#allocation9 + $0x10] sm:$0xff]  }
  0x57   :  { %4940 = vmatprep.mubr.msk.bf16.mxu0 %vm5756_vm1, %v5755_v44  ;;  %4925 = vmatpush3.bf16.msra.mxu0 %v5267_v52 }
  0x58   :  { %4926 = vmatprep.subr.bf16.mxu0 %v5755_v44 }
  0x59   :  { %4919 = vmatpush3.bf16.msra.mxu1 %v5266_v51 }
  0x5a   :  { %4624 = vmatprep.subr.bf16.mxu1 %v5271_v11  ;;  %v5297_v11 = vld [vmem:[#allocation11 + $0x8] sm:$0xff]  }
  0x5b   :  { %4927 = vmatpush3.bf16.msra.mxu0 %v5268_v53 }
  0x5c   :  { %4928 = vmatprep.subr.bf16.mxu0 %v5755_v44 }
  0x5f   :  { %4929 = vmatpush3.bf16.msra.mxu0 %v5269_v9  ;;  %v5295_v9 = vld [vmem:[#allocation11 + $0x18] sm:$0xff]  }
  0x60   :  { %4930 = vmatprep.subr.bf16.mxu0 %v5755_v44 }
  0x63   :  { %4931 = vmatpush3.bf16.msra.mxu0 %v5270_v10  ;;  %v5296_v10 = vld [vmem:[#allocation11 + $0x10] sm:$0xff]  }
  0x64   :  { %4932 = vmatprep.subr.bf16.mxu0 %v5755_v44 }
  0x67   :  { %4933 = vmatpush3.bf16.msra.mxu0 %v5273_v13  ;;  %v5299_v13 = vld [vmem:[#allocation12 + $0x38] sm:$0xff]  }
  0x68   :  { %4934 = vmatprep.subr.bf16.mxu0 %v5755_v44 }
  0x6b   :  { %4935 = vmatpush3.bf16.msra.mxu0 %v5276_v17 }
  0x6c   :  { %4936 = vmatprep.subr.bf16.mxu0 %v5755_v44 }
  0x6f   :  { %4937 = vmatpush3.bf16.msra.mxu0 %v5279_v20 }
  0x70   :  { %4938 = vmatprep.subr.bf16.mxu0 %v5755_v44 }
  0x73   :  { %4939 = vmatpush3.bf16.msra.mxu0 %v5282_v23 }
  0x74   :  { %4944 = vmatprep.subr.bf16.mxu0 %v5755_v44 }
 0x116   :  { %v4600_v30 = vpop.f32.mrf.mxu0 }
 0x118   :  { %v4601_v31 = vpop.f32.mrf.mxu0 }
 0x119   :  { %v4602_v33 = vadd.f32 %v4601_v31, %v4600_v30  ;;  %v5288_v30 = vld [vmem:[#allocation9 + $0x8] sm:$0xff]   ;;  %v5289_v31 = vld [vmem:[#allocation9 + $0x40] sm:$0xff]  }
 0x11a   :  { %v4603_v34 = vpop.f32.mrf.mxu0 }
 0x11b   :  { %v322_v35 = vadd.f32 %v4602_v33, %v5877_v32  ;;  %v5290_v33 = vld [vmem:[#allocation9] sm:$0xff]   ;;  %v5919_v34 = vld [vmem:[%s6361_s8] ss:$0 sm:$0xff] }
 0x11c   :  { %v4604_v36 = vpop.f32.mrf.mxu0 }
 0x11d   :  { %v328_v37 = vsel %vm327_vm0, %v322_v35, 0.0 }
 0x11e   :  { %329 = vadd.xlane.f32.xlu0 %v328_v37  ;;  %v5595_v37 = vld [vmem:[#allocation2] sm:$0x3] }
 0x1a7   :  { %v330_v38 = vpop.xlane.xlu0 %329 }
 0x1a8   :  { %v332_v39 = vmul.f32 0.0078125, %v330_v38  ;;  %v479_v38 = vmul.f32 0.9, %v5595_v37  ;;  %v5303_v37 = vld [vmem:[#allocation9 + $0x78] sm:$0xff]  }
 0x1aa   :  { %v333_v40 = vsub.f32 %v322_v35, %v332_v39 }
 0x1ac   :  { %v334_v41 = vmul.f32 %v333_v40, %v333_v40 }
 0x1ae   :  { %v335_v42 = vsel %vm327_vm0, %v334_v41, 0.0 }
 0x1af   :  { %336 = vadd.xlane.f32.xlu0 %v335_v42 }
 0x238   :  { %v337_v54 = vpop.xlane.xlu0 %336 }
 0x239   :  { %v338_v55 = vmul.f32 0.0078125, %v337_v54 }
 0x23b   :  { %v339_v56 = vadd.f32 1e-05, %v338_v55 }
 0x23d   :  { %5499 = vrsqrt.f32 %v339_v56 }
 0x24a   :  { %v5500_v57 = vpop.eup %5499 }
 0x24b   :  { %v341_v59 = vmul.f32 %v5500_v57, %v333_v40 }
 0x24d   :  { %v349_v61 = vmul.f32 %v5900_v58, %v341_v59 }
 0x24f   :  { %v357_v62 = vadd.f32 %v5905_v60, %v349_v61 }
 0x251   :  { %v358_v63 = vpack.c.bf16 %v357_v62, %v357_v62 }
 0x253   :  { %v361_v0 = vmul.bf16 1027030327, %v358_v63  ;;  %v360_v2 = vmul.bf16 1061961548, %v358_v63  ;;  %v359_v6 = vmul.bf16 1056980736, %v358_v63 }
 0x255   :  { %v362_v1 = vmul.bf16 %v361_v0, %v358_v63 }
 0x257   :  { %v363_v3 = vadd.bf16 1065369472, %v362_v1 }
 0x259   :  { %v364_v4 = vmul.bf16 %v363_v3, %v360_v2 }
 0x25b   :  { %5501 = vtanh.bf16 %v364_v4 }
 0x269   :  { %v5502_v5 = vpop.eup %5501 }
 0x26a   :  { %v366_v7 = vadd.bf16 1065369472, %v5502_v5  ;;  %v5291_v5 = vld [vmem:[#allocation11 + $0x38] sm:$0xff]  }
 0x26c   :  { %v367_v8 = vmul.bf16 %v366_v7, %v359_v6  ;;  %v5292_v6 = vld [vmem:[#allocation11 + $0x30] sm:$0xff]   ;;  %v5293_v7 = vld [vmem:[#allocation11 + $0x28] sm:$0xff]  }
 0x26e   :  { %4921 = vmatmul.mubr.bf16.vlgmr.msra.gmra.mxu1 %v367_v8  ;;  %v5294_v8 = vld [vmem:[#allocation11 + $0x20] sm:$0xff]  }
 0x26f   :  { %4625 = vmatpush3.bf16.msra.mxu1 %v5272_v12  ;;  %v5298_v12 = vld [vmem:[#allocation11] sm:$0xff]  }
 0x270   :  { %4626 = vmatprep.subr.bf16.mxu1 %v5274_v14  ;;  %v5300_v14 = vld [vmem:[#allocation12 + $0x30] sm:$0xff]  }
 0x273   :  { %4627 = vmatpush3.bf16.msra.mxu1 %v5275_v15 }
 0x274   :  { %4628 = vmatprep.subr.bf16.mxu1 %v5277_v16 }
 0x277   :  { %4629 = vmatpush3.bf16.msra.mxu1 %v5278_v18 }
 0x278   :  { %4630 = vmatprep.subr.bf16.mxu1 %v5280_v19 }
 0x27b   :  { %4631 = vmatpush3.bf16.msra.mxu1 %v5281_v21 }
 0x27c   :  { %4632 = vmatprep.subr.bf16.mxu1 %v5283_v22 }
 0x27f   :  { %4633 = vmatpush3.bf16.msra.mxu1 %v5284_v24 }
 0x280   :  { %4634 = vmatprep.subr.bf16.mxu1 %v5285_v27 }
 0x283   :  { %4635 = vmatpush3.bf16.msra.mxu1 %v5286_v28 }
 0x284   :  { %4636 = vmatprep.subr.bf16.mxu1 %v5287_v29 }
 0x287   :  { %4637 = vmatpush3.bf16.msra.mxu1 %v5288_v30 }
 0x288   :  { %4638 = vmatprep.subr.bf16.mxu1 %v5289_v31 }
 0x28b   :  { %4639 = vmatpush3.bf16.msra.mxu1 %v5290_v33 }
 0x28c   :  { %4964 = vmatprep.subr.bf16.mxu1 %v5755_v44 }
 0x32e   :  { %v473_v35 = vpop.f32.mrf.mxu1 }
 0x32f   :  { %v474_v36 = vadd.f32 %v5919_v34, %v473_v35  ;;  %v5301_v35 = vld [vmem:[#allocation12 + $0x28] sm:$0xff]  }
 0x330   :  { %v4922_v39 = vpop.f32.mrf.mxu1 }
 0x331   :  { %v480_v40 = vmul.f32 0.1, %v474_v36  ;;  %v5302_v36 = vld [vmem:[#allocation12 + $0x20] sm:$0xff]   ;;  %v5305_v39 = vld [vmem:[#allocation12 + $0x18] sm:$0xff]  }
 0x332   :  { %v476_v41 = vpop.f32.mrf.mxu1 }
 0x333   :  { %v481_v42 = vadd.f32 %v480_v40, %v479_v38  ;;  %v5304_v38 = vld [vmem:[#allocation9 + $0x38] sm:$0xff]   ;;  %v5306_v40 = vld [vmem:[#allocation9 + $0x70] sm:$0xff]  }
 0x334   :  { %v4923_v43 = vpop.f32.mrf.mxu1  ;;  %v5307_v41 = vld [vmem:[#allocation9 + $0x30] sm:$0xff]  }
 0x335   :  { %5503 = vtanh.f32 %v481_v42  ;;  %v5309_v42 = vld [vmem:[#allocation9 + $0x68] sm:$0xff]   ;;  %v5308_v43 = vld [vmem:[#allocation12 + $0x10] sm:$0xff]  }
 0x342   :  { %v5922_v45 = vpop.eup %5503 }
 0x343   :  { %v483_v46 = vpack.c.bf16 %v5922_v45, %v5922_v45 }
 0x345   :  { %4941 = vmatmul.mubr.bf16.vlgmr.msra.gmra.mxu0 %v483_v46  ;;  %634 = vst [vmem:[#allocation4] sm:$0x1] %v483_v46  ;;  %v5310_v46 = vld [vmem:[#allocation9 + $0x28] sm:$0xff]  }
 0x346   :  { %4960 = vmatprep.mubr.msk.bf16.mxu0 %vm5756_vm1, %v5755_v44  ;;  %4945 = vmatpush3.bf16.msra.mxu0 %v5291_v5 }
 0x347   :  { %4946 = vmatprep.subr.bf16.mxu0 %v5755_v44 }
 0x34a   :  { %4947 = vmatpush3.bf16.msra.mxu0 %v5292_v6 }
 0x34b   :  { %4948 = vmatprep.subr.bf16.mxu0 %v5755_v44 }
 0x34c   :  { %v4312_v47 = vld.sshfl [vmem:[#allocation4] sm:$0x11 pattern:$0x75316420] }
 0x34d   :  { %v686_v48 = vcombine.high %v4312_v47, %v4312_v47  ;;  %v693_v50 = vrot.slane %v4312_v47, %v5870_v25  ;;  %v5312_v47 = vld [vmem:[#allocation9 + $0x60] sm:$0xff]  }
 0x34e   :  { %4949 = vmatpush3.bf16.msra.mxu0 %v5293_v7 }
 0x34f   :  { %v700_v49 = vrot.slane %v686_v48, %v5870_v25  ;;  %4950 = vmatprep.subr.bf16.mxu0 %v5755_v44  ;;  %v5311_v48 = vld [vmem:[#allocation12 + $0x8] sm:$0xff]  }
 0x351   :  { %831 = vmatprep.mubr.bf16.mxu1 %v700_v49  ;;  %v5313_v49 = vld [vmem:[#allocation9 + $0x20] sm:$0xff]  }
 0x352   :  { %832 = vmatmul.mubr.bf16.vlgmr.msra.gmra.mxu1 %v693_v50  ;;  %4951 = vmatpush3.bf16.msra.mxu0 %v5294_v8  ;;  %v5315_v50 = vld [vmem:[#allocation9 + $0x58] sm:$0xff]  }
 0x353   :  { %4980 = vmatprep.mubr.msk.bf16.mxu1 %vm5756_vm1, %v5755_v44  ;;  %4952 = vmatprep.subr.bf16.mxu0 %v5755_v44 }
 0x354   :  { %4965 = vmatpush3.bf16.msra.mxu1 %v5299_v13 }
 0x355   :  { %4966 = vmatprep.subr.bf16.mxu1 %v5755_v44 }
 0x356   :  { %4953 = vmatpush3.bf16.msra.mxu0 %v5295_v9 }
 0x357   :  { %4954 = vmatprep.subr.bf16.mxu0 %v5755_v44 }
 0x358   :  { %4967 = vmatpush3.bf16.msra.mxu1 %v5300_v14 }
 0x359   :  { %4968 = vmatprep.subr.bf16.mxu1 %v5755_v44 }
 0x35a   :  { %4955 = vmatpush3.bf16.msra.mxu0 %v5296_v10 }
 0x35b   :  { %4956 = vmatprep.subr.bf16.mxu0 %v5755_v44 }
 0x35c   :  { %4969 = vmatpush3.bf16.msra.mxu1 %v5301_v35  ;;  %v5328_v35 = vld [vmem:[#allocation11 + $0x10] sm:$0xff]  }
 0x35d   :  { %4970 = vmatprep.subr.bf16.mxu1 %v5755_v44 }
 0x35e   :  { %4957 = vmatpush3.bf16.msra.mxu0 %v5297_v11 }
 0x35f   :  { %4958 = vmatprep.subr.bf16.mxu0 %v5755_v44 }
 0x360   :  { %4971 = vmatpush3.bf16.msra.mxu1 %v5302_v36  ;;  %v5329_v36 = vld [vmem:[#allocation11 + $0x8] sm:$0xff]  }
 0x361   :  { %4972 = vmatprep.subr.bf16.mxu1 %v5755_v44 }
 0x362   :  { %4959 = vmatpush3.bf16.msra.mxu0 %v5298_v12 }
 0x363   :  { %4664 = vmatprep.subr.bf16.mxu0 %v5303_v37  ;;  %v5330_v37 = vld [vmem:[#allocation11] sm:$0xff]  }
 0x364   :  { %4973 = vmatpush3.bf16.msra.mxu1 %v5305_v39  ;;  %v5332_v39 = vld [vmem:[#allocation12 + $0x30] sm:$0xff]  }
 0x365   :  { %4974 = vmatprep.subr.bf16.mxu1 %v5755_v44 }
 0x368   :  { %4975 = vmatpush3.bf16.msra.mxu1 %v5308_v43 }
 0x369   :  { %4976 = vmatprep.subr.bf16.mxu1 %v5755_v44 }
 0x36c   :  { %4977 = vmatpush3.bf16.msra.mxu1 %v5311_v48 }
 0x36d   :  { %4978 = vmatprep.subr.bf16.mxu1 %v5755_v44 }
 0x405   :  { %v5932_v51 = vpop.f32.mrf.mxu0 }
 0x407   :  { %v4942_v52 = vpop.f32.mrf.mxu0 }
 0x408   :  { %v5314_v52 = vld [vmem:[#allocation12] sm:$0xff]  }
 0x409   :  { %v592_v53 = vpop.f32.mrf.mxu0  ;;  %4979 = vmatpush3.bf16.msra.mxu1 %v5314_v52 }
 0x40a   :  { %v5316_v53 = vld [vmem:[#allocation9 + $0x18] sm:$0xff]   ;;  %4984 = vmatprep.subr.bf16.mxu1 %v5755_v44 }
 0x40b   :  { %v4943_v54 = vpop.f32.mrf.mxu0 }
 0x40c   :  { %v5317_v54 = vld [vmem:[#allocation9 + $0x50] sm:$0xff]  }
 0x412   :  { %v4640_v55 = vpop.f32.mrf.mxu1 }
 0x414   :  { %v4641_v56 = vpop.f32.mrf.mxu1 }
 0x415   :  { %v4642_v57 = vadd.f32 %v4641_v56, %v4640_v55  ;;  %v1149_v55 = vld [vmem:[#allocation6 + $0x2] sm:$0x1]  ;;  %v5318_v56 = vld [vmem:[#allocation9 + $0x10] sm:$0xff]  }
 0x416   :  { %v4643_v59 = vpop.f32.mrf.mxu1  ;;  %1150 = vst [vmem:[#allocation4 + $0x1] sm:$0x1] %v1149_v55 }
 0x417   :  { %v834_v61 = vadd.f32 %v4642_v57, %v5877_v32  ;;  %v5319_v57 = vld [vmem:[#allocation9 + $0x48] sm:$0xff]  }
 0x418   :  { %v4644_v62 = vpop.f32.mrf.mxu1  ;;  %v5320_v59 = vld [vmem:[#allocation9 + $0x8] sm:$0xff]  }
 0x419   :  { %v839_v63 = vsel %vm327_vm0, %v834_v61, 0.0  ;;  %v5322_v62 = vld [vmem:[#allocation9] sm:$0xff]  }
 0x41a   :  { %840 = vadd.xlane.f32.xlu1 %v839_v63 }
 0x4a3   :  { %v841_v0 = vpop.xlane.xlu1 %840 }
 0x4a4   :  { %v842_v1 = vmul.f32 0.0078125, %v841_v0 }
 0x4a6   :  { %v843_v2 = vsub.f32 %v834_v61, %v842_v1  ;;  %v5321_v61 = vld [vmem:[#allocation9 + $0x40] sm:$0xff]  }
 0x4a8   :  { %v844_v3 = vmul.f32 %v843_v2, %v843_v2 }
 0x4aa   :  { %v845_v4 = vsel %vm327_vm0, %v844_v3, 0.0 }
 0x4ab   :  { %846 = vadd.xlane.f32.xlu1 %v845_v4 }
 0x534   :  { %v847_v15 = vpop.xlane.xlu1 %846 }
 0x535   :  { %v848_v16 = vmul.f32 0.0078125, %v847_v15 }
 0x537   :  { %v849_v17 = vadd.f32 1e-05, %v848_v16 }
 0x539   :  { %5505 = vrsqrt.f32 %v849_v17 }
 0x546   :  { %v5506_v18 = vpop.eup %5505 }
 0x547   :  { %v851_v19 = vmul.f32 %v5506_v18, %v843_v2  ;;  %v989_v2 = vmul.f32 0.9, %v5922_v45 }
 0x549   :  { %v859_v20 = vmul.f32 %v5900_v58, %v851_v19 }
 0x54b   :  { %v867_v21 = vadd.f32 %v5905_v60, %v859_v20 }
 0x54d   :  { %v868_v22 = vpack.c.bf16 %v867_v21, %v867_v21 }
 0x54f   :  { %v871_v23 = vmul.bf16 1027030327, %v868_v22  ;;  %v870_v26 = vmul.bf16 1061961548, %v868_v22  ;;  %v869_v30 = vmul.bf16 1056980736, %v868_v22 }
 0x551   :  { %v872_v24 = vmul.bf16 %v871_v23, %v868_v22 }
 0x553   :  { %v873_v27 = vadd.bf16 1065369472, %v872_v24 }
 0x555   :  { %v874_v28 = vmul.bf16 %v873_v27, %v870_v26 }
 0x557   :  { %5507 = vtanh.bf16 %v874_v28 }
 0x565   :  { %v5508_v29 = vpop.eup %5507 }
 0x566   :  { %v876_v31 = vadd.bf16 1065369472, %v5508_v29  ;;  %v5323_v29 = vld [vmem:[#allocation11 + $0x38] sm:$0xff]  }
 0x568   :  { %v877_v33 = vmul.bf16 %v876_v31, %v869_v30  ;;  %v5324_v30 = vld [vmem:[#allocation11 + $0x30] sm:$0xff]   ;;  %v5325_v31 = vld [vmem:[#allocation11 + $0x28] sm:$0xff]  }
 0x56a   :  { %4961 = vmatmul.mubr.bf16.vlgmr.msra.gmra.mxu0 %v877_v33  ;;  %v5327_v33 = vld [vmem:[#allocation11 + $0x18] sm:$0xff]  }
 0x56b   :  { %4665 = vmatpush3.bf16.msra.mxu0 %v5304_v38  ;;  %v5331_v38 = vld [vmem:[#allocation12 + $0x38] sm:$0xff]  }
 0x56c   :  { %4666 = vmatprep.subr.bf16.mxu0 %v5306_v40 }
 0x56f   :  { %4667 = vmatpush3.bf16.msra.mxu0 %v5307_v41 }
 0x570   :  { %4668 = vmatprep.subr.bf16.mxu0 %v5309_v42 }
 0x573   :  { %4669 = vmatpush3.bf16.msra.mxu0 %v5310_v46 }
 0x574   :  { %4670 = vmatprep.subr.bf16.mxu0 %v5312_v47 }
 0x577   :  { %4671 = vmatpush3.bf16.msra.mxu0 %v5313_v49 }
 0x578   :  { %4672 = vmatprep.subr.bf16.mxu0 %v5315_v50 }
 0x57b   :  { %4673 = vmatpush3.bf16.msra.mxu0 %v5316_v53 }
 0x57c   :  { %4674 = vmatprep.subr.bf16.mxu0 %v5317_v54 }
 0x57f   :  { %4675 = vmatpush3.bf16.msra.mxu0 %v5318_v56 }
 0x580   :  { %4676 = vmatprep.subr.bf16.mxu0 %v5319_v57 }
 0x583   :  { %4677 = vmatpush3.bf16.msra.mxu0 %v5320_v59 }
 0x584   :  { %4678 = vmatprep.subr.bf16.mxu0 %v5321_v61 }
 0x587   :  { %4679 = vmatpush3.bf16.msra.mxu0 %v5322_v62  ;;  %v5333_v62 = vld [vmem:[#allocation12 + $0x28] sm:$0xff]  }
 0x588   :  { %5004 = vmatprep.subr.bf16.mxu0 %v5755_v44 }
 0x62a   :  { %v983_v63 = vpop.f32.mrf.mxu0 }
 0x62b   :  { %v984_v0 = vadd.f32 %v5919_v34, %v983_v63  ;;  %v5334_v63 = vld [vmem:[#allocation12 + $0x20] sm:$0xff]  }
 0x62c   :  { %v4962_v1 = vpop.f32.mrf.mxu0 }
 0x62d   :  { %v990_v3 = vmul.f32 0.1, %v984_v0  ;;  %v5336_v0 = vld [vmem:[#allocation9 + $0x38] sm:$0xff]   ;;  %v5338_v1 = vld [vmem:[#allocation9 + $0x70] sm:$0xff]  }
 0x62e   :  { %v986_v4 = vpop.f32.mrf.mxu0 }
 0x62f   :  { %v991_v5 = vadd.f32 %v990_v3, %v989_v2  ;;  %v5339_v2 = vld [vmem:[#allocation9 + $0x30] sm:$0xff]   ;;  %v5341_v3 = vld [vmem:[#allocation9 + $0x68] sm:$0xff]  }
 0x630   :  { %v4963_v6 = vpop.f32.mrf.mxu0  ;;  %v5340_v4 = vld [vmem:[#allocation12 + $0x10] sm:$0xff]  }
 0x631   :  { %5509 = vtanh.f32 %v991_v5  ;;  %v5342_v5 = vld [vmem:[#allocation9 + $0x28] sm:$0xff]   ;;  %v5344_v6 = vld [vmem:[#allocation9 + $0x60] sm:$0xff]  }
 0x63e   :  { %v5957_v7 = vpop.eup %5509 }
 0x63f   :  { %v993_v8 = vpack.c.bf16 %v5957_v7, %v5957_v7 }
 0x641   :  { %4981 = vmatmul.mubr.bf16.vlgmr.msra.gmra.mxu1 %v993_v8  ;;  %1147 = vst [vmem:[#allocation4] sm:$0x1] %v993_v8  ;;  %v5343_v8 = vld [vmem:[#allocation12 + $0x8] sm:$0xff]  }
 0x642   :  { %5000 = vmatprep.mubr.msk.bf16.mxu1 %vm5756_vm1, %v5755_v44  ;;  %4985 = vmatpush3.bf16.msra.mxu1 %v5323_v29 }
 0x643   :  { %4986 = vmatprep.subr.bf16.mxu1 %v5755_v44 }
 0x646   :  { %4987 = vmatpush3.bf16.msra.mxu1 %v5324_v30 }
 0x647   :  { %4988 = vmatprep.subr.bf16.mxu1 %v5755_v44 }
 0x648   :  { %v4351_v9 = vld.sshfl [vmem:[#allocation4] sm:$0x11 pattern:$0x75316420] }
 0x649   :  { %v1199_v10 = vcombine.high %v4351_v9, %v4351_v9  ;;  %v1206_v45 = vrot.slane %v4351_v9, %v5870_v25  ;;  %v5345_v9 = vld [vmem:[#allocation9 + $0x20] sm:$0xff]  }
 0x64a   :  { %4989 = vmatpush3.bf16.msra.mxu1 %v5325_v31 }
 0x64b   :  { %v1213_v11 = vrot.slane %v1199_v10, %v5870_v25  ;;  %4990 = vmatprep.subr.bf16.mxu1 %v5755_v44  ;;  %v5347_v10 = vld [vmem:[#allocation9 + $0x58] sm:$0xff]  }
 0x64d   :  { %1344 = vmatprep.mubr.bf16.mxu0 %v1213_v11  ;;  %v5346_v11 = vld [vmem:[#allocation12] sm:$0xff]  }
 0x64e   :  { %1345 = vmatmul.mubr.bf16.vlgmr.msra.gmra.mxu0 %v1206_v45  ;;  %v5348_v45 = vld [vmem:[#allocation9 + $0x18] sm:$0xff]  }
 0x64f   :  { %5020 = vmatprep.mubr.msk.bf16.mxu0 %vm5756_vm1, %v5755_v44  ;;  %5005 = vmatpush3.bf16.msra.mxu0 %v5331_v38 }
 0x650   :  { %5006 = vmatprep.subr.bf16.mxu0 %v5755_v44 }
 0x653   :  { %5007 = vmatpush3.bf16.msra.mxu0 %v5332_v39 }
 0x654   :  { %5008 = vmatprep.subr.bf16.mxu0 %v5755_v44 }
 0x657   :  { %5009 = vmatpush3.bf16.msra.mxu0 %v5333_v62  ;;  %v5361_v62 = vld [vmem:[#allocation11 + $0x8] sm:$0xff]  }
 0x658   :  { %5010 = vmatprep.subr.bf16.mxu0 %v5755_v44 }
 0x65b   :  { %5011 = vmatpush3.bf16.msra.mxu0 %v5334_v63  ;;  %v5362_v63 = vld [vmem:[#allocation11] sm:$0xff]  }
 0x65c   :  { %5012 = vmatprep.subr.bf16.mxu0 %v5755_v44 }
 0x701   :  { %v5967_v12 = vpop.f32.mrf.mxu1 }
 0x703   :  { %v4982_v13 = vpop.f32.mrf.mxu1 }
 0x704   :  { %v5349_v13 = vld [vmem:[#allocation9 + $0x50] sm:$0xff]  }
 0x705   :  { %v1102_v14 = vpop.f32.mrf.mxu1 }
 0x706   :  { %v1662_v14 = vld [vmem:[#allocation6 + $0x3] sm:$0x1] }
 0x707   :  { %v4983_v15 = vpop.f32.mrf.mxu1  ;;  %1663 = vst [vmem:[#allocation4 + $0x1] sm:$0x1] %v1662_v14 }
 0x708   :  { %v5350_v15 = vld [vmem:[#allocation9 + $0x10] sm:$0xff]  }
 0x70e   :  { %v4680_v16 = vpop.f32.mrf.mxu0 }
 0x710   :  { %v4681_v17 = vpop.f32.mrf.mxu0 }
 0x711   :  { %v4682_v18 = vadd.f32 %v4681_v17, %v4680_v16  ;;  %v5351_v16 = vld [vmem:[#allocation9 + $0x48] sm:$0xff]  }
 0x712   :  { %v4683_v19 = vpop.f32.mrf.mxu0  ;;  %v5352_v17 = vld [vmem:[#allocation9 + $0x8] sm:$0xff]  }
 0x713   :  { %v1347_v20 = vadd.f32 %v4682_v18, %v5877_v32  ;;  %v5326_v32 = vld [vmem:[#allocation11 + $0x20] sm:$0xff]  }
 0x714   :  { %v4684_v21 = vpop.f32.mrf.mxu0  ;;  %4991 = vmatpush3.bf16.msra.mxu1 %v5326_v32  ;;  %v5353_v18 = vld [vmem:[#allocation9 + $0x40] sm:$0xff]  }
 0x715   :  { %v1352_v22 = vsel %vm327_vm0, %v1347_v20, 0.0  ;;  %4992 = vmatprep.subr.bf16.mxu1 %v5755_v44  ;;  %v5354_v19 = vld [vmem:[#allocation9] sm:$0xff]  }
 0x716   :  { %1353 = vadd.xlane.f32.xlu0 %v1352_v22 }
 0x718   :  { %4993 = vmatpush3.bf16.msra.mxu1 %v5327_v33 }
 0x719   :  { %4994 = vmatprep.subr.bf16.mxu1 %v5755_v44 }
 0x71c   :  { %4995 = vmatpush3.bf16.msra.mxu1 %v5328_v35 }
 0x71d   :  { %4996 = vmatprep.subr.bf16.mxu1 %v5755_v44 }
 0x720   :  { %4997 = vmatpush3.bf16.msra.mxu1 %v5329_v36 }
 0x721   :  { %4998 = vmatprep.subr.bf16.mxu1 %v5755_v44 }
 0x724   :  { %4999 = vmatpush3.bf16.msra.mxu1 %v5330_v37 }
 0x79f   :  { %v1354_v23 = vpop.xlane.xlu0 %1353 }
 0x7a0   :  { %v1355_v24 = vmul.f32 0.0078125, %v1354_v23  ;;  %v1502_v23 = vmul.f32 0.9, %v5957_v7 }
 0x7a2   :  { %v1356_v26 = vsub.f32 %v1347_v20, %v1355_v24 }
 0x7a4   :  { %v1357_v27 = vmul.f32 %v1356_v26, %v1356_v26 }
 0x7a6   :  { %v1358_v28 = vsel %vm327_vm0, %v1357_v27, 0.0 }
 0x7a7   :  { %1359 = vadd.xlane.f32.xlu1 %v1358_v28 }
 0x830   :  { %v1360_v40 = vpop.xlane.xlu1 %1359 }
 0x831   :  { %v1361_v41 = vmul.f32 0.0078125, %v1360_v40  ;;  %v6007_v40 = vld [vmem:[%s6357_s4] ss:$0 sm:$0xff] }
 0x833   :  { %v1362_v42 = vadd.f32 1e-05, %v1361_v41 }
 0x835   :  { %5511 = vrsqrt.f32 %v1362_v42 }
 0x842   :  { %v5512_v43 = vpop.eup %5511 }
 0x843   :  { %v1364_v46 = vmul.f32 %v5512_v43, %v1356_v26 }
 0x845   :  { %v1372_v47 = vmul.f32 %v5900_v58, %v1364_v46  ;;  %v5335_v58 = vld [vmem:[#allocation9 + $0x78] sm:$0xff]  }
 0x846   :  { %4704 = vmatprep.subr.bf16.mxu1 %v5335_v58  ;;  %v5363_v58 = vld [vmem:[#allocation12 + $0x38] sm:$0xff]  }
 0x847   :  { %v1380_v48 = vadd.f32 %v5905_v60, %v1372_v47  ;;  %v5337_v60 = vld [vmem:[#allocation12 + $0x18] sm:$0xff]  }
 0x848   :  { %5013 = vmatpush3.bf16.msra.mxu0 %v5337_v60 }
 0x849   :  { %v1381_v49 = vpack.c.bf16 %v1380_v48, %v1380_v48  ;;  %5014 = vmatprep.subr.bf16.mxu0 %v5755_v44 }
 0x84b   :  { %v1384_v50 = vmul.bf16 1027030327, %v1381_v49  ;;  %v1383_v53 = vmul.bf16 1061961548, %v1381_v49  ;;  %v1382_v57 = vmul.bf16 1056980736, %v1381_v49 }
 0x84c   :  { %5015 = vmatpush3.bf16.msra.mxu0 %v5340_v4  ;;  %v6024_v4 = vld [vmem:[%s6358_s5] ss:$0 sm:$0xff] }
 0x84d   :  { %v1385_v52 = vmul.bf16 %v1384_v50, %v1381_v49  ;;  %5016 = vmatprep.subr.bf16.mxu0 %v5755_v44 }
 0x84f   :  { %v1386_v54 = vadd.bf16 1065369472, %v1385_v52 }
 0x850   :  { %5017 = vmatpush3.bf16.msra.mxu0 %v5343_v8 }
 0x851   :  { %v1387_v55 = vmul.bf16 %v1386_v54, %v1383_v53  ;;  %5018 = vmatprep.subr.bf16.mxu0 %v5755_v44  ;;  %v5355_v54 = vld [vmem:[#allocation11 + $0x38] sm:$0xff]  }
 0x853   :  { %5513 = vtanh.bf16 %v1387_v55  ;;  %v5356_v55 = vld [vmem:[#allocation11 + $0x30] sm:$0xff]  }
 0x854   :  { %5019 = vmatpush3.bf16.msra.mxu0 %v5346_v11 }
 0x855   :  { %5024 = vmatprep.subr.bf16.mxu0 %v5755_v44 }
 0x861   :  { %v5514_v56 = vpop.eup %5513 }
 0x862   :  { %v1389_v59 = vadd.bf16 1065369472, %v5514_v56  ;;  %v5357_v56 = vld [vmem:[#allocation11 + $0x28] sm:$0xff]  }
 0x864   :  { %v1390_v61 = vmul.bf16 %v1389_v59, %v1382_v57  ;;  %v5358_v57 = vld [vmem:[#allocation11 + $0x20] sm:$0xff]   ;;  %v5359_v59 = vld [vmem:[#allocation11 + $0x18] sm:$0xff]  }
 0x866   :  { %5001 = vmatmul.mubr.bf16.vlgmr.msra.gmra.mxu1 %v1390_v61  ;;  %v5360_v61 = vld [vmem:[#allocation11 + $0x10] sm:$0xff]  }
 0x867   :  { %4705 = vmatpush3.bf16.msra.mxu1 %v5336_v0  ;;  %v5364_v0 = vld [vmem:[#allocation12 + $0x30] sm:$0xff]  }
 0x868   :  { %4706 = vmatprep.subr.bf16.mxu1 %v5338_v1 }
 0x86b   :  { %4707 = vmatpush3.bf16.msra.mxu1 %v5339_v2 }
 0x86c   :  { %4708 = vmatprep.subr.bf16.mxu1 %v5341_v3 }
 0x86f   :  { %4709 = vmatpush3.bf16.msra.mxu1 %v5342_v5 }
 0x870   :  { %4710 = vmatprep.subr.bf16.mxu1 %v5344_v6  ;;  %v6029_v6 = vld [vmem:[%s6359_s6] ss:$0 sm:$0xff] }
 0x873   :  { %4711 = vmatpush3.bf16.msra.mxu1 %v5345_v9 }
 0x874   :  { %4712 = vmatprep.subr.bf16.mxu1 %v5347_v10 }
 0x877   :  { %4713 = vmatpush3.bf16.msra.mxu1 %v5348_v45 }
 0x878   :  { %4714 = vmatprep.subr.bf16.mxu1 %v5349_v13 }
 0x87b   :  { %4715 = vmatpush3.bf16.msra.mxu1 %v5350_v15 }
 0x87c   :  { %4716 = vmatprep.subr.bf16.mxu1 %v5351_v16 }
 0x87f   :  { %4717 = vmatpush3.bf16.msra.mxu1 %v5352_v17 }
 0x880   :  { %4718 = vmatprep.subr.bf16.mxu1 %v5353_v18 }
 0x883   :  { %4719 = vmatpush3.bf16.msra.mxu1 %v5354_v19 }
 0x884   :  { %5044 = vmatprep.subr.bf16.mxu1 %v5755_v44 }
 0x926   :  { %v1496_v20 = vpop.f32.mrf.mxu1 }
 0x927   :  { %v1497_v21 = vadd.f32 %v5919_v34, %v1496_v20  ;;  %v5365_v20 = vld [vmem:[#allocation12 + $0x28] sm:$0xff]  }
 0x928   :  { %v5002_v22 = vpop.f32.mrf.mxu1 }
 0x929   :  { %v1503_v24 = vmul.f32 0.1, %v1497_v21  ;;  %v5366_v21 = vld [vmem:[#allocation12 + $0x20] sm:$0xff]   ;;  %v5367_v22 = vld [vmem:[#allocation9 + $0x78] sm:$0xff]  }
 0x92a   :  { %v1499_v26 = vpop.f32.mrf.mxu1 }
 0x92b   :  { %v1504_v27 = vadd.f32 %v1503_v24, %v1502_v23  ;;  %v5368_v23 = vld [vmem:[#allocation9 + $0x38] sm:$0xff]   ;;  %v5370_v26 = vld [vmem:[#allocation9 + $0x70] sm:$0xff]  }
 0x92c   :  { %v5003_v28 = vpop.f32.mrf.mxu1  ;;  %v5369_v24 = vld [vmem:[#allocation12 + $0x18] sm:$0xff]  }
 0x92d   :  { %5515 = vtanh.f32 %v1504_v27  ;;  %v5371_v27 = vld [vmem:[#allocation9 + $0x30] sm:$0xff]   ;;  %v5373_v28 = vld [vmem:[#allocation9 + $0x68] sm:$0xff]  }
 0x93a   :  { %v5992_v29 = vpop.eup %5515 }
 0x93b   :  { %v1506_v30 = vpack.c.bf16 %v5992_v29, %v5992_v29 }
 0x93d   :  { %5021 = vmatmul.mubr.bf16.vlgmr.msra.gmra.mxu0 %v1506_v30  ;;  %1660 = vst [vmem:[#allocation4] sm:$0x1] %v1506_v30  ;;  %v5372_v30 = vld [vmem:[#allocation12 + $0x10] sm:$0xff]  }
 0x93e   :  { %5040 = vmatprep.mubr.msk.bf16.mxu0 %vm5756_vm1, %v5755_v44  ;;  %5025 = vmatpush3.bf16.msra.mxu0 %v5355_v54 }
 0x93f   :  { %5026 = vmatprep.subr.bf16.mxu0 %v5755_v44 }
 0x942   :  { %5027 = vmatpush3.bf16.msra.mxu0 %v5356_v55 }
 0x943   :  { %5028 = vmatprep.subr.bf16.mxu0 %v5755_v44 }
 0x944   :  { %v4390_v31 = vld.sshfl [vmem:[#allocation4] sm:$0x11 pattern:$0x75316420] }
 0x945   :  { %v1712_v34 = vcombine.high %v4390_v31, %v4390_v31  ;;  %v1719_v7 = vrot.slane %v4390_v31, %v5870_v25  ;;  %v5374_v31 = vld [vmem:[#allocation9 + $0x28] sm:$0xff]  }
 0x946   :  { %5029 = vmatpush3.bf16.msra.mxu0 %v5357_v56 }
 0x947   :  { %v1726_v32 = vrot.slane %v1712_v34, %v5870_v25  ;;  %5030 = vmatprep.subr.bf16.mxu0 %v5755_v44  ;;  %v5376_v34 = vld [vmem:[#allocation9 + $0x60] sm:$0xff]  }
 0x949   :  { %1857 = vmatprep.mubr.bf16.mxu1 %v1726_v32  ;;  %v5375_v32 = vld [vmem:[#allocation12 + $0x8] sm:$0xff]  }
 0x94a   :  { %1858 = vmatmul.mubr.bf16.vlgmr.msra.gmra.mxu1 %v1719_v7  ;;  %5031 = vmatpush3.bf16.msra.mxu0 %v5358_v57  ;;  %v5377_v7 = vld [vmem:[#allocation9 + $0x20] sm:$0xff]  }
 0x94b   :  { %5060 = vmatprep.mubr.msk.bf16.mxu1 %vm5756_vm1, %v5755_v44  ;;  %5032 = vmatprep.subr.bf16.mxu0 %v5755_v44 }
 0x94c   :  { %5045 = vmatpush3.bf16.msra.mxu1 %v5363_v58 }
 0x94d   :  { %5046 = vmatprep.subr.bf16.mxu1 %v5755_v44 }
 0x94e   :  { %5033 = vmatpush3.bf16.msra.mxu0 %v5359_v59 }
 0x94f   :  { %5034 = vmatprep.subr.bf16.mxu0 %v5755_v44 }
 0x950   :  { %5047 = vmatpush3.bf16.msra.mxu1 %v5364_v0 }
 0x951   :  { %5048 = vmatprep.subr.bf16.mxu1 %v5755_v44 }
 0x952   :  { %5035 = vmatpush3.bf16.msra.mxu0 %v5360_v61 }
 0x953   :  { %5036 = vmatprep.subr.bf16.mxu0 %v5755_v44 }
 0x954   :  { %5049 = vmatpush3.bf16.msra.mxu1 %v5365_v20  ;;  %v5388_v20 = vld [vmem:[#allocation11 + $0x30] sm:$0xff]  }
 0x955   :  { %5050 = vmatprep.subr.bf16.mxu1 %v5755_v44 }
 0x956   :  { %5037 = vmatpush3.bf16.msra.mxu0 %v5361_v62  ;;  %v2688_v62 = vld [vmem:[#allocation6 + $0x5] sm:$0x1] }
 0x957   :  { %5038 = vmatprep.subr.bf16.mxu0 %v5755_v44 }
 0x958   :  { %5051 = vmatpush3.bf16.msra.mxu1 %v5366_v21  ;;  %v5389_v21 = vld [vmem:[#allocation11 + $0x28] sm:$0xff]  }
 0x959   :  { %5052 = vmatprep.subr.bf16.mxu1 %v5755_v44 }
 0x95a   :  { %5039 = vmatpush3.bf16.msra.mxu0 %v5362_v63 }
 0x95b   :  { %4744 = vmatprep.subr.bf16.mxu0 %v5367_v22  ;;  %v5390_v22 = vld [vmem:[#allocation11 + $0x20] sm:$0xff]  }
 0x95c   :  { %5053 = vmatpush3.bf16.msra.mxu1 %v5369_v24  ;;  %v5392_v24 = vld [vmem:[#allocation11 + $0x10] sm:$0xff]  }
 0x95d   :  { %5054 = vmatprep.subr.bf16.mxu1 %v5755_v44 }
 0x960   :  { %5055 = vmatpush3.bf16.msra.mxu1 %v5372_v30  ;;  %v5396_v30 = vld [vmem:[#allocation12 + $0x30] sm:$0xff]  }
 0x961   :  { %5056 = vmatprep.subr.bf16.mxu1 %v5755_v44 }
 0x964   :  { %5057 = vmatpush3.bf16.msra.mxu1 %v5375_v32 }
 0x965   :  { %5058 = vmatprep.subr.bf16.mxu1 %v5755_v44 }
 0x9fd   :  { %v6002_v33 = vpop.f32.mrf.mxu0 }
 0x9ff   :  { %v5022_v35 = vpop.f32.mrf.mxu0 }
 0xa00   :  { %v5379_v35 = vld [vmem:[#allocation9 + $0x58] sm:$0xff]  }
 0xa01   :  { %v1615_v36 = vpop.f32.mrf.mxu0 }
 0xa02   :  { %v5378_v36 = vld [vmem:[#allocation12] sm:$0xff]  }
 0xa03   :  { %v5023_v37 = vpop.f32.mrf.mxu0  ;;  %5059 = vmatpush3.bf16.msra.mxu1 %v5378_v36 }
 0xa04   :  { %v5380_v37 = vld [vmem:[#allocation9 + $0x18] sm:$0xff]   ;;  %5064 = vmatprep.subr.bf16.mxu1 %v5755_v44 }
 0xa0a   :  { %v4720_v38 = vpop.f32.mrf.mxu1 }
 0xa0c   :  { %v4721_v39 = vpop.f32.mrf.mxu1 }
 0xa0d   :  { %v4722_v41 = vadd.f32 %v4721_v39, %v4720_v38  ;;  %v5381_v38 = vld [vmem:[#allocation9 + $0x50] sm:$0xff]   ;;  %v2175_v39 = vld [vmem:[#allocation6 + $0x4] sm:$0x1] }
 0xa0e   :  { %v4723_v42 = vpop.f32.mrf.mxu1  ;;  %2176 = vst [vmem:[#allocation4 + $0x1] sm:$0x1] %v2175_v39 }
 0xa0f   :  { %v1860_v43 = vadd.f32 %v4722_v41, %v6007_v40  ;;  %v5382_v41 = vld [vmem:[#allocation9 + $0x10] sm:$0xff]   ;;  %v5383_v42 = vld [vmem:[#allocation9 + $0x48] sm:$0xff]  }
 0xa10   :  { %v4724_v46 = vpop.f32.mrf.mxu1 }
 0xa11   :  { %v1865_v47 = vsel %vm327_vm0, %v1860_v43, 0.0  ;;  %v5385_v46 = vld [vmem:[#allocation9 + $0x40] sm:$0xff]  }
 0xa12   :  { %1866 = vadd.xlane.f32.xlu0 %v1865_v47  ;;  %v5386_v47 = vld [vmem:[#allocation9] sm:$0xff]  }
 0xa9b   :  { %v1867_v48 = vpop.xlane.xlu0 %1866 }
 0xa9c   :  { %v1868_v49 = vmul.f32 0.0078125, %v1867_v48  ;;  %v6043_v48 = vld [vmem:[%s6361_s8] ss:$0 sm:$0xff] }
 0xa9e   :  { %v1869_v50 = vsub.f32 %v1860_v43, %v1868_v49  ;;  %v5384_v43 = vld [vmem:[#allocation9 + $0x8] sm:$0xff]  }
 0xaa0   :  { %v1870_v52 = vmul.f32 %v1869_v50, %v1869_v50 }
 0xaa2   :  { %v1871_v53 = vsel %vm327_vm0, %v1870_v52, 0.0 }
 0xaa3   :  { %1872 = vadd.xlane.f32.xlu1 %v1871_v53  ;;  %v2015_v53 = vmul.f32 0.9, %v5992_v29 }
 0xb2c   :  { %v1873_v60 = vpop.xlane.xlu1 %1872 }
 0xb2d   :  { %v1874_v1 = vmul.f32 0.0078125, %v1873_v60 }
 0xb2f   :  { %v1875_v2 = vadd.f32 1e-05, %v1874_v1 }
 0xb31   :  { %5517 = vrsqrt.f32 %v1875_v2 }
 0xb3e   :  { %v5518_v3 = vpop.eup %5517 }
 0xb3f   :  { %v1877_v5 = vmul.f32 %v5518_v3, %v1869_v50 }
 0xb41   :  { %v1885_v8 = vmul.f32 %v6024_v4, %v1877_v5 }
 0xb43   :  { %v1893_v9 = vadd.f32 %v6029_v6, %v1885_v8 }
 0xb45   :  { %v1894_v10 = vpack.c.bf16 %v1893_v9, %v1893_v9 }
 0xb47   :  { %v1897_v11 = vmul.bf16 1027030327, %v1894_v10  ;;  %v1896_v13 = vmul.bf16 1061961548, %v1894_v10  ;;  %v1895_v17 = vmul.bf16 1056980736, %v1894_v10 }
 0xb49   :  { %v1898_v45 = vmul.bf16 %v1897_v11, %v1894_v10 }
 0xb4b   :  { %v1899_v14 = vadd.bf16 1065369472, %v1898_v45 }
 0xb4d   :  { %v1900_v15 = vmul.bf16 %v1899_v14, %v1896_v13 }
 0xb4f   :  { %5519 = vtanh.bf16 %v1900_v15 }
 0xb5d   :  { %v5520_v16 = vpop.eup %5519 }
 0xb5e   :  { %v1902_v18 = vadd.bf16 1065369472, %v5520_v16 }
 0xb60   :  { %v1903_v19 = vmul.bf16 %v1902_v18, %v1895_v17 }
 0xb62   :  { %5041 = vmatmul.mubr.bf16.vlgmr.msra.gmra.mxu0 %v1903_v19  ;;  %v5387_v19 = vld [vmem:[#allocation11 + $0x38] sm:$0xff]  }
 0xb63   :  { %4745 = vmatpush3.bf16.msra.mxu0 %v5368_v23  ;;  %v5391_v23 = vld [vmem:[#allocation11 + $0x18] sm:$0xff]  }
 0xb64   :  { %4746 = vmatprep.subr.bf16.mxu0 %v5370_v26  ;;  %v5393_v26 = vld [vmem:[#allocation11 + $0x8] sm:$0xff]  }
 0xb67   :  { %4747 = vmatpush3.bf16.msra.mxu0 %v5371_v27  ;;  %v5394_v27 = vld [vmem:[#allocation11] sm:$0xff]  }
 0xb68   :  { %4748 = vmatprep.subr.bf16.mxu0 %v5373_v28  ;;  %v5395_v28 = vld [vmem:[#allocation12 + $0x38] sm:$0xff]  }
 0xb6b   :  { %4749 = vmatpush3.bf16.msra.mxu0 %v5374_v31 }
 0xb6c   :  { %4750 = vmatprep.subr.bf16.mxu0 %v5376_v34 }
 0xb6f   :  { %4751 = vmatpush3.bf16.msra.mxu0 %v5377_v7 }
 0xb70   :  { %4752 = vmatprep.subr.bf16.mxu0 %v5379_v35 }
 0xb73   :  { %4753 = vmatpush3.bf16.msra.mxu0 %v5380_v37 }
 0xb74   :  { %4754 = vmatprep.subr.bf16.mxu0 %v5381_v38 }
 0xb77   :  { %4755 = vmatpush3.bf16.msra.mxu0 %v5382_v41 }
 0xb78   :  { %4756 = vmatprep.subr.bf16.mxu0 %v5383_v42 }
 0xb7b   :  { %4757 = vmatpush3.bf16.msra.mxu0 %v5384_v43 }
 0xb7c   :  { %4758 = vmatprep.subr.bf16.mxu0 %v5385_v46 }
 0xb7f   :  { %4759 = vmatpush3.bf16.msra.mxu0 %v5386_v47 }
 0xb80   :  { %5084 = vmatprep.subr.bf16.mxu0 %v5755_v44 }
 0xc22   :  { %v2009_v49 = vpop.f32.mrf.mxu0 }
 0xc23   :  { %v2010_v50 = vadd.f32 %v6043_v48, %v2009_v49 }
 0xc24   :  { %v5042_v52 = vpop.f32.mrf.mxu0 }
 0xc25   :  { %v2016_v54 = vmul.f32 0.1, %v2010_v50 }
 0xc26   :  { %v2012_v55 = vpop.f32.mrf.mxu0 }
 0xc27   :  { %v2017_v56 = vadd.f32 %v2016_v54, %v2015_v53  ;;  %v5397_v53 = vld [vmem:[#allocation12 + $0x28] sm:$0xff]   ;;  %v5398_v54 = vld [vmem:[#allocation12 + $0x20] sm:$0xff]   ;;  %v5399_v55 = vld [vmem:[#allocation9 + $0x78] sm:$0xff]  }
 0xc28   :  { %v5043_v57 = vpop.f32.mrf.mxu0 }
 0xc29   :  { %5521 = vtanh.f32 %v2017_v56  ;;  %v5400_v56 = vld [vmem:[#allocation9 + $0x38] sm:$0xff]  }
 0xc2a   :  { %v5401_v57 = vld [vmem:[#allocation12 + $0x18] sm:$0xff]  }
 0xc36   :  { %v6047_v59 = vpop.eup %5521 }
 0xc37   :  { %v2019_v61 = vpack.c.bf16 %v6047_v59, %v6047_v59 }
 0xc39   :  { %5061 = vmatmul.mubr.bf16.vlgmr.msra.gmra.mxu1 %v2019_v61  ;;  %2173 = vst [vmem:[#allocation4] sm:$0x1] %v2019_v61  ;;  %v5402_v61 = vld [vmem:[#allocation9 + $0x70] sm:$0xff]  }
 0xc3a   :  { %5080 = vmatprep.mubr.msk.bf16.mxu1 %vm5756_vm1, %v5755_v44  ;;  %5065 = vmatpush3.bf16.msra.mxu1 %v5387_v19 }
 0xc3b   :  { %5066 = vmatprep.subr.bf16.mxu1 %v5755_v44 }
 0xc3e   :  { %5067 = vmatpush3.bf16.msra.mxu1 %v5388_v20 }
 0xc3f   :  { %5068 = vmatprep.subr.bf16.mxu1 %v5755_v44 }
 0xc40   :  { %v4429_v63 = vld.sshfl [vmem:[#allocation4] sm:$0x11 pattern:$0x75316420] }
 0xc41   :  { %v2225_v58 = vcombine.high %v4429_v63, %v4429_v63  ;;  %2689 = vst [vmem:[#allocation4 + $0x1] sm:$0x1] %v2688_v62  ;;  %v2232_v0 = vrot.slane %v4429_v63, %v5870_v25  ;;  %v5403_v62 = vld [vmem:[#allocation9 + $0x30] sm:$0xff]   ;;  %v5405_v63 = vld [vmem:[#allocation9 + $0x68] sm:$0xff]  }
 0xc42   :  { %5069 = vmatpush3.bf16.msra.mxu1 %v5389_v21 }
 0xc43   :  { %v2239_v29 = vrot.slane %v2225_v58, %v5870_v25  ;;  %5070 = vmatprep.subr.bf16.mxu1 %v5755_v44  ;;  %v5404_v58 = vld [vmem:[#allocation12 + $0x10] sm:$0xff]  }
 0xc45   :  { %2370 = vmatprep.mubr.bf16.mxu0 %v2239_v29  ;;  %v5406_v29 = vld [vmem:[#allocation9 + $0x28] sm:$0xff]  }
 0xc46   :  { %2371 = vmatmul.mubr.bf16.vlgmr.msra.gmra.mxu0 %v2232_v0  ;;  %5071 = vmatpush3.bf16.msra.mxu1 %v5390_v22  ;;  %v5408_v0 = vld [vmem:[#allocation9 + $0x60] sm:$0xff]  }
 0xc47   :  { %5100 = vmatprep.mubr.msk.bf16.mxu0 %vm5756_vm1, %v5755_v44  ;;  %5072 = vmatprep.subr.bf16.mxu1 %v5755_v44 }
 0xc48   :  { %5085 = vmatpush3.bf16.msra.mxu0 %v5395_v28 }
 0xc49   :  { %5086 = vmatprep.subr.bf16.mxu0 %v5755_v44 }
 0xc4a   :  { %5073 = vmatpush3.bf16.msra.mxu1 %v5391_v23 }
 0xc4b   :  { %5074 = vmatprep.subr.bf16.mxu1 %v5755_v44 }
 0xc4c   :  { %5087 = vmatpush3.bf16.msra.mxu0 %v5396_v30 }
 0xc4d   :  { %5088 = vmatprep.subr.bf16.mxu0 %v5755_v44 }
 0xc4e   :  { %5075 = vmatpush3.bf16.msra.mxu1 %v5392_v24 }
 0xc4f   :  { %5076 = vmatprep.subr.bf16.mxu1 %v5755_v44 }
 0xc50   :  { %5089 = vmatpush3.bf16.msra.mxu0 %v5397_v53  ;;  %v5420_v53 = vld [vmem:[#allocation11 + $0x30] sm:$0xff]  }
 0xc51   :  { %5090 = vmatprep.subr.bf16.mxu0 %v5755_v44 }
 0xc52   :  { %5077 = vmatpush3.bf16.msra.mxu1 %v5393_v26  ;;  %v3201_v26 = vld [vmem:[#allocation6 + $0x6] sm:$0x1] }
 0xc53   :  { %5078 = vmatprep.subr.bf16.mxu1 %v5755_v44 }
 0xc54   :  { %5091 = vmatpush3.bf16.msra.mxu0 %v5398_v54  ;;  %v5421_v54 = vld [vmem:[#allocation11 + $0x28] sm:$0xff]  }
 0xc55   :  { %5092 = vmatprep.subr.bf16.mxu0 %v5755_v44 }
 0xc56   :  { %5079 = vmatpush3.bf16.msra.mxu1 %v5394_v27 }
 0xc57   :  { %4784 = vmatprep.subr.bf16.mxu1 %v5399_v55  ;;  %v5423_v55 = vld [vmem:[#allocation11 + $0x18] sm:$0xff]  }
 0xc58   :  { %5093 = vmatpush3.bf16.msra.mxu0 %v5401_v57  ;;  %v5425_v57 = vld [vmem:[#allocation11 + $0x8] sm:$0xff]  }
 0xc59   :  { %5094 = vmatprep.subr.bf16.mxu0 %v5755_v44 }
 0xc5c   :  { %5095 = vmatpush3.bf16.msra.mxu0 %v5404_v58 }
 0xc5d   :  { %5096 = vmatprep.subr.bf16.mxu0 %v5755_v44 }
 0xcf9   :  { %v6057_v60 = vpop.f32.mrf.mxu1 }
 0xcfb   :  { %v5062_v1 = vpop.f32.mrf.mxu1 }
 0xcfc   :  { %v5407_v1 = vld [vmem:[#allocation12 + $0x8] sm:$0xff]  }
 0xcfd   :  { %v2128_v2 = vpop.f32.mrf.mxu1  ;;  %5097 = vmatpush3.bf16.msra.mxu0 %v5407_v1 }
 0xcfe   :  { %v5409_v2 = vld [vmem:[#allocation9 + $0x20] sm:$0xff]   ;;  %5098 = vmatprep.subr.bf16.mxu0 %v5755_v44 }
 0xcff   :  { %v5063_v3 = vpop.f32.mrf.mxu1 }
 0xd00   :  { %v5411_v3 = vld [vmem:[#allocation9 + $0x58] sm:$0xff]  }
 0xd06   :  { %v4760_v5 = vpop.f32.mrf.mxu0 }
 0xd08   :  { %v4761_v8 = vpop.f32.mrf.mxu0 }
 0xd09   :  { %v4762_v9 = vadd.f32 %v4761_v8, %v4760_v5  ;;  %v5410_v5 = vld [vmem:[#allocation12] sm:$0xff]   ;;  %v5412_v8 = vld [vmem:[#allocation9 + $0x18] sm:$0xff]  }
 0xd0a   :  { %v4763_v10 = vpop.f32.mrf.mxu0  ;;  %5099 = vmatpush3.bf16.msra.mxu0 %v5410_v5 }
 0xd0b   :  { %v2373_v11 = vadd.f32 %v4762_v9, %v6007_v40  ;;  %5104 = vmatprep.subr.bf16.mxu0 %v5755_v44  ;;  %v5413_v9 = vld [vmem:[#allocation9 + $0x50] sm:$0xff]  }
 0xd0c   :  { %v4764_v45 = vpop.f32.mrf.mxu0  ;;  %v5414_v10 = vld [vmem:[#allocation9 + $0x10] sm:$0xff]  }
 0xd0d   :  { %v2378_v13 = vsel %vm327_vm0, %v2373_v11, 0.0  ;;  %v5416_v45 = vld [vmem:[#allocation9 + $0x8] sm:$0xff]  }
 0xd0e   :  { %2379 = vadd.xlane.f32.xlu0 %v2378_v13  ;;  %v5417_v13 = vld [vmem:[#allocation9 + $0x40] sm:$0xff]  }
 0xd97   :  { %v2380_v14 = vpop.xlane.xlu0 %2379 }
 0xd98   :  { %v2381_v15 = vmul.f32 0.0078125, %v2380_v14  ;;  %v5418_v14 = vld [vmem:[#allocation9] sm:$0xff]  }
 0xd9a   :  { %v2382_v16 = vsub.f32 %v2373_v11, %v2381_v15  ;;  %v5415_v11 = vld [vmem:[#allocation9 + $0x48] sm:$0xff]  }
 0xd9c   :  { %v2383_v17 = vmul.f32 %v2382_v16, %v2382_v16 }
 0xd9e   :  { %v2384_v18 = vsel %vm327_vm0, %v2383_v17, 0.0 }
 0xd9f   :  { %2385 = vadd.xlane.f32.xlu1 %v2384_v18  ;;  %v2528_v18 = vmul.f32 0.9, %v6047_v59 }
 0xe28   :  { %v2386_v31 = vpop.xlane.xlu1 %2385 }
 0xe29   :  { %v2387_v34 = vmul.f32 0.0078125, %v2386_v31 }
 0xe2b   :  { %v2388_v32 = vadd.f32 1e-05, %v2387_v34 }
 0xe2d   :  { %5523 = vrsqrt.f32 %v2388_v32 }
 0xe3a   :  { %v5524_v7 = vpop.eup %5523 }
 0xe3b   :  { %v2390_v35 = vmul.f32 %v5524_v7, %v2382_v16 }
 0xe3d   :  { %v2398_v36 = vmul.f32 %v6024_v4, %v2390_v35 }
 0xe3f   :  { %v2406_v37 = vadd.f32 %v6029_v6, %v2398_v36 }
 0xe41   :  { %v2407_v38 = vpack.c.bf16 %v2406_v37, %v2406_v37 }
 0xe43   :  { %v2410_v39 = vmul.bf16 1027030327, %v2407_v38  ;;  %v2409_v42 = vmul.bf16 1061961548, %v2407_v38  ;;  %v2408_v49 = vmul.bf16 1056980736, %v2407_v38 }
 0xe45   :  { %v2411_v41 = vmul.bf16 %v2410_v39, %v2407_v38 }
 0xe47   :  { %v2412_v43 = vadd.bf16 1065369472, %v2411_v41 }
 0xe49   :  { %v2413_v46 = vmul.bf16 %v2412_v43, %v2409_v42 }
 0xe4b   :  { %5525 = vtanh.bf16 %v2413_v46 }
 0xe59   :  { %v5526_v47 = vpop.eup %5525 }
 0xe5a   :  { %v2415_v50 = vadd.bf16 1065369472, %v5526_v47 }
 0xe5c   :  { %v2416_v52 = vmul.bf16 %v2415_v50, %v2408_v49 }
 0xe5e   :  { %5081 = vmatmul.mubr.bf16.vlgmr.msra.gmra.mxu1 %v2416_v52  ;;  %v5419_v52 = vld [vmem:[#allocation11 + $0x38] sm:$0xff]  }
 0xe5f   :  { %4785 = vmatpush3.bf16.msra.mxu1 %v5400_v56  ;;  %v5424_v56 = vld [vmem:[#allocation11 + $0x10] sm:$0xff]  }
 0xe60   :  { %4786 = vmatprep.subr.bf16.mxu1 %v5402_v61  ;;  %v5426_v61 = vld [vmem:[#allocation11] sm:$0xff]  }
 0xe63   :  { %4787 = vmatpush3.bf16.msra.mxu1 %v5403_v62  ;;  %v5427_v62 = vld [vmem:[#allocation12 + $0x38] sm:$0xff]  }
 0xe64   :  { %4788 = vmatprep.subr.bf16.mxu1 %v5405_v63  ;;  %v5428_v63 = vld [vmem:[#allocation12 + $0x30] sm:$0xff]  }
 0xe67   :  { %4789 = vmatpush3.bf16.msra.mxu1 %v5406_v29 }
 0xe68   :  { %4790 = vmatprep.subr.bf16.mxu1 %v5408_v0 }
 0xe6b   :  { %4791 = vmatpush3.bf16.msra.mxu1 %v5409_v2 }
 0xe6c   :  { %4792 = vmatprep.subr.bf16.mxu1 %v5411_v3 }
 0xe6f   :  { %4793 = vmatpush3.bf16.msra.mxu1 %v5412_v8 }
 0xe70   :  { %4794 = vmatprep.subr.bf16.mxu1 %v5413_v9 }
 0xe73   :  { %4795 = vmatpush3.bf16.msra.mxu1 %v5414_v10 }
 0xe74   :  { %4796 = vmatprep.subr.bf16.mxu1 %v5415_v11 }
 0xe77   :  { %4797 = vmatpush3.bf16.msra.mxu1 %v5416_v45 }
 0xe78   :  { %4798 = vmatprep.subr.bf16.mxu1 %v5417_v13 }
 0xe7b   :  { %4799 = vmatpush3.bf16.msra.mxu1 %v5418_v14 }
 0xe7c   :  { %5124 = vmatprep.subr.bf16.mxu1 %v5755_v44 }
 0xf1e   :  { %v2522_v15 = vpop.f32.mrf.mxu1 }
 0xf1f   :  { %v2523_v16 = vadd.f32 %v6043_v48, %v2522_v15 }
 0xf20   :  { %v5082_v17 = vpop.f32.mrf.mxu1 }
 0xf21   :  { %v2529_v19 = vmul.f32 0.1, %v2523_v16 }
 0xf22   :  { %v2525_v20 = vpop.f32.mrf.mxu1 }
 0xf23   :  { %v2530_v21 = vadd.f32 %v2529_v19, %v2528_v18  ;;  %v5429_v18 = vld [vmem:[#allocation12 + $0x28] sm:$0xff]   ;;  %v5430_v19 = vld [vmem:[#allocation12 + $0x20] sm:$0xff]   ;;  %v5432_v20 = vld [vmem:[#allocation9 + $0x38] sm:$0xff]  }
 0xf24   :  { %v5083_v22 = vpop.f32.mrf.mxu1 }
 0xf25   :  { %5527 = vtanh.f32 %v2530_v21  ;;  %v5434_v21 = vld [vmem:[#allocation9 + $0x70] sm:$0xff]  }
 0xf26   :  { %v5435_v22 = vld [vmem:[#allocation9 + $0x30] sm:$0xff]  }
 0xf32   :  { %v6082_v23 = vpop.eup %5527 }
 0xf33   :  { %v2532_v24 = vpack.c.bf16 %v6082_v23, %v6082_v23 }
 0xf35   :  { %5101 = vmatmul.mubr.bf16.vlgmr.msra.gmra.mxu0 %v2532_v24  ;;  %2686 = vst [vmem:[#allocation4] sm:$0x1] %v2532_v24  ;;  %v5437_v24 = vld [vmem:[#allocation9 + $0x68] sm:$0xff]  }
 0xf36   :  { %5120 = vmatprep.mubr.msk.bf16.mxu0 %vm5756_vm1, %v5755_v44  ;;  %5105 = vmatpush3.bf16.msra.mxu0 %v5419_v52 }
 0xf37   :  { %5106 = vmatprep.subr.bf16.mxu0 %v5755_v44 }
 0xf3a   :  { %5107 = vmatpush3.bf16.msra.mxu0 %v5420_v53 }
 0xf3b   :  { %5108 = vmatprep.subr.bf16.mxu0 %v5755_v44 }
 0xf3c   :  { %v4468_v27 = vld.sshfl [vmem:[#allocation4] sm:$0x11 pattern:$0x75316420] }
 0xf3d   :  { %v2738_v28 = vcombine.high %v4468_v27, %v4468_v27  ;;  %3202 = vst [vmem:[#allocation4 + $0x1] sm:$0x1] %v3201_v26  ;;  %v2745_v30 = vrot.slane %v4468_v27, %v5870_v25  ;;  %v5436_v26 = vld [vmem:[#allocation12 + $0x10] sm:$0xff]   ;;  %v5438_v27 = vld [vmem:[#allocation9 + $0x28] sm:$0xff]  }
 0xf3e   :  { %5109 = vmatpush3.bf16.msra.mxu0 %v5421_v54 }
 0xf3f   :  { %v2752_v59 = vrot.slane %v2738_v28, %v5870_v25  ;;  %5110 = vmatprep.subr.bf16.mxu0 %v5755_v44  ;;  %v5440_v28 = vld [vmem:[#allocation9 + $0x60] sm:$0xff]  }
 0xf41   :  { %2883 = vmatprep.mubr.bf16.mxu1 %v2752_v59  ;;  %v5439_v59 = vld [vmem:[#allocation12 + $0x8] sm:$0xff]  }
 0xf42   :  { %2884 = vmatmul.mubr.bf16.vlgmr.msra.gmra.mxu1 %v2745_v30  ;;  %v5441_v30 = vld [vmem:[#allocation9 + $0x20] sm:$0xff]  }
 0xf43   :  { %5140 = vmatprep.mubr.msk.bf16.mxu1 %vm5756_vm1, %v5755_v44  ;;  %5125 = vmatpush3.bf16.msra.mxu1 %v5427_v62 }
 0xf44   :  { %5126 = vmatprep.subr.bf16.mxu1 %v5755_v44 }
 0xf47   :  { %5127 = vmatpush3.bf16.msra.mxu1 %v5428_v63 }
 0xf48   :  { %5128 = vmatprep.subr.bf16.mxu1 %v5755_v44 }
 0xf4b   :  { %5129 = vmatpush3.bf16.msra.mxu1 %v5429_v18  ;;  %v5454_v18 = vld [vmem:[#allocation11 + $0x20] sm:$0xff]  }
 0xf4c   :  { %5130 = vmatprep.subr.bf16.mxu1 %v5755_v44 }
 0xf4f   :  { %5131 = vmatpush3.bf16.msra.mxu1 %v5430_v19  ;;  %v5455_v19 = vld [vmem:[#allocation11 + $0x18] sm:$0xff]  }
 0xf50   :  { %5132 = vmatprep.subr.bf16.mxu1 %v5755_v44 }
 0xff5   :  { %v6092_v31 = vpop.f32.mrf.mxu0 }
 0xff7   :  { %v5102_v34 = vpop.f32.mrf.mxu0 }
 0xff8   :  { %v5443_v34 = vld [vmem:[#allocation9 + $0x58] sm:$0xff]  }
 0xff9   :  { %v2641_v32 = vpop.f32.mrf.mxu0 }
 0xffa   :  { %v5442_v32 = vld [vmem:[#allocation12] sm:$0xff]  }
 0xffb   :  { %v5103_v7 = vpop.f32.mrf.mxu0 }
 0xffc   :  { %v5444_v7 = vld [vmem:[#allocation9 + $0x18] sm:$0xff]  }
0x1002   :  { %v4800_v35 = vpop.f32.mrf.mxu1 }
0x1004   :  { %v4801_v36 = vpop.f32.mrf.mxu1 }
0x1005   :  { %v4802_v37 = vadd.f32 %v4801_v36, %v4800_v35  ;;  %v5445_v35 = vld [vmem:[#allocation9 + $0x50] sm:$0xff]  }
0x1006   :  { %v4803_v38 = vpop.f32.mrf.mxu1  ;;  %v5446_v36 = vld [vmem:[#allocation9 + $0x10] sm:$0xff]  }
0x1007   :  { %v2886_v39 = vadd.f32 %v4802_v37, %v6007_v40  ;;  %v5422_v40 = vld [vmem:[#allocation11 + $0x20] sm:$0xff]   ;;  %v5447_v37 = vld [vmem:[#allocation9 + $0x48] sm:$0xff]  }
0x1008   :  { %v4804_v41 = vpop.f32.mrf.mxu1  ;;  %5111 = vmatpush3.bf16.msra.mxu0 %v5422_v40  ;;  %v5448_v38 = vld [vmem:[#allocation9 + $0x8] sm:$0xff]  }
0x1009   :  { %v2891_v42 = vsel %vm327_vm0, %v2886_v39, 0.0  ;;  %5112 = vmatprep.subr.bf16.mxu0 %v5755_v44  ;;  %v5450_v41 = vld [vmem:[#allocation9] sm:$0xff]  }
0x100a   :  { %2892 = vadd.xlane.f32.xlu0 %v2891_v42 }
0x100c   :  { %5113 = vmatpush3.bf16.msra.mxu0 %v5423_v55  ;;  %v3714_v55 = vld [vmem:[#allocation6 + $0x7] sm:$0x1] }
0x100d   :  { %5114 = vmatprep.subr.bf16.mxu0 %v5755_v44 }
0x1010   :  { %5115 = vmatpush3.bf16.msra.mxu0 %v5424_v56 }
0x1011   :  { %5116 = vmatprep.subr.bf16.mxu0 %v5755_v44 }
0x1014   :  { %5117 = vmatpush3.bf16.msra.mxu0 %v5425_v57 }
0x1015   :  { %5118 = vmatprep.subr.bf16.mxu0 %v5755_v44 }
0x1018   :  { %5119 = vmatpush3.bf16.msra.mxu0 %v5426_v61 }
0x1093   :  { %v2893_v43 = vpop.xlane.xlu0 %2892 }
0x1094   :  { %v2894_v46 = vmul.f32 0.0078125, %v2893_v43 }
0x1096   :  { %v2895_v47 = vsub.f32 %v2886_v39, %v2894_v46  ;;  %v5449_v39 = vld [vmem:[#allocation9 + $0x40] sm:$0xff]  }
0x1098   :  { %v2896_v49 = vmul.f32 %v2895_v47, %v2895_v47 }
0x109a   :  { %v2897_v50 = vsel %vm327_vm0, %v2896_v49, 0.0 }
0x109b   :  { %2898 = vadd.xlane.f32.xlu1 %v2897_v50 }
0x1124   :  { %v2899_v58 = vpop.xlane.xlu1 %2898 }
0x1125   :  { %v2900_v29 = vmul.f32 0.0078125, %v2899_v58 }
0x1127   :  { %v2901_v0 = vadd.f32 1e-05, %v2900_v29 }
0x1129   :  { %5529 = vrsqrt.f32 %v2901_v0 }
0x1136   :  { %v5530_v1 = vpop.eup %5529 }
0x1137   :  { %v2903_v2 = vmul.f32 %v5530_v1, %v2895_v47  ;;  %v3041_v47 = vmul.f32 0.9, %v6082_v23  ;;  %v6132_v1 = vld [vmem:[%s6357_s4] ss:$0 sm:$0xff] }
0x1139   :  { %v2911_v3 = vmul.f32 %v6024_v4, %v2903_v2  ;;  %v5431_v4 = vld [vmem:[#allocation9 + $0x78] sm:$0xff]  }
0x113a   :  { %4824 = vmatprep.subr.bf16.mxu0 %v5431_v4  ;;  %v5456_v4 = vld [vmem:[#allocation11 + $0x10] sm:$0xff]  }
0x113b   :  { %v2919_v5 = vadd.f32 %v6029_v6, %v2911_v3  ;;  %v5433_v6 = vld [vmem:[#allocation12 + $0x18] sm:$0xff]  }
0x113c   :  { %5133 = vmatpush3.bf16.msra.mxu1 %v5433_v6  ;;  %v5458_v6 = vld [vmem:[#allocation11] sm:$0xff]  }
0x113d   :  { %v2920_v8 = vpack.c.bf16 %v2919_v5, %v2919_v5  ;;  %5134 = vmatprep.subr.bf16.mxu1 %v5755_v44 }
0x113f   :  { %v2923_v9 = vmul.bf16 1027030327, %v2920_v8  ;;  %v2922_v11 = vmul.bf16 1061961548, %v2920_v8  ;;  %v2921_v15 = vmul.bf16 1056980736, %v2920_v8 }
0x1140   :  { %5135 = vmatpush3.bf16.msra.mxu1 %v5436_v26 }
0x1141   :  { %v2924_v10 = vmul.bf16 %v2923_v9, %v2920_v8  ;;  %5136 = vmatprep.subr.bf16.mxu1 %v5755_v44 }
0x1143   :  { %v2925_v45 = vadd.bf16 1065369472, %v2924_v10 }
0x1144   :  { %5137 = vmatpush3.bf16.msra.mxu1 %v5439_v59  ;;  %v6149_v59 = vld [vmem:[%s6358_s5] ss:$0 sm:$0xff] }
0x1145   :  { %v2926_v13 = vmul.bf16 %v2925_v45, %v2922_v11  ;;  %5138 = vmatprep.subr.bf16.mxu1 %v5755_v44 }
0x1147   :  { %5531 = vtanh.bf16 %v2926_v13 }
0x1148   :  { %5139 = vmatpush3.bf16.msra.mxu1 %v5442_v32 }
0x1149   :  { %5144 = vmatprep.subr.bf16.mxu1 %v5755_v44 }
0x1155   :  { %v5532_v14 = vpop.eup %5531 }
0x1156   :  { %v2928_v16 = vadd.bf16 1065369472, %v5532_v14 }
0x1158   :  { %v2929_v17 = vmul.bf16 %v2928_v16, %v2921_v15  ;;  %v5451_v15 = vld [vmem:[#allocation11 + $0x38] sm:$0xff]   ;;  %v5452_v16 = vld [vmem:[#allocation11 + $0x30] sm:$0xff]  }
0x115a   :  { %5121 = vmatmul.mubr.bf16.vlgmr.msra.gmra.mxu0 %v2929_v17  ;;  %v5453_v17 = vld [vmem:[#allocation11 + $0x28] sm:$0xff]  }
0x115b   :  { %4825 = vmatpush3.bf16.msra.mxu0 %v5432_v20  ;;  %v5457_v20 = vld [vmem:[#allocation11 + $0x8] sm:$0xff]  }
0x115c   :  { %4826 = vmatprep.subr.bf16.mxu0 %v5434_v21  ;;  %v5459_v21 = vld [vmem:[#allocation12 + $0x38] sm:$0xff]  }
0x115f   :  { %4827 = vmatpush3.bf16.msra.mxu0 %v5435_v22  ;;  %v5460_v22 = vld [vmem:[#allocation12 + $0x30] sm:$0xff]  }
0x1160   :  { %4828 = vmatprep.subr.bf16.mxu0 %v5437_v24 }
0x1163   :  { %4829 = vmatpush3.bf16.msra.mxu0 %v5438_v27 }
0x1164   :  { %4830 = vmatprep.subr.bf16.mxu0 %v5440_v28 }
0x1167   :  { %4831 = vmatpush3.bf16.msra.mxu0 %v5441_v30 }
0x1168   :  { %4832 = vmatprep.subr.bf16.mxu0 %v5443_v34  ;;  %v6154_v34 = vld [vmem:[%s6359_s6] ss:$0 sm:$0xff] }
0x116b   :  { %4833 = vmatpush3.bf16.msra.mxu0 %v5444_v7 }
0x116c   :  { %4834 = vmatprep.subr.bf16.mxu0 %v5445_v35 }
0x116f   :  { %4835 = vmatpush3.bf16.msra.mxu0 %v5446_v36 }
0x1170   :  { %4836 = vmatprep.subr.bf16.mxu0 %v5447_v37 }
0x1173   :  { %4837 = vmatpush3.bf16.msra.mxu0 %v5448_v38 }
0x1174   :  { %4838 = vmatprep.subr.bf16.mxu0 %v5449_v39 }
0x1177   :  { %4839 = vmatpush3.bf16.msra.mxu0 %v5450_v41 }
0x1178   :  { %5164 = vmatprep.subr.bf16.mxu0 %v5755_v44 }
0x121a   :  { %v3035_v42 = vpop.f32.mrf.mxu0 }
0x121b   :  { %v3036_v43 = vadd.f32 %v6043_v48, %v3035_v42 }
0x121c   :  { %v5122_v46 = vpop.f32.mrf.mxu0 }
0x121d   :  { %v3042_v49 = vmul.f32 0.1, %v3036_v43 }
0x121e   :  { %v3038_v50 = vpop.f32.mrf.mxu0 }
0x121f   :  { %v3043_v52 = vadd.f32 %v3042_v49, %v3041_v47  ;;  %v5461_v49 = vld [vmem:[#allocation12 + $0x28] sm:$0xff]   ;;  %v5462_v50 = vld [vmem:[#allocation12 + $0x20] sm:$0xff]  }
0x1220   :  { %v5123_v53 = vpop.f32.mrf.mxu0 }
0x1221   :  { %5533 = vtanh.f32 %v3043_v52  ;;  %v5463_v52 = vld [vmem:[#allocation9 + $0x78] sm:$0xff]  }
0x1222   :  { %v5464_v53 = vld [vmem:[#allocation9 + $0x38] sm:$0xff]  }
0x122e   :  { %v6117_v54 = vpop.eup %5533 }
0x122f   :  { %v3045_v40 = vpack.c.bf16 %v6117_v54, %v6117_v54 }
0x1231   :  { %5141 = vmatmul.mubr.bf16.vlgmr.msra.gmra.mxu1 %v3045_v40  ;;  %3199 = vst [vmem:[#allocation4] sm:$0x1] %v3045_v40  ;;  %v5465_v40 = vld [vmem:[#allocation12 + $0x18] sm:$0xff]  }
0x1232   :  { %5160 = vmatprep.mubr.msk.bf16.mxu1 %vm5756_vm1, %v5755_v44  ;;  %5145 = vmatpush3.bf16.msra.mxu1 %v5451_v15 }
0x1233   :  { %5146 = vmatprep.subr.bf16.mxu1 %v5755_v44 }
0x1236   :  { %5147 = vmatpush3.bf16.msra.mxu1 %v5452_v16  ;;  %v3554_v16 = vmul.f32 0.9, %v6117_v54 }
0x1237   :  { %5148 = vmatprep.subr.bf16.mxu1 %v5755_v44 }
0x1238   :  { %v4507_v48 = vld.sshfl [vmem:[#allocation4] sm:$0x11 pattern:$0x75316420] }
0x1239   :  { %v3251_v56 = vcombine.high %v4507_v48, %v4507_v48  ;;  %3715 = vst [vmem:[#allocation4 + $0x1] sm:$0x1] %v3714_v55  ;;  %v3258_v57 = vrot.slane %v4507_v48, %v5870_v25  ;;  %v5466_v55 = vld [vmem:[#allocation9 + $0x70] sm:$0xff]  }
0x123a   :  { %5149 = vmatpush3.bf16.msra.mxu1 %v5453_v17  ;;  %v5467_v48 = vld [vmem:[#allocation9 + $0x30] sm:$0xff]  }
0x123b   :  { %v3265_v23 = vrot.slane %v3251_v56, %v5870_v25  ;;  %5150 = vmatprep.subr.bf16.mxu1 %v5755_v44  ;;  %v5469_v56 = vld [vmem:[#allocation9 + $0x68] sm:$0xff]  }
0x123d   :  { %3396 = vmatprep.mubr.bf16.mxu0 %v3265_v23  ;;  %v5468_v23 = vld [vmem:[#allocation12 + $0x10] sm:$0xff]  }
0x123e   :  { %3397 = vmatmul.mubr.bf16.vlgmr.msra.gmra.mxu0 %v3258_v57  ;;  %5151 = vmatpush3.bf16.msra.mxu1 %v5454_v18  ;;  %v5470_v57 = vld [vmem:[#allocation9 + $0x28] sm:$0xff]  }
0x123f   :  { %5180 = vmatprep.mubr.msk.bf16.mxu0 %vm5756_vm1, %v5755_v44  ;;  %5152 = vmatprep.subr.bf16.mxu1 %v5755_v44 }
0x1240   :  { %5165 = vmatpush3.bf16.msra.mxu0 %v5459_v21 }
0x1241   :  { %5166 = vmatprep.subr.bf16.mxu0 %v5755_v44 }
0x1242   :  { %5153 = vmatpush3.bf16.msra.mxu1 %v5455_v19 }
0x1243   :  { %5154 = vmatprep.subr.bf16.mxu1 %v5755_v44 }
0x1244   :  { %5167 = vmatpush3.bf16.msra.mxu0 %v5460_v22 }
0x1245   :  { %5168 = vmatprep.subr.bf16.mxu0 %v5755_v44 }
0x1246   :  { %5155 = vmatpush3.bf16.msra.mxu1 %v5456_v4 }
0x1247   :  { %5156 = vmatprep.subr.bf16.mxu1 %v5755_v44 }
0x1248   :  { %5169 = vmatpush3.bf16.msra.mxu0 %v5461_v49 }
0x1249   :  { %5170 = vmatprep.subr.bf16.mxu0 %v5755_v44 }
0x124a   :  { %5157 = vmatpush3.bf16.msra.mxu1 %v5457_v20 }
0x124b   :  { %5158 = vmatprep.subr.bf16.mxu1 %v5755_v44 }
0x124c   :  { %5171 = vmatpush3.bf16.msra.mxu0 %v5462_v50 }
0x124d   :  { %5172 = vmatprep.subr.bf16.mxu0 %v5755_v44 }
0x124e   :  { %5159 = vmatpush3.bf16.msra.mxu1 %v5458_v6 }
0x124f   :  { %4864 = vmatprep.subr.bf16.mxu1 %v5463_v52 }
0x1250   :  { %5173 = vmatpush3.bf16.msra.mxu0 %v5465_v40 }
0x1251   :  { %5174 = vmatprep.subr.bf16.mxu0 %v5755_v44 }
0x1254   :  { %5175 = vmatpush3.bf16.msra.mxu0 %v5468_v23 }
0x1255   :  { %5176 = vmatprep.subr.bf16.mxu0 %v5755_v44 }
0x12f1   :  { %v6127_v61 = vpop.f32.mrf.mxu1 }
0x12f3   :  { %v5142_v62 = vpop.f32.mrf.mxu1 }
0x12f4   :  { %v5472_v62 = vld [vmem:[#allocation9 + $0x60] sm:$0xff]  }
0x12f5   :  { %v3154_v63 = vpop.f32.mrf.mxu1 }
0x12f6   :  { %v5471_v63 = vld [vmem:[#allocation12 + $0x8] sm:$0xff]  }
0x12f7   :  { %v5143_v58 = vpop.f32.mrf.mxu1  ;;  %5177 = vmatpush3.bf16.msra.mxu0 %v5471_v63 }
0x12f8   :  { %v5473_v58 = vld [vmem:[#allocation9 + $0x20] sm:$0xff]   ;;  %5178 = vmatprep.subr.bf16.mxu0 %v5755_v44 }
0x12fe   :  { %v4840_v29 = vpop.f32.mrf.mxu0 }
0x1300   :  { %v4841_v0 = vpop.f32.mrf.mxu0 }
0x1301   :  { %v4842_v2 = vadd.f32 %v4841_v0, %v4840_v29  ;;  %v5475_v29 = vld [vmem:[#allocation9 + $0x58] sm:$0xff]   ;;  %v5474_v0 = vld [vmem:[#allocation12] sm:$0xff]  }
0x1302   :  { %v4843_v3 = vpop.f32.mrf.mxu0  ;;  %5179 = vmatpush3.bf16.msra.mxu0 %v5474_v0 }
0x1303   :  { %v3399_v5 = vadd.f32 %v4842_v2, %v6132_v1  ;;  %v5476_v2 = vld [vmem:[#allocation9 + $0x18] sm:$0xff]   ;;  %5184 = vmatprep.subr.bf16.mxu0 %v5755_v44  ;;  %v5477_v3 = vld [vmem:[#allocation9 + $0x50] sm:$0xff]  }
0x1304   :  { %v4844_v8 = vpop.f32.mrf.mxu0 }
0x1305   :  { %v3404_v9 = vsel %vm327_vm0, %v3399_v5, 0.0  ;;  %v5479_v8 = vld [vmem:[#allocation9 + $0x48] sm:$0xff]  }
0x1306   :  { %3405 = vadd.xlane.f32.xlu0 %v3404_v9  ;;  %v5480_v9 = vld [vmem:[#allocation9 + $0x8] sm:$0xff]  }
0x138f   :  { %v3406_v10 = vpop.xlane.xlu0 %3405 }
0x1390   :  { %v3407_v11 = vmul.f32 0.0078125, %v3406_v10  ;;  %v5481_v10 = vld [vmem:[#allocation9 + $0x40] sm:$0xff]  }
0x1392   :  { %v3408_v45 = vsub.f32 %v3399_v5, %v3407_v11  ;;  %v5478_v5 = vld [vmem:[#allocation9 + $0x10] sm:$0xff]   ;;  %v5482_v11 = vld [vmem:[#allocation9] sm:$0xff]  }
0x1394   :  { %v3409_v13 = vmul.f32 %v3408_v45, %v3408_v45 }
0x1396   :  { %v3410_v14 = vsel %vm327_vm0, %v3409_v13, 0.0 }
0x1397   :  { %3411 = vadd.xlane.f32.xlu1 %v3410_v14 }
0x1420   :  { %v3412_v24 = vpop.xlane.xlu1 %3411 }
0x1421   :  { %v3413_v26 = vmul.f32 0.0078125, %v3412_v24 }
0x1423   :  { %v3414_v27 = vadd.f32 1e-05, %v3413_v26  ;;  %v6185_v26 = vld [vmem:[%s6363_s10] ss:$0 sm:$0xff] }
0x1425   :  { %5535 = vrsqrt.f32 %v3414_v27  ;;  %v590_v27 = vadd.f32 %v6185_v26, %v5932_v51 }
0x1432   :  { %v5536_v28 = vpop.eup %5535 }
0x1433   :  { %v3416_v30 = vmul.f32 %v5536_v28, %v3408_v45  ;;  %v6168_v45 = vld [vmem:[%s6361_s8] ss:$0 sm:$0xff]  ;;  %v595_v28 = vpack.c.bf16 %v590_v27, %v590_v27 }
0x1435   :  { %v3424_v32 = vmul.f32 %v6149_v59, %v3416_v30  ;;  %v1613_v30 = vadd.f32 %v6185_v26, %v6002_v33 }
0x1437   :  { %v3432_v7 = vadd.f32 %v6154_v34, %v3424_v32  ;;  %v598_v32 = vmul.bf16 1027030327, %v595_v28 }
0x1439   :  { %v3433_v35 = vpack.c.bf16 %v3432_v7, %v3432_v7  ;;  %v1618_v7 = vpack.c.bf16 %v1613_v30, %v1613_v30 }
0x143b   :  { %v3436_v36 = vmul.bf16 1027030327, %v3433_v35  ;;  %v3435_v38 = vmul.bf16 1061961548, %v3433_v35  ;;  %v3434_v43 = vmul.bf16 1056980736, %v3433_v35 }
0x143d   :  { %v3437_v37 = vmul.bf16 %v3436_v36, %v3433_v35  ;;  %v599_v36 = vmul.bf16 %v598_v32, %v595_v28 }
0x143f   :  { %v3438_v39 = vadd.bf16 1065369472, %v3437_v37  ;;  %v1621_v37 = vmul.bf16 1027030327, %v1618_v7 }
0x1441   :  { %v3439_v41 = vmul.bf16 %v3438_v39, %v3435_v38  ;;  %v600_v39 = vadd.bf16 1065369472, %v599_v36 }
0x1443   :  { %5537 = vtanh.bf16 %v3439_v41  ;;  %v1622_v41 = vmul.bf16 %v1621_v37, %v1618_v7 }
0x1451   :  { %v5538_v42 = vpop.eup %5537 }
0x1452   :  { %v3441_v46 = vadd.bf16 1065369472, %v5538_v42  ;;  %v597_v42 = vmul.bf16 1061961548, %v595_v28 }
0x1454   :  { %v3442_v47 = vmul.bf16 %v3441_v46, %v3434_v43  ;;  %v601_v43 = vmul.bf16 %v600_v39, %v597_v42  ;;  %v1623_v46 = vadd.bf16 1065369472, %v1622_v41 }
0x1456   :  { %5161 = vmatmul.mubr.bf16.vlgmr.msra.gmra.mxu1 %v3442_v47  ;;  %v1620_v47 = vmul.bf16 1061961548, %v1618_v7 }
0x1457   :  { %4865 = vmatpush3.bf16.msra.mxu1 %v5464_v53 }
0x1458   :  { %4866 = vmatprep.subr.bf16.mxu1 %v5466_v55  ;;  %v1624_v49 = vmul.bf16 %v1623_v46, %v1620_v47  ;;  %v1100_v47 = vadd.f32 %v6185_v26, %v5967_v12 }
0x145b   :  { %4867 = vmatpush3.bf16.msra.mxu1 %v5467_v48 }
0x145c   :  { %4868 = vmatprep.subr.bf16.mxu1 %v5469_v56 }
0x145f   :  { %4869 = vmatpush3.bf16.msra.mxu1 %v5470_v57 }
0x1460   :  { %4870 = vmatprep.subr.bf16.mxu1 %v5472_v62 }
0x1463   :  { %4871 = vmatpush3.bf16.msra.mxu1 %v5473_v58 }
0x1464   :  { %4872 = vmatprep.subr.bf16.mxu1 %v5475_v29 }
0x1467   :  { %4873 = vmatpush3.bf16.msra.mxu1 %v5476_v2 }
0x1468   :  { %4874 = vmatprep.subr.bf16.mxu1 %v5477_v3 }
0x146b   :  { %4875 = vmatpush3.bf16.msra.mxu1 %v5478_v5  ;;  %v596_v5 = vmul.bf16 1056980736, %v595_v28 }
0x146c   :  { %4876 = vmatprep.subr.bf16.mxu1 %v5479_v8 }
0x146f   :  { %4877 = vmatpush3.bf16.msra.mxu1 %v5480_v9 }
0x1470   :  { %4878 = vmatprep.subr.bf16.mxu1 %v5481_v10 }
0x1473   :  { %4879 = vmatpush3.bf16.msra.mxu1 %v5482_v11 }
0x1474   :  { %5204 = vmatprep.subr.bf16.mxu1 %v5755_v44 }
0x1516   :  { %v3548_v13 = vpop.f32.mrf.mxu1 }
0x1517   :  { %v3549_v14 = vadd.f32 %v6168_v45, %v3548_v13 }
0x1518   :  { %v5162_v15 = vpop.f32.mrf.mxu1 }
0x1519   :  { %v3555_v17 = vmul.f32 0.1, %v3549_v14  ;;  %v1619_v14 = vmul.bf16 1056980736, %v1618_v7 }
0x151a   :  { %v3551_v18 = vpop.f32.mrf.mxu1 }
0x151b   :  { %v3556_v19 = vadd.f32 %v3555_v17, %v3554_v16 }
0x151c   :  { %v5163_v4 = vpop.f32.mrf.mxu1 }
0x151d   :  { %5539 = vtanh.f32 %v3556_v19 }
0x151e   :  { %5541 = vtanh.bf16 %v601_v43  ;;  %v116_v43 = vld [vmem:[%s6355_s2] sm:$0x3] }
0x151f   :  { %5543 = vtanh.bf16 %v1624_v49  ;;  %118 = vst.msk [vmem:[#allocation3] sm:$0x3] %vm117_vm2, %v116_v43  ;;  %v1105_v49 = vpack.c.bf16 %v1100_v47, %v1100_v47  ;;  %v5484_v47 = vld [vmem:[#allocation11 + $0x30] sm:$0xff]  }
0x152a   :  { %v6172_v20 = vpop.eup %5539 }
0x152b   :  { %v3558_v6 = vpack.c.bf16 %v6172_v20, %v6172_v20 }
0x152c   :  { %v5542_v57 = vpop.eup %5541 }
0x152d   :  { %5181 = vmatmul.mubr.bf16.vlgmr.msra.gmra.mxu0 %v3558_v6  ;;  %3712 = vst [vmem:[#allocation4] sm:$0x1] %v3558_v6  ;;  %v603_v29 = vadd.bf16 1065369472, %v5542_v57  ;;  %v5544_v0 = vpop.eup %5543  ;;  %v6207_v6 = vld [vmem:[%s6364_s11] ss:$0 sm:$0xff] }
0x152e   :  { %5200 = vmatprep.mubr.msk.bf16.mxu0 %vm5756_vm1, %v5755_v44  ;;  %v1626_v10 = vadd.bf16 1065369472, %v5544_v0 }
0x152f   :  { %v604_v9 = vmul.bf16 %v603_v29, %v596_v5 }
0x1530   :  { %v1627_v18 = vmul.bf16 %v1626_v10, %v1619_v14 }
0x1531   :  { %v605_v17 = vunpack.c.l.bf16 %v604_v9 }
0x1532   :  { %v1628_v28 = vunpack.c.l.bf16 %v1627_v18 }
0x1533   :  { %v613_v27 = vmul.f32 %v6207_v6, %v605_v17 }
0x1534   :  { %v4546_v21 = vld.sshfl [vmem:[#allocation4] sm:$0x11 pattern:$0x75316420]  ;;  %v1636_v7 = vmul.f32 %v6207_v6, %v1628_v28 }
0x1535   :  { %v3764_v22 = vcombine.high %v4546_v21, %v4546_v21  ;;  %v3771_v54 = vrot.slane %v4546_v21, %v5870_v25  ;;  %v614_v32 = vsel %vm327_vm0, %v613_v27, 0.0 }
0x1537   :  { %v3778_v24 = vrot.slane %v3764_v22, %v5870_v25  ;;  %v6194_v25 = vld [vmem:[%s6363_s10] ss:$0 sm:$0xff] }
0x1538   :  { %v2639_v35 = vadd.f32 %v6194_v25, %v6092_v31  ;;  %v6201_v31 = vld [vmem:[%s6363_s10] ss:$0 sm:$0xff] }
0x1539   :  { %3909 = vmatprep.mubr.bf16.mxu1 %v3778_v24 }
0x153a   :  { %3910 = vmatmul.mubr.bf16.vlgmr.msra.gmra.mxu1 %v3771_v54  ;;  %v2644_v38 = vpack.c.bf16 %v2639_v35, %v2639_v35 }
0x153b   :  { %5220 = vmatprep.mubr.msk.bf16.mxu1 %vm5756_vm1, %v5755_v44 }
0x153c   :  { %v2647_v51 = vmul.bf16 1027030327, %v2644_v38  ;;  %v2646_v52 = vmul.bf16 1061961548, %v2644_v38  ;;  %v2645_v22 = vmul.bf16 1056980736, %v2644_v38 }
0x153e   :  { %v2648_v33 = vmul.bf16 %v2647_v51, %v2644_v38 }
0x1540   :  { %v2649_v50 = vadd.bf16 1065369472, %v2648_v33 }
0x1542   :  { %v2650_v53 = vmul.bf16 %v2649_v50, %v2646_v52  ;;  %v2126_v50 = vadd.f32 %v6194_v25, %v6057_v60  ;;  %v1108_v52 = vmul.bf16 1027030327, %v1105_v49 }
0x1544   :  { %5545 = vtanh.bf16 %v2650_v53  ;;  %v2131_v53 = vpack.c.bf16 %v2126_v50, %v2126_v50 }
0x1546   :  { %v2133_v12 = vmul.bf16 1061961548, %v2131_v53 }
0x1552   :  { %v5546_v11 = vpop.eup %5545 }
0x1553   :  { %v2652_v19 = vadd.bf16 1065369472, %v5546_v11 }
0x1555   :  { %v2653_v30 = vmul.bf16 %v2652_v19, %v2645_v22 }
0x1557   :  { %v2654_v35 = vunpack.c.l.bf16 %v2653_v30 }
0x1559   :  { %v2662_v37 = vmul.f32 %v6207_v6, %v2654_v35 }
0x155b   :  { %v2663_v51 = vsel %vm327_vm0, %v2662_v37, 0.0 }
0x15ed   :  { %v3664_v40 = vpop.f32.mrf.mxu0 }
0x15ee   :  { %v3665_v55 = vadd.f32 %v6201_v31, %v3664_v40  ;;  %v3152_v40 = vadd.f32 %v6194_v25, %v6127_v61 }
0x15ef   :  { %v5182_v48 = vpop.f32.mrf.mxu0 }
0x15f0   :  { %v3670_v56 = vpack.c.bf16 %v3665_v55, %v3665_v55  ;;  %v1109_v55 = vmul.bf16 %v1108_v52, %v1105_v49  ;;  %v2134_v48 = vmul.bf16 1027030327, %v2131_v53 }
0x15f1   :  { %v3667_v23 = vpop.f32.mrf.mxu0 }
0x15f2   :  { %v3673_v62 = vmul.bf16 1027030327, %v3670_v56  ;;  %v3672_v2 = vmul.bf16 1061961548, %v3670_v56  ;;  %v3671_v38 = vmul.bf16 1056980736, %v3670_v56  ;;  %v2135_v57 = vmul.bf16 %v2134_v48, %v2131_v53 }
0x15f3   :  { %v5183_v63 = vpop.f32.mrf.mxu0  ;;  %v1110_v23 = vadd.bf16 1065369472, %v1109_v55  ;;  %v5485_v55 = vld [vmem:[#allocation11 + $0x28] sm:$0xff]  }
0x15f4   :  { %v3674_v58 = vmul.bf16 %v3673_v62, %v3670_v56  ;;  %v3157_v56 = vpack.c.bf16 %v3152_v40, %v3152_v40  ;;  %v1107_v63 = vmul.bf16 1061961548, %v1105_v49  ;;  %v2136_v29 = vadd.bf16 1065369472, %v2135_v57  ;;  %v5487_v57 = vld [vmem:[#allocation11 + $0x18] sm:$0xff]  }
0x15f6   :  { %v3675_v3 = vadd.bf16 1065369472, %v3674_v58  ;;  %v3160_v62 = vmul.bf16 1027030327, %v3157_v56  ;;  %v1111_v58 = vmul.bf16 %v1110_v23, %v1107_v63  ;;  %v2137_v26 = vmul.bf16 %v2136_v29, %v2133_v12  ;;  %v5486_v23 = vld [vmem:[#allocation11 + $0x20] sm:$0xff]   ;;  %v5489_v63 = vld [vmem:[#allocation11 + $0x8] sm:$0xff]  }
0x15f7   :  { %v3159_v60 = vmul.bf16 1061961548, %v3157_v56  ;;  %v3158_v27 = vmul.bf16 1056980736, %v3157_v56 }
0x15f8   :  { %v3676_v8 = vmul.bf16 %v3675_v3, %v3672_v2  ;;  %v3161_v0 = vmul.bf16 %v3160_v62, %v3157_v56  ;;  %v5488_v62 = vld [vmem:[#allocation11 + $0x10] sm:$0xff]  }
0x15fa   :  { %v4880_v13 = vpop.f32.mrf.mxu1  ;;  %5547 = vtanh.bf16 %v3676_v8  ;;  %v3162_v2 = vadd.bf16 1065369472, %v3161_v0  ;;  %v1106_v8 = vmul.bf16 1056980736, %v1105_v49  ;;  %v120_v49 = vld [vmem:[#allocation3] sm:$0x3] }
0x15fb   :  { %5549 = vtanh.bf16 %v1111_v58  ;;  %v628_v40 = vmul.f32 0.95, %v120_v49  ;;  %v5490_v58 = vld [vmem:[#allocation11] sm:$0xff]  }
0x15fc   :  { %v4881_v15 = vpop.f32.mrf.mxu1  ;;  %v3163_v3 = vmul.bf16 %v3162_v2, %v3159_v60  ;;  %5551 = vtanh.bf16 %v2137_v26 }
0x15fd   :  { %v4882_v16 = vadd.f32 %v4881_v15, %v4880_v13  ;;  %v2132_v15 = vmul.bf16 1056980736, %v2131_v53 }
0x15fe   :  { %v4883_v4 = vpop.f32.mrf.mxu1  ;;  %5553 = vtanh.bf16 %v3163_v3 }
0x15ff   :  { %v6210_v21 = vadd.f32 %v4882_v16, %v6132_v1  ;;  %v1637_v1 = vsel %vm327_vm0, %v1636_v7, 0.0  ;;  %v6235_v16 = vstv %s6365_s12  ;;  %s5757_s12 = smov 5  }
0x1600   :  { %v4884_v24 = vpop.f32.mrf.mxu1 }
0x1601   :  { %v3917_v54 = vsel %vm327_vm0, %v6210_v21, 0.0 }
0x1602   :  { %3918 = vadd.xlane.f32.xlu0 %v3917_v54 }
0x1606   :  { %615 = vadd.xlane.f32.xlu0 %v614_v32 }
0x1608   :  { %v5548_v36 = vpop.eup %5547 }
0x1609   :  { %v3678_v39 = vadd.bf16 1065369472, %v5548_v36  ;;  %v5550_v5 = vpop.eup %5549 }
0x160a   :  { %1638 = vadd.xlane.f32.xlu0 %v1637_v1  ;;  %v1113_v61 = vadd.bf16 1065369472, %v5550_v5  ;;  %v5552_v25 = vpop.eup %5551 }
0x160b   :  { %v3679_v41 = vmul.bf16 %v3678_v39, %v3671_v38  ;;  %v2139_v10 = vadd.bf16 1065369472, %v5552_v25 }
0x160c   :  { %v1114_v9 = vmul.bf16 %v1113_v61, %v1106_v8  ;;  %v5554_v11 = vpop.eup %5553 }
0x160d   :  { %v3680_v42 = vunpack.c.l.bf16 %v3679_v41  ;;  %v2140_v19 = vmul.bf16 %v2139_v10, %v2132_v15  ;;  %v3165_v4 = vadd.bf16 1065369472, %v5554_v11 }
0x160e   :  { %2664 = vadd.xlane.f32.xlu0 %v2663_v51  ;;  %v1115_v17 = vunpack.c.l.bf16 %v1114_v9 }
0x160f   :  { %v3688_v46 = vmul.f32 %v6207_v6, %v3680_v42  ;;  %v2141_v7 = vunpack.c.l.bf16 %v2140_v19  ;;  %v3166_v35 = vmul.bf16 %v3165_v4, %v3158_v27 }
0x1610   :  { %v1123_v28 = vmul.f32 %v6207_v6, %v1115_v17 }
0x1611   :  { %v3689_v33 = vsel %vm327_vm0, %v3688_v46, 0.0  ;;  %v2149_v37 = vmul.f32 %v6207_v6, %v2141_v7  ;;  %v3167_v38 = vunpack.c.l.bf16 %v3166_v35  ;;  %v5483_v46 = vld [vmem:[#allocation11 + $0x38] sm:$0xff]  }
0x1612   :  { %3690 = vadd.xlane.f32.xlu0 %v3689_v33  ;;  %v1124_v1 = vsel %vm327_vm0, %v1123_v28, 0.0  ;;  %5185 = vmatpush3.bf16.msra.mxu0 %v5483_v46 }
0x1613   :  { %v2150_v39 = vsel %vm327_vm0, %v2149_v37, 0.0  ;;  %v3175_v41 = vmul.f32 %v6207_v6, %v3167_v38  ;;  %5186 = vmatprep.subr.bf16.mxu0 %v5755_v44 }
0x1615   :  { %v3176_v51 = vsel %vm327_vm0, %v3175_v41, 0.0 }
0x1616   :  { %5187 = vmatpush3.bf16.msra.mxu0 %v5484_v47 }
0x1617   :  { %5188 = vmatprep.subr.bf16.mxu0 %v5755_v44 }
0x161a   :  { %5189 = vmatpush3.bf16.msra.mxu0 %v5485_v55 }
0x161b   :  { %5190 = vmatprep.subr.bf16.mxu0 %v5755_v44 }
0x161e   :  { %5191 = vmatpush3.bf16.msra.mxu0 %v5486_v23 }
0x161f   :  { %5192 = vmatprep.subr.bf16.mxu0 %v5755_v44 }
0x1622   :  { %5193 = vmatpush3.bf16.msra.mxu0 %v5487_v57 }
0x1623   :  { %5194 = vmatprep.subr.bf16.mxu0 %v5755_v44 }
0x1626   :  { %5195 = vmatpush3.bf16.msra.mxu0 %v5488_v62 }
0x1627   :  { %5196 = vmatprep.subr.bf16.mxu0 %v5755_v44 }
0x162a   :  { %5197 = vmatpush3.bf16.msra.mxu0 %v5489_v63 }
0x162b   :  { %5198 = vmatprep.subr.bf16.mxu0 %v5755_v44 }
0x162e   :  { %5199 = vmatpush3.bf16.msra.mxu0 %v5490_v58 }
0x168b   :  { %v3919_v13 = vpop.xlane.xlu0 %3918 }
0x168c   :  { %v3920_v14 = vmul.f32 0.0078125, %v3919_v13 }
0x168e   :  { %v6238_v18 = vsub.f32 %v6210_v21, %v3920_v14 }
0x168f   :  { %v616_v22 = vpop.xlane.xlu0 %615 }
0x1690   :  { %v618_v24 = vadd.f32 %v6235_v16, %v616_v22  ;;  %v3922_v54 = vmul.f32 %v6238_v18, %v6238_v18 }
0x1692   :  { %v620_v30 = vand.u32 2147483647, %v618_v24  ;;  %v3923_v32 = vsel %vm327_vm0, %v3922_v54, 0.0  ;;  %v619_v50 = vmax.f32 %v618_v24, 0.0 }
0x1693   :  { %3924 = vadd.xlane.f32.xlu1 %v3923_v32  ;;  %v1639_v29 = vpop.xlane.xlu0 %1638 }
0x1694   :  { %v621_v36 = vsub.f32 0.0, %v620_v30  ;;  %v6263_v12 = vadd.f32 %v1639_v29, %v6235_v16 }
0x1696   :  { %v622_v21 = vmul.f32 1.442695, %v621_v36  ;;  %v1642_v26 = vand.u32 2147483647, %v6263_v12 }
0x1697   :  { %1125 = vadd.xlane.f32.xlu1 %v1124_v1  ;;  %v2665_v0 = vpop.xlane.xlu0 %2664 }
0x1698   :  { %5555 = vpow2.f32 %v622_v21  ;;  %v6267_v2 = vadd.f32 %v2665_v0, %v6235_v16  ;;  %v1643_v3 = vsub.f32 0.0, %v1642_v26 }
0x169a   :  { %v2668_v5 = vand.u32 2147483647, %v6267_v2  ;;  %v1644_v9 = vmul.f32 1.442695, %v1643_v3  ;;  %v1641_v3 = vmax.f32 %v6263_v12, 0.0 }
0x169b   :  { %2151 = vadd.xlane.f32.xlu1 %v2150_v39  ;;  %v3691_v60 = vpop.xlane.xlu0 %3690 }
0x169c   :  { %v6271_v61 = vadd.f32 %v3691_v60, %v6235_v16  ;;  %v2669_v10 = vsub.f32 0.0, %v2668_v5 }
0x169e   :  { %v3694_v11 = vand.u32 2147483647, %v6271_v61  ;;  %v2670_v17 = vmul.f32 1.442695, %v2669_v10 }
0x169f   :  { %3177 = vadd.xlane.f32.xlu1 %v3176_v51 }
0x16a0   :  { %v3695_v19 = vsub.f32 0.0, %v3694_v11 }
0x16a2   :  { %v3696_v27 = vmul.f32 1.442695, %v3695_v19 }
0x16a5   :  { %v5556_v42 = vpop.eup %5555 }
0x16a6   :  { %v624_v43 = vadd.f32 1.0, %v5556_v42 }
0x16a8   :  { %5557 = vlog2.f32 %v624_v43 }
0x16b5   :  { %v5558_v33 = vpop.eup %5557 }
0x16b6   :  { %v626_v52 = vmul.f32 0.6931472, %v5558_v33 }
0x16b8   :  { %v627_v53 = vadd.f32 %v626_v52, %v619_v50 }
0x16ba   :  { %v629_v48 = vmul.f32 0.05, %v627_v53  ;;  %632 = vst.msk [vmem:[#allocation15] sm:$0x3] %vm117_vm2, %v627_v53 }
0x16bc   :  { %v6254_v56 = vadd.f32 %v629_v48, %v628_v40 }
0x16be   :  { %633 = vst.msk [vmem:[#allocation17] sm:$0x3] %vm117_vm2, %v6254_v56  ;;  %v1137_v10 = vmul.f32 0.95, %v6254_v56 }
0x171c   :  { %v3925_v25 = vpop.xlane.xlu1 %3924 }
0x171d   :  { %v3926_v8 = vmul.f32 0.0078125, %v3925_v25 }
0x171f   :  { %v3927_v13 = vadd.f32 1e-05, %v3926_v8 }
0x1720   :  { %v1126_v14 = vpop.xlane.xlu1 %1125 }
0x1721   :  { %5559 = vrsqrt.f32 %v3927_v13  ;;  %v1127_v15 = vadd.f32 %v1126_v14, %v6235_v16 }
0x1722   :  { %5561 = vpow2.f32 %v1644_v9 }
0x1723   :  { %v1129_v4 = vand.u32 2147483647, %v1127_v15  ;;  %5563 = vpow2.f32 %v2670_v17  ;;  %v1128_v26 = vmax.f32 %v1127_v15, 0.0  ;;  %v2667_v15 = vmax.f32 %v6267_v2, 0.0 }
0x1724   :  { %v2152_v22 = vpop.xlane.xlu1 %2151  ;;  %v3693_v2 = vmax.f32 %v6271_v61, 0.0 }
0x1725   :  { %v1130_v24 = vsub.f32 0.0, %v1129_v4  ;;  %v6276_v54 = vadd.f32 %v2152_v22, %v6235_v16 }
0x1727   :  { %v1131_v28 = vmul.f32 1.442695, %v1130_v24  ;;  %v2155_v30 = vand.u32 2147483647, %v6276_v54  ;;  %v2154_v13 = vmax.f32 %v6276_v54, 0.0 }
0x1728   :  { %v3178_v32 = vpop.xlane.xlu1 %3177 }
0x1729   :  { %5565 = vpow2.f32 %v1131_v28  ;;  %v2156_v7 = vsub.f32 0.0, %v2155_v30  ;;  %v6280_v35 = vadd.f32 %v3178_v32, %v6235_v16 }
0x172a   :  { %5567 = vpow2.f32 %v3696_v27 }
0x172b   :  { %v2157_v36 = vmul.f32 1.442695, %v2156_v7  ;;  %v3181_v21 = vand.u32 2147483647, %v6280_v35  ;;  %v3180_v28 = vmax.f32 %v6280_v35, 0.0 }
0x172d   :  { %5569 = vpow2.f32 %v2157_v36  ;;  %v3182_v1 = vsub.f32 0.0, %v3181_v21 }
0x172e   :  { %v5560_v37 = vpop.eup %5559 }
0x172f   :  { %v5562_v38 = vpop.eup %5561  ;;  %v3929_v39 = vmul.f32 %v5560_v37, %v6238_v18  ;;  %v3183_v41 = vmul.f32 1.442695, %v3182_v1  ;;  %v5491_v1 = vld [vmem:[#allocation12 + $0x38] sm:$0xff]  }
0x1730   :  { %v1646_v42 = vadd.f32 1.0, %v5562_v38  ;;  %v5564_v43 = vpop.eup %5563  ;;  %5205 = vmatpush3.bf16.msra.mxu1 %v5491_v1 }
0x1731   :  { %v3937_v51 = vmul.f32 %v6149_v59, %v3929_v39  ;;  %5571 = vpow2.f32 %v3183_v41  ;;  %v2672_v49 = vadd.f32 1.0, %v5564_v43  ;;  %v5492_v41 = vld [vmem:[#allocation12 + $0x30] sm:$0xff]   ;;  %5206 = vmatprep.subr.bf16.mxu1 %v5755_v44 }
0x1732   :  { %5573 = vlog2.f32 %v1646_v42 }
0x1733   :  { %v3945_v46 = vadd.f32 %v6154_v34, %v3937_v51 }
0x1734   :  { %5207 = vmatpush3.bf16.msra.mxu1 %v5492_v41 }
0x1735   :  { %v6286_v33 = vpack.c.bf16 %v3945_v46, %v3945_v46  ;;  %5208 = vmatprep.subr.bf16.mxu1 %v5755_v44 }
0x1736   :  { %v5566_v47 = vpop.eup %5565 }
0x1737   :  { %v5568_v50 = vpop.eup %5567  ;;  %v1133_v52 = vadd.f32 1.0, %v5566_v47  ;;  %v3949_v53 = vmul.bf16 1027030327, %v6286_v33  ;;  %v3948_v48 = vmul.bf16 1061961548, %v6286_v33 }
0x1738   :  { %v3698_v18 = vadd.f32 1.0, %v5568_v50  ;;  %v3947_v32 = vmul.bf16 1056980736, %v6286_v33  ;;  %v5494_v50 = vld [vmem:[#allocation12 + $0x20] sm:$0xff]  }
0x1739   :  { %5575 = vlog2.f32 %v1133_v52  ;;  %v3950_v59 = vmul.bf16 %v3949_v53, %v6286_v33  ;;  %v5495_v52 = vld [vmem:[#allocation12 + $0x18] sm:$0xff]   ;;  %v5496_v53 = vld [vmem:[#allocation12 + $0x10] sm:$0xff]  }
0x173a   :  { %v5570_v40 = vpop.eup %5569  ;;  %5577 = vlog2.f32 %v2672_v49  ;;  %v5493_v49 = vld [vmem:[#allocation12 + $0x28] sm:$0xff]  }
0x173b   :  { %v2159_v55 = vadd.f32 1.0, %v5570_v40  ;;  %v3951_v23 = vadd.bf16 1065369472, %v3950_v59  ;;  %5209 = vmatpush3.bf16.msra.mxu1 %v5493_v49  ;;  %v5497_v40 = vld [vmem:[#allocation12 + $0x8] sm:$0xff]  }
0x173c   :  { %5210 = vmatprep.subr.bf16.mxu1 %v5755_v44 }
0x173d   :  { %5579 = vlog2.f32 %v2159_v55  ;;  %v3952_v57 = vmul.bf16 %v3951_v23, %v3948_v48 }
0x173e   :  { %v5572_v34 = vpop.eup %5571  ;;  %5581 = vlog2.f32 %v3698_v18  ;;  %v5498_v18 = vld [vmem:[#allocation12] sm:$0xff]  }
0x173f   :  { %v3185_v62 = vadd.f32 1.0, %v5572_v34  ;;  %5583 = vtanh.bf16 %v3952_v57  ;;  %v5574_v63 = vpop.eup %5573  ;;  %5211 = vmatpush3.bf16.msra.mxu1 %v5494_v50  ;;  %v4067_v34 = vmul.f32 0.9, %v6172_v20 }
0x1740   :  { %v1648_v29 = vmul.f32 0.6931472, %v5574_v63  ;;  %5212 = vmatprep.subr.bf16.mxu1 %v5755_v44 }
0x1741   :  { %5585 = vlog2.f32 %v3185_v62 }
0x1742   :  { %v1649_v8 = vadd.f32 %v1648_v29, %v1641_v3 }
0x1743   :  { %5213 = vmatpush3.bf16.msra.mxu1 %v5495_v52 }
0x1744   :  { %v1651_v24 = vmul.f32 0.05, %v1649_v8  ;;  %5214 = vmatprep.subr.bf16.mxu1 %v5755_v44 }
0x1746   :  { %v5576_v58 = vpop.eup %5575 }
0x1747   :  { %v5578_v0 = vpop.eup %5577  ;;  %v1135_v60 = vmul.f32 0.6931472, %v5576_v58  ;;  %5215 = vmatpush3.bf16.msra.mxu1 %v5496_v53 }
0x1748   :  { %v2674_v9 = vmul.f32 0.6931472, %v5578_v0  ;;  %5216 = vmatprep.subr.bf16.mxu1 %v5755_v44 }
0x1749   :  { %v1136_v5 = vadd.f32 %v1135_v60, %v1128_v26 }
0x174a   :  { %v5580_v25 = vpop.eup %5579  ;;  %v2675_v27 = vadd.f32 %v2674_v9, %v2667_v15 }
0x174b   :  { %v5582_v11 = vpop.eup %5581  ;;  %v2161_v14 = vmul.f32 0.6931472, %v5580_v25  ;;  %v1138_v17 = vmul.f32 0.05, %v1136_v5  ;;  %1141 = vst.msk [vmem:[#allocation15] sm:$0x3] %vm1140_vm3, %v1136_v5  ;;  %5217 = vmatpush3.bf16.msra.mxu1 %v5497_v40 }
0x174c   :  { %1654 = vst.msk [vmem:[#allocation15] sm:$0x3] %vm1653_vm4, %v1649_v8  ;;  %v3700_v56 = vmul.f32 0.6931472, %v5582_v11  ;;  %v2677_v51 = vmul.f32 0.05, %v2675_v27  ;;  %5218 = vmatprep.subr.bf16.mxu1 %v5755_v44 }
0x174d   :  { %v2162_v12 = vadd.f32 %v2161_v14, %v2154_v13  ;;  %v1139_v19 = vadd.f32 %v1138_v17, %v1137_v10  ;;  %v5584_v4 = vpop.eup %5583 }
0x174e   :  { %v5586_v22 = vpop.eup %5585  ;;  %v3954_v7 = vadd.bf16 1065369472, %v5584_v4  ;;  %v6305_v35 = vadd.f32 %v3700_v56, %v3693_v2 }
0x174f   :  { %v3187_v54 = vmul.f32 0.6931472, %v5586_v22  ;;  %1143 = vrot.lane.b32.xlu0 %v1139_v19, %s5751_s29  ;;  %v1650_v30 = vmul.f32 0.95, %v1139_v19  ;;  %2167 = vst.msk [vmem:[#allocation15] sm:$0x3] %vm2166_vm5, %v2162_v12  ;;  %5219 = vmatpush3.bf16.msra.mxu1 %v5498_v18 }
0x1750   :  { %2680 = vst.msk [vmem:[#allocation15] sm:$0x3] %vm2679_vm6, %v2675_v27  ;;  %v3955_v37 = vmul.bf16 %v3954_v7, %v3947_v32  ;;  %v2164_v38 = vmul.f32 0.05, %v2162_v12  ;;  %s5758_s29 = smov 2  }
0x1751   :  { %v3188_v36 = vadd.f32 %v3187_v54, %v3180_v28  ;;  %v6303_v21 = vadd.f32 %v1651_v24, %v1650_v30  ;;  %v3703_v4 = vmul.f32 0.05, %v6305_v35 }
0x1752   :  { %5201 = vmatmul.mubr.bf16.vlgmr.msra.gmra.mxu0 %v3955_v37 }
0x1753   :  { %v2163_v39 = vmul.f32 0.95, %v6303_v21  ;;  %3193 = vst.msk [vmem:[#allocation15] sm:$0x3] %vm3192_vm7, %v3188_v36  ;;  %v3190_v33 = vmul.f32 0.05, %v3188_v36 }
0x1754   :  { %3706 = vst.msk [vmem:[#allocation15] sm:$0x3] %vm3705_vm8, %v6305_v35 }
0x1755   :  { %v6312_v61 = vadd.f32 %v2164_v38, %v2163_v39 }
0x1757   :  { %v2676_v42 = vmul.f32 0.95, %v6312_v61 }
0x1759   :  { %v6316_v43 = vadd.f32 %v2677_v51, %v2676_v42 }
0x175b   :  { %v3189_v46 = vmul.f32 0.95, %v6316_v43 }
0x175d   :  { %v3191_v47 = vadd.f32 %v3190_v33, %v3189_v46 }
0x175f   :  { %3195 = vrot.lane.b32.xlu0 %v3191_v47, %s5757_s12 }
0x17c1   :  { %v1144_v59 = vpop.permute.xlu0 %1143 }
0x17c2   :  { %1146 = vst.msk [vmem:[#allocation17] sm:$0x3] %vm1140_vm3, %v1144_v59 }
0x17d1   :  { %v3196_v32 = vpop.permute.xlu0 %3195 }
0x1812   :  { %v4061_v55 = vpop.f32.mrf.mxu0 }
0x1813   :  { %v4062_v48 = vadd.f32 %v6168_v45, %v4061_v55 }
0x1814   :  { %v5202_v23 = vpop.f32.mrf.mxu0 }
0x1815   :  { %v4068_v57 = vmul.f32 0.1, %v4062_v48 }
0x1816   :  { %v4064_v62 = vpop.f32.mrf.mxu0 }
0x1817   :  { %v4069_v63 = vadd.f32 %v4068_v57, %v4067_v34 }
0x1818   :  { %v5203_v58 = vpop.f32.mrf.mxu0 }
0x1819   :  { %5587 = vtanh.f32 %v4069_v63 }
0x1826   :  { %v5588_v29 = vpop.eup %5587 }
0x1827   :  { %4225 = vst [vmem:[#allocation2] sm:$0x3] %v5588_v29  ;;  %4227 = vst [vmem:[#allocation14] sm:$0x3] %v5588_v29  ;;  %v4071_v44 = vpack.c.bf16 %v5588_v29, %v5588_v29 }
0x1829   :  { %5221 = vmatmul.mubr.bf16.vlgmr.msra.gmra.mxu1 %v4071_v44 }
0x18e9   :  { %v4177_v0 = vpop.f32.mrf.mxu1 }
0x18ea   :  { %v4178_v26 = vadd.f32 %v6201_v31, %v4177_v0  ;;  %v3702_v31 = vmul.f32 0.95, %v3191_v47 }
0x18eb   :  { %v5222_v60 = vpop.f32.mrf.mxu1 }
0x18ec   :  { %v4183_v3 = vpack.c.bf16 %v4178_v26, %v4178_v26  ;;  %v3704_v22 = vadd.f32 %v3703_v4, %v3702_v31 }
0x18ed   :  { %v4180_v5 = vpop.f32.mrf.mxu1 }
0x18ee   :  { %v4186_v45 = vmul.bf16 1027030327, %v4183_v3  ;;  %v4185_v20 = vmul.bf16 1061961548, %v4183_v3  ;;  %v4184_v13 = vmul.bf16 1056980736, %v4183_v3 }
0x18ef   :  { %v5223_v25 = vpop.f32.mrf.mxu1 }
0x18f0   :  { %v4187_v8 = vmul.bf16 %v4186_v45, %v4183_v3 }
0x18f2   :  { %v4188_v9 = vadd.bf16 1065369472, %v4187_v8 }
0x18f4   :  { %v4189_v10 = vmul.bf16 %v4188_v9, %v4185_v20 }
0x18f6   :  { %5589 = vtanh.bf16 %v4189_v10 }
0x1904   :  { %v5590_v11 = vpop.eup %5589 }
0x1905   :  { %v4191_v14 = vadd.bf16 1065369472, %v5590_v11 }
0x1907   :  { %v4192_v17 = vmul.bf16 %v4191_v14, %v4184_v13 }
0x1909   :  { %v4193_v15 = vunpack.c.l.bf16 %v4192_v17 }
0x190b   :  { %v4201_v12 = vmul.f32 %v6207_v6, %v4193_v15 }
0x190d   :  { %v4202_v19 = vsel %vm327_vm0, %v4201_v12, 0.0 }
0x190e   :  { %4203 = vadd.xlane.f32.xlu1 %v4202_v19 }
0x191f   :  { %1656 = vrot.lane.b32.xlu1 %v6303_v21, %s5758_s29 }
0x1923   :  { %2169 = vrot.lane.b32.xlu1 %v6312_v61, %s5759_s23 }
0x1927   :  { %2682 = vrot.lane.b32.xlu1 %v6316_v43, %s5748_s22  ;;  %s5761_s22 = smov [#allocation14]  }
0x1928   :  { %s4234_s0 = sshll.u32 %s5761_s22, 4  ;;  %s4235_s0 = int_to_ptr.vmem [resolvable:$true] %s4234_s0 }
0x1929   :  { %s5676_s25 = scalar_lea.vmem %s4235_s0, 32  ;;  %p5681_p7 = scmp.lt.s32.totalorder %s4235_s0, %s4235_s0 }
0x192a   :  { %p5677_p6 = scmp.ne.s32.totalorder %s4235_s0, %s5676_s25  ;;  %p5682_p8 = scmp.lt.s32.totalorder %s5676_s25, %s5676_s25 }
0x192b   :  { %3708 = vrot.lane.b32.xlu1 %v3704_v22, %s5760_s24 }
0x192c   :  { %p5683_p9 = por %p5682_p8, %p5681_p7 }
0x192e   :  { %p5684_p10 = pnand %p5683_p9, %p5677_p6 }
0x1997   :  { %v4204_v24 = vpop.xlane.xlu1 %4203 }
0x1998   :  { %v4205_v6 = vadd.f32 %v4204_v24, %v6235_v16 }
0x199a   :  { %v4207_v27 = vand.u32 2147483647, %v4205_v6 }
0x199b   :  { %v1657_v56 = vpop.permute.xlu1 %1656 }
0x199c   :  { %v4208_v28 = vsub.f32 0.0, %v4207_v27  ;;  %1659 = vst.msk [vmem:[#allocation17] sm:$0x3] %vm1653_vm4, %v1657_v56 }
0x199e   :  { %v4209_v54 = vmul.f32 1.442695, %v4208_v28 }
0x199f   :  { %v2170_v30 = vpop.permute.xlu1 %2169 }
0x19a0   :  { %5591 = vpow2.f32 %v4209_v54  ;;  %2172 = vst.msk [vmem:[#allocation17] sm:$0x3] %vm2166_vm5, %v2170_v30 }
0x19a3   :  { %v2683_v2 = vpop.permute.xlu1 %2682 }
0x19a4   :  { %2685 = vst.msk [vmem:[#allocation17] sm:$0x3] %vm2679_vm6, %v2683_v2 }
0x19a5   :  { %3198 = vst.msk [vmem:[#allocation17] sm:$0x3] %vm3192_vm7, %v3196_v32 }
0x19a7   :  { %v3709_v7 = vpop.permute.xlu1 %3708 }
0x19a8   :  { %3711 = vst.msk [vmem:[#allocation17] sm:$0x3] %vm3705_vm8, %v3709_v7 }
0x19ad   :  { %v5592_v16 = vpop.eup %5591 }
0x19ae   :  { %v4211_v36 = vadd.f32 1.0, %v5592_v16 }
0x19b0   :  { %5593 = vlog2.f32 %v4211_v36 }
0x19b1   :  { %5687 = shalt.err (!%p5684_p10)
}
0x19b2   :  { %4237 = dma.vmem_to_hbm [thread:$0]  %s4235_s0, 32, %s6366_s13, [#allocation8]   ;;  %v4206_v1 = vmax.f32 %v4205_v6, 0.0  ;;  %vm4218_vm9 = vcmask 58424   ;;  %v4215_v38 = vmul.f32 0.95, %v3704_v22 }
0x19b3   :  { %s5762_s9 = smov [#allocation15]  }
0x19b4   :  { %s4244_s4 = sshll.u32 %s5762_s9, 4  ;;  %s4245_s4 = int_to_ptr.vmem [resolvable:$true] %s4244_s4 }
0x19b5   :  { %s5696_s1 = scalar_lea.vmem %s4245_s4, 32  ;;  %p5701_p12 = scmp.lt.s32.totalorder %s4245_s4, %s4245_s4 }
0x19b6   :  { %p5697_p11 = scmp.ne.s32.totalorder %s4245_s4, %s5696_s1  ;;  %p5702_p13 = scmp.lt.s32.totalorder %s5696_s1, %s5696_s1 }
0x19b8   :  { %p5703_p0 = por %p5702_p13, %p5701_p12 }
0x19ba   :  { %p5704_p1 = pnand %p5703_p0, %p5697_p11 }
0x19bd   :  { %v5594_v21 = vpop.eup %5593 }
0x19be   :  { %v4213_v35 = vmul.f32 0.6931472, %v5594_v21 }
0x19c0   :  { %v4214_v37 = vadd.f32 %v4213_v35, %v4206_v1 }
0x19c2   :  { %v4216_v39 = vmul.f32 0.05, %v4214_v37  ;;  %4219 = vst.msk [vmem:[#allocation15] sm:$0x3] %vm4218_vm9, %v4214_v37 }
0x19c3   :  { %5707 = shalt.err (!%p5704_p1)
}
0x19c4   :  { %4247 = dma.vmem_to_hbm [thread:$0]  %s4245_s4, 32, %s6367_s14, [#allocation16]   ;;  %v4217_v41 = vadd.f32 %v4216_v39, %v4215_v38 }
0x19c5   :  { %s5763_s27 = smov 7   ;;  %s5764_s5 = smov [#allocation17]  }
0x19c6   :  { %4221 = vrot.lane.b32.xlu0 %v4217_v41, %s5763_s27  ;;  %4226 = vst.msk [vmem:[#allocation3] sm:$0x3] %vm117_vm2, %v4217_v41  ;;  %s4254_s6 = sshll.u32 %s5764_s5, 4  ;;  %s4255_s6 = int_to_ptr.vmem [resolvable:$true] %s4254_s6 }
0x19c7   :  { %s5716_s8 = scalar_lea.vmem %s4255_s6, 32  ;;  %p5721_p3 = scmp.lt.s32.totalorder %s4255_s6, %s4255_s6 }
0x19c8   :  { %p5717_p2 = scmp.ne.s32.totalorder %s4255_s6, %s5716_s8  ;;  %p5722_p4 = scmp.lt.s32.totalorder %s5716_s8, %s5716_s8 }
0x19ca   :  { %p5723_p5 = por %p5722_p4, %p5721_p3 }
0x19cc   :  { %p5724_p6 = pnand %p5723_p5, %p5717_p2 }
0x1a38   :  { %v4222_v61 = vpop.permute.xlu0 %4221 }
0x1a39   :  { %4224 = vst.msk [vmem:[#allocation17] sm:$0x3] %vm4218_vm9, %v4222_v61 }
0x1a3a   :  { %5727 = shalt.err (!%p5724_p6)
}
0x1a3b   :  { %4257 = dma.vmem_to_hbm [thread:$0]  %s4255_s6, 32, %s6368_s15, [#allocation16]  }
0x1a3c   :  { %5742 = dma.done.wait [#allocation8], 32  }
0x1a3d   :  { %5743 = vsyncadd [#allocation8], 4294967264 }
0x1a3e   :  { %5744 = dma.done.wait [#allocation16], 64  }
0x1a3f   :  { %5745 = vsyncadd [#allocation16], 4294967232 }
0x1a40   :  { %4267 = vsyncpa [#allocation7], 1 }
0x1a41   :  { %4268 = vsyncpa [#allocation10], 1 }
0x1a42   :  { %4269 = vsyncpa [#allocation13], 1 }
0x1a43   :  { %4270 = vsyncpa [#allocation8], 1 }
0x1a44   :  { %4271 = vsyncpa [#allocation16], 1 }

</bundles_post_ra>
